<compile_context>
chip_gen: v7x
topology: tpu7x:2x2x1
jax: 0.10.0
libtpu: 0.0.40
codegen_flags: <defaults>
</compile_context>

<pallas_src>
import functools

import jax
import jax.numpy as jnp
from jax.experimental import pallas as pl
from jax.experimental.pallas import tpu as pltpu

d_model = 512
d_ff = 2048
LN_EPS = 1e-5

D_FF_CHUNK = 512
N_FF_CHUNKS = d_ff // D_FF_CHUNK   # 4


def _round_up(x, m):
    return (x + m - 1) // m * m


def _default_tm():
    """Generation-aware token-tile default (best effort; falls back to 1024)."""
    try:
        kind = jax.devices()[0].device_kind.lower()
    except Exception:
        return 1024
    if "v7" in kind:
        # v7x: 64 MiB VMEM per TC -> keep the footprint small and reach grid >= 2 sooner
        # so the "parallel" axis actually spans both TensorCores.
        return 1024
    # v5e / v6e (and older): 128 MiB VMEM -> amortize per-step overhead with large tiles.
    return 2048


def ffn_kernel(x_ref, w1_ref, b1_ref, w2_ref, b2_ref, o_ref):
    # x_ref: (tm, d_model) f32 tile; w1/w2 are bf16 and VMEM-resident for all grid steps.
    x = x_ref[...]                                   # (tm, 512) f32
    x_bf = x.astype(jnp.bfloat16)

    # Chunk d_ff so the live intermediate is (tm, 512) instead of (tm, 2048) f32 (+ bf16 copy).
    # Static 4x unroll -> all Ref slices are static (zero-cost views).
    acc = jnp.zeros((x.shape[0], d_model), dtype=jnp.float32)
    for c in range(N_FF_CHUNKS):
        lo = c * D_FF_CHUNK
        hi = lo + D_FF_CHUNK
        h_c = jnp.dot(x_bf, w1_ref[:, lo:hi],
                      preferred_element_type=jnp.float32)
        h_c = jnp.maximum(h_c + b1_ref[:, lo:hi], 0.0)
        acc = acc + jnp.dot(h_c.astype(jnp.bfloat16), w2_ref[lo:hi, :],
                            preferred_element_type=jnp.float32)

    y = acc + b2_ref[...] + x                        # bias + residual, f32

    # LayerNorm over last dim (gamma=1, beta=0, eps=1e-5): single pass over y for the
    # statistics (mean and E[y^2]); var clamped at 0 for numerical safety.
    mean = jnp.mean(y, axis=-1, keepdims=True)
    mean_sq = jnp.mean(y * y, axis=-1, keepdims=True)
    var = jnp.maximum(mean_sq - mean * mean, 0.0)
    o_ref[...] = ((y - mean) * jax.lax.rsqrt(var + LN_EPS)).astype(o_ref.dtype)


@functools.partial(jax.jit, static_argnames=("tm",))
def _poswise_ffn_impl(x, w1_bf, b1, w2_bf, b2, *, tm):
    B, S, D = x.shape
    assert D == d_model
    N = B * S

    # Token tile: MXU-friendly but clamped for small inputs; always a multiple of 8 sublanes.
    tm_eff = min(tm, _round_up(N, 8))
    # Ragged last block handled by Pallas (no wrapper pad / slice HBM passes).
    grid = (pl.cdiv(N, tm_eff),)

    x2d = x.reshape(N, D)

    out2d = pl.pallas_call(
        ffn_kernel,
        out_shape=jax.ShapeDtypeStruct((N, D), x.dtype),
        grid_spec=pltpu.PrefetchScalarGridSpec(
            num_scalar_prefetch=0,
            grid=grid,
            in_specs=[
                pl.BlockSpec((tm_eff, d_model), lambda i: (i, 0)),    # x tile (double-buffered)
                pl.BlockSpec((d_model, d_ff), lambda i: (0, 0),       # W1 (resident, 1 buffer)
                             pipeline_mode=pl.Buffered(1)),
                pl.BlockSpec((1, d_ff), lambda i: (0, 0),             # b1 (resident, 1 buffer)
                             pipeline_mode=pl.Buffered(1)),
                pl.BlockSpec((d_ff, d_model), lambda i: (0, 0),       # W2 (resident, 1 buffer)
                             pipeline_mode=pl.Buffered(1)),
                pl.BlockSpec((1, d_model), lambda i: (0, 0),          # b2 (resident, 1 buffer)
                             pipeline_mode=pl.Buffered(1)),
            ],
            out_specs=pl.BlockSpec((tm_eff, d_model), lambda i: (i, 0)),
        ),
        compiler_params=pltpu.CompilerParams(
            dimension_semantics=("parallel",),   # lets v7x shard grid steps across both TCs
            vmem_limit_bytes=48 << 20,           # valid on v5e/v6e (128 MiB) and v7x (64 MiB)
        ),
    )(x2d, w1_bf, b1, w2_bf, b2)

    return out2d.reshape(B, S, D)


def poswise_ffn(x, w1, b1, w2, b2, *, tm=None):
    """x: (B, S, d_model) f32. w1: (d_model, d_ff), w2: (d_ff, d_model).
    Pre-cast weights to bf16 once outside the hot path to avoid a per-call conversion."""
    if tm is None:
        tm = _default_tm()
    if w1.dtype != jnp.bfloat16:
        w1 = w1.astype(jnp.bfloat16)
    if w2.dtype != jnp.bfloat16:
        w2 = w2.astype(jnp.bfloat16)
    # TODO(synk): optional fp8 (e4m3) weight path for v7x needs per-tensor scaling; not implemented.
    return _poswise_ffn_impl(x, w1, b1, w2, b2, tm=tm)


def reference_ffn(x, w1, b1, w2, b2):
    h = jnp.maximum(jnp.einsum("bsd,df->bsf", x, w1) + b1[0], 0.0)
    y = jnp.einsum("bsf,fd->bsd", h, w2) + b2[0] + x
    mean = jnp.mean(y, axis=-1, keepdims=True)
    var = jnp.mean((y - mean) ** 2, axis=-1, keepdims=True)
    return (y - mean) * jax.lax.rsqrt(var + LN_EPS)


if __name__ == "__main__":
    key = jax.random.PRNGKey(0)
    k_x, k_w1, k_b1, k_w2, k_b2 = jax.random.split(key, 5)

    B, S = 2, 8
    x = jax.random.normal(k_x, (B, S, d_model), dtype=jnp.float32)

    # Conv1d(kernel_size=1) weight (out, in, 1) stored in matmul form (in, out).
    w1 = jax.random.normal(k_w1, (d_model, d_ff), dtype=jnp.float32) * (1.0 / jnp.sqrt(d_model))
    b1 = jax.random.normal(k_b1, (1, d_ff), dtype=jnp.float32) * 0.02
    w2 = jax.random.normal(k_w2, (d_ff, d_model), dtype=jnp.float32) * (1.0 / jnp.sqrt(d_ff))
    b2 = jax.random.normal(k_b2, (1, d_model), dtype=jnp.float32) * 0.02

    # Cast weights to bf16 once, outside the per-call path (perf review item).
    w1_bf = w1.astype(jnp.bfloat16)
    w2_bf = w2.astype(jnp.bfloat16)

    out = poswise_ffn(x, w1_bf, b1, w2_bf, b2)
    out = jax.block_until_ready(out)

    ref = reference_ffn(x, w1, b1, w2, b2)
    assert out.shape == (B, S, d_model)
    # Matmuls use bf16 operands with f32 accumulation; LayerNorm output is O(1), so 5e-2 is ample.
    assert jnp.allclose(out, ref, atol=5e-2, rtol=5e-2), "mismatch vs reference"

    print("KERNEL_OK")
</pallas_src>

<mosaic_0001>
module attributes {stable_mosaic.version = 11 : i64} {
  func.func @ffn_kernel(%arg0: i32, %arg1: memref<16x512xf32, #tpu.memory_space<vmem>>, %arg2: memref<512x2048xbf16, #tpu.memory_space<vmem>>, %arg3: memref<1x2048xf32, #tpu.memory_space<vmem>>, %arg4: memref<2048x512xbf16, #tpu.memory_space<vmem>>, %arg5: memref<1x512xf32, #tpu.memory_space<vmem>>, %arg6: memref<16x512xf32, #tpu.memory_space<vmem>>) attributes {dimension_semantics = [#tpu.dimension_semantics<parallel>], iteration_bounds = array<i64: 1>, scalar_prefetch = 0 : i64, scratch_operands = 0 : i64, tpu.core_type = #tpu.core_type<tc>, window_params = [{transform_indices = @transform_0, window_bounds = array<i64: 16, 512>}, {pipeline_mode = #tpu.pipeline_mode<synchronous>, transform_indices = @transform_1, window_bounds = array<i64: 512, 2048>}, {pipeline_mode = #tpu.pipeline_mode<synchronous>, transform_indices = @transform_2, window_bounds = array<i64: 1, 2048>}, {pipeline_mode = #tpu.pipeline_mode<synchronous>, transform_indices = @transform_3, window_bounds = array<i64: 2048, 512>}, {pipeline_mode = #tpu.pipeline_mode<synchronous>, transform_indices = @transform_4, window_bounds = array<i64: 1, 512>}, {transform_indices = @transform_5, window_bounds = array<i64: 16, 512>}]} {
    %c0 = arith.constant 0 : index
    %c0_0 = arith.constant 0 : index
    %0 = vector.load %arg1[%c0, %c0_0] : memref<16x512xf32, #tpu.memory_space<vmem>>, vector<16x512xf32>
    %1 = arith.truncf %0 : vector<16x512xf32> to vector<16x512xbf16>
    %cst = arith.constant 0.000000e+00 : f32
    %2 = vector.broadcast %cst : f32 to vector<16x512xf32>
    %c0_1 = arith.constant 0 : index
    %c0_2 = arith.constant 0 : index
    %3 = vector.load %arg2[%c0_1, %c0_2] : memref<512x2048xbf16, #tpu.memory_space<vmem>>, vector<512x512xbf16>
    %cst_3 = arith.constant dense<0.000000e+00> : vector<16x512xf32>
    %4 = tpu.matmul %1, %3, %cst_3 {dimension_numbers = #tpu.dot_dimension_numbers<[1], [0], [0], [1], [0, 0, 1, 1], [], []>} : vector<16x512xbf16>, vector<512x512xbf16>, vector<16x512xf32> -> vector<16x512xf32>
    %c0_4 = arith.constant 0 : index
    %c0_5 = arith.constant 0 : index
    %5 = vector.load %arg3[%c0_4, %c0_5] : memref<1x2048xf32, #tpu.memory_space<vmem>>, vector<1x512xf32>
    %6 = vector.broadcast %5 : vector<1x512xf32> to vector<16x512xf32>
    %7 = arith.addf %4, %6 : vector<16x512xf32>
    %cst_6 = arith.constant 0.000000e+00 : f32
    %8 = vector.broadcast %cst_6 : f32 to vector<16x512xf32>
    %9 = arith.maximumf %7, %8 : vector<16x512xf32>
    %10 = arith.truncf %9 : vector<16x512xf32> to vector<16x512xbf16>
    %c0_7 = arith.constant 0 : index
    %c0_8 = arith.constant 0 : index
    %11 = vector.load %arg4[%c0_7, %c0_8] : memref<2048x512xbf16, #tpu.memory_space<vmem>>, vector<512x512xbf16>
    %cst_9 = arith.constant dense<0.000000e+00> : vector<16x512xf32>
    %12 = tpu.matmul %10, %11, %cst_9 {dimension_numbers = #tpu.dot_dimension_numbers<[1], [0], [0], [1], [0, 0, 1, 1], [], []>} : vector<16x512xbf16>, vector<512x512xbf16>, vector<16x512xf32> -> vector<16x512xf32>
    %13 = arith.addf %2, %12 : vector<16x512xf32>
    %c0_10 = arith.constant 0 : index
    %c512 = arith.constant 512 : index
    %14 = vector.load %arg2[%c0_10, %c512] : memref<512x2048xbf16, #tpu.memory_space<vmem>>, vector<512x512xbf16>
    %cst_11 = arith.constant dense<0.000000e+00> : vector<16x512xf32>
    %15 = tpu.matmul %1, %14, %cst_11 {dimension_numbers = #tpu.dot_dimension_numbers<[1], [0], [0], [1], [0, 0, 1, 1], [], []>} : vector<16x512xbf16>, vector<512x512xbf16>, vector<16x512xf32> -> vector<16x512xf32>
    %c0_12 = arith.constant 0 : index
    %c512_13 = arith.constant 512 : index
    %16 = vector.load %arg3[%c0_12, %c512_13] : memref<1x2048xf32, #tpu.memory_space<vmem>>, vector<1x512xf32>
    %17 = vector.broadcast %16 : vector<1x512xf32> to vector<16x512xf32>
    %18 = arith.addf %15, %17 : vector<16x512xf32>
    %cst_14 = arith.constant 0.000000e+00 : f32
    %19 = vector.broadcast %cst_14 : f32 to vector<16x512xf32>
    %20 = arith.maximumf %18, %19 : vector<16x512xf32>
    %21 = arith.truncf %20 : vector<16x512xf32> to vector<16x512xbf16>
    %c512_15 = arith.constant 512 : index
    %c0_16 = arith.constant 0 : index
    %22 = vector.load %arg4[%c512_15, %c0_16] : memref<2048x512xbf16, #tpu.memory_space<vmem>>, vector<512x512xbf16>
    %cst_17 = arith.constant dense<0.000000e+00> : vector<16x512xf32>
    %23 = tpu.matmul %21, %22, %cst_17 {dimension_numbers = #tpu.dot_dimension_numbers<[1], [0], [0], [1], [0, 0, 1, 1], [], []>} : vector<16x512xbf16>, vector<512x512xbf16>, vector<16x512xf32> -> vector<16x512xf32>
    %24 = arith.addf %13, %23 : vector<16x512xf32>
    %c0_18 = arith.constant 0 : index
    %c1024 = arith.constant 1024 : index
    %25 = vector.load %arg2[%c0_18, %c1024] : memref<512x2048xbf16, #tpu.memory_space<vmem>>, vector<512x512xbf16>
    %cst_19 = arith.constant dense<0.000000e+00> : vector<16x512xf32>
    %26 = tpu.matmul %1, %25, %cst_19 {dimension_numbers = #tpu.dot_dimension_numbers<[1], [0], [0], [1], [0, 0, 1, 1], [], []>} : vector<16x512xbf16>, vector<512x512xbf16>, vector<16x512xf32> -> vector<16x512xf32>
    %c0_20 = arith.constant 0 : index
    %c1024_21 = arith.constant 1024 : index
    %27 = vector.load %arg3[%c0_20, %c1024_21] : memref<1x2048xf32, #tpu.memory_space<vmem>>, vector<1x512xf32>
    %28 = vector.broadcast %27 : vector<1x512xf32> to vector<16x512xf32>
    %29 = arith.addf %26, %28 : vector<16x512xf32>
    %cst_22 = arith.constant 0.000000e+00 : f32
    %30 = vector.broadcast %cst_22 : f32 to vector<16x512xf32>
    %31 = arith.maximumf %29, %30 : vector<16x512xf32>
    %32 = arith.truncf %31 : vector<16x512xf32> to vector<16x512xbf16>
    %c1024_23 = arith.constant 1024 : index
    %c0_24 = arith.constant 0 : index
    %33 = vector.load %arg4[%c1024_23, %c0_24] : memref<2048x512xbf16, #tpu.memory_space<vmem>>, vector<512x512xbf16>
    %cst_25 = arith.constant dense<0.000000e+00> : vector<16x512xf32>
    %34 = tpu.matmul %32, %33, %cst_25 {dimension_numbers = #tpu.dot_dimension_numbers<[1], [0], [0], [1], [0, 0, 1, 1], [], []>} : vector<16x512xbf16>, vector<512x512xbf16>, vector<16x512xf32> -> vector<16x512xf32>
    %35 = arith.addf %24, %34 : vector<16x512xf32>
    %c0_26 = arith.constant 0 : index
    %c1536 = arith.constant 1536 : index
    %36 = vector.load %arg2[%c0_26, %c1536] : memref<512x2048xbf16, #tpu.memory_space<vmem>>, vector<512x512xbf16>
    %cst_27 = arith.constant dense<0.000000e+00> : vector<16x512xf32>
    %37 = tpu.matmul %1, %36, %cst_27 {dimension_numbers = #tpu.dot_dimension_numbers<[1], [0], [0], [1], [0, 0, 1, 1], [], []>} : vector<16x512xbf16>, vector<512x512xbf16>, vector<16x512xf32> -> vector<16x512xf32>
    %c0_28 = arith.constant 0 : index
    %c1536_29 = arith.constant 1536 : index
    %38 = vector.load %arg3[%c0_28, %c1536_29] : memref<1x2048xf32, #tpu.memory_space<vmem>>, vector<1x512xf32>
    %39 = vector.broadcast %38 : vector<1x512xf32> to vector<16x512xf32>
    %40 = arith.addf %37, %39 : vector<16x512xf32>
    %cst_30 = arith.constant 0.000000e+00 : f32
    %41 = vector.broadcast %cst_30 : f32 to vector<16x512xf32>
    %42 = arith.maximumf %40, %41 : vector<16x512xf32>
    %43 = arith.truncf %42 : vector<16x512xf32> to vector<16x512xbf16>
    %c1536_31 = arith.constant 1536 : index
    %c0_32 = arith.constant 0 : index
    %44 = vector.load %arg4[%c1536_31, %c0_32] : memref<2048x512xbf16, #tpu.memory_space<vmem>>, vector<512x512xbf16>
    %cst_33 = arith.constant dense<0.000000e+00> : vector<16x512xf32>
    %45 = tpu.matmul %43, %44, %cst_33 {dimension_numbers = #tpu.dot_dimension_numbers<[1], [0], [0], [1], [0, 0, 1, 1], [], []>} : vector<16x512xbf16>, vector<512x512xbf16>, vector<16x512xf32> -> vector<16x512xf32>
    %46 = arith.addf %35, %45 : vector<16x512xf32>
    %c0_34 = arith.constant 0 : index
    %c0_35 = arith.constant 0 : index
    %47 = vector.load %arg5[%c0_34, %c0_35] : memref<1x512xf32, #tpu.memory_space<vmem>>, vector<1x512xf32>
    %48 = vector.broadcast %47 : vector<1x512xf32> to vector<16x512xf32>
    %49 = arith.addf %46, %48 : vector<16x512xf32>
    %50 = arith.addf %49, %0 : vector<16x512xf32>
    %cst_36 = arith.constant dense<0.000000e+00> : vector<16xf32>
    %51 = vector.multi_reduction <add>, %50, %cst_36 [1] : vector<16x512xf32> to vector<16xf32>
    %52 = vector.shape_cast %51 : vector<16xf32> to vector<16x1xf32>
    %cst_37 = arith.constant 5.120000e+02 : f32
    %53 = vector.broadcast %cst_37 : f32 to vector<16x1xf32>
    %54 = arith.divf %52, %53 : vector<16x1xf32>
    %55 = arith.mulf %50, %50 : vector<16x512xf32>
    %cst_38 = arith.constant dense<0.000000e+00> : vector<16xf32>
    %56 = vector.multi_reduction <add>, %55, %cst_38 [1] : vector<16x512xf32> to vector<16xf32>
    %57 = vector.shape_cast %56 : vector<16xf32> to vector<16x1xf32>
    %cst_39 = arith.constant 5.120000e+02 : f32
    %58 = vector.broadcast %cst_39 : f32 to vector<16x1xf32>
    %59 = arith.divf %57, %58 : vector<16x1xf32>
    %60 = arith.mulf %54, %54 : vector<16x1xf32>
    %61 = arith.subf %59, %60 : vector<16x1xf32>
    %cst_40 = arith.constant 0.000000e+00 : f32
    %62 = vector.broadcast %cst_40 : f32 to vector<16x1xf32>
    %63 = arith.maximumf %61, %62 : vector<16x1xf32>
    %64 = vector.broadcast %54 : vector<16x1xf32> to vector<16x512xf32>
    %65 = arith.subf %50, %64 : vector<16x512xf32>
    %cst_41 = arith.constant 9.99999974E-6 : f32
    %66 = vector.broadcast %cst_41 : f32 to vector<16x1xf32>
    %67 = arith.addf %63, %66 : vector<16x1xf32>
    %68 = math.rsqrt %67 : vector<16x1xf32>
    %69 = vector.broadcast %68 : vector<16x1xf32> to vector<16x512xf32>
    %70 = arith.mulf %65, %69 : vector<16x512xf32>
    %c0_42 = arith.constant 0 : index
    %c0_43 = arith.constant 0 : index
    %71 = vector.load %arg6[%c0_42, %c0_43] : memref<16x512xf32, #tpu.memory_space<vmem>>, vector<16x512xf32>
    tpu.vector_store %arg6[%c0_42, %c0_43], %70 {strides = array<i32>} : memref<16x512xf32, #tpu.memory_space<vmem>>, vector<16x512xf32>,
    return
  }
  func.func @transform_0(%arg0: i32) -> (i32, i32) {
    %c0_i32 = arith.constant 0 : i32
    %c0_i32_0 = arith.constant 0 : i32
    return %arg0, %c0_i32 : i32, i32
  }
  func.func @transform_1(%arg0: i32) -> (i32, i32) {
    %c0_i32 = arith.constant 0 : i32
    %c0_i32_0 = arith.constant 0 : i32
    %c0_i32_1 = arith.constant 0 : i32
    return %c0_i32, %c0_i32_0 : i32, i32
  }
  func.func @transform_2(%arg0: i32) -> (i32, i32) {
    %c0_i32 = arith.constant 0 : i32
    %c0_i32_0 = arith.constant 0 : i32
    %c0_i32_1 = arith.constant 0 : i32
    return %c0_i32, %c0_i32_0 : i32, i32
  }
  func.func @transform_3(%arg0: i32) -> (i32, i32) {
    %c0_i32 = arith.constant 0 : i32
    %c0_i32_0 = arith.constant 0 : i32
    %c0_i32_1 = arith.constant 0 : i32
    return %c0_i32, %c0_i32_0 : i32, i32
  }
  func.func @transform_4(%arg0: i32) -> (i32, i32) {
    %c0_i32 = arith.constant 0 : i32
    %c0_i32_0 = arith.constant 0 : i32
    %c0_i32_1 = arith.constant 0 : i32
    return %c0_i32, %c0_i32_0 : i32, i32
  }
  func.func @transform_5(%arg0: i32) -> (i32, i32) {
    %c0_i32 = arith.constant 0 : i32
    %c0_i32_0 = arith.constant 0 : i32
    return %arg0, %c0_i32 : i32, i32
  }
}

</mosaic_0001>

<bundles_post_ra>
// kernel: _poswise_ffn_impl.1
= control target key start
LH: loop header
LB: loop body
LE: loop exit
PB: predicated region body
PF: predicated region fallthrough
CT: control target
= control target key end

     0   :  { %10 = vsyncpa [#allocation3], 0  ;;  %s10215_s0 = inlined_call_operand.hbm [shape: f32[16,512], index: 0, kind: input, shape index: {}]   ;;  %s10216_s1 = inlined_call_operand.hbm [shape: bf16[512,2048], index: 1, kind: input, shape index: {}]   ;;  %s10217_s2 = inlined_call_operand.hbm [shape: f32[1,2048], index: 2, kind: input, shape index: {}]   ;;  %s10218_s3 = inlined_call_operand.hbm [shape: bf16[2048,512], index: 3, kind: input, shape index: {}]   ;;  %s10219_s4 = inlined_call_operand.hbm [shape: f32[1,512], index: 4, kind: input, shape index: {}]   ;;  %s10220_s5 = inlined_call_operand.hbm [shape: f32[16,512], index: 5, kind: output, shape index: {}]  }
   0x1   :  { %11 = vsyncpa [#allocation6], 0 }
   0x2   :  { %12 = vsyncpa [#allocation9], 0 }
   0x3   :  { %13 = vsyncpa [#allocation4], 0  ;;  %s9969_s18 = smov [#allocation5]   ;;  %s9829_s22 = scalar_lea.hbm %s10216_s1, 65536 }
   0x4   :  { %s31_s19 = sshll.u32 %s9969_s18, 4  ;;  %p9830_p0 = scmp.ne.s32.totalorder %s10216_s1, %s9829_s22  ;;  %s32_s19 = int_to_ptr.vmem [resolvable:$true] %s31_s19 }
   0x5   :  { %p9833_p1 = scmp.lt.u32.totalorder %s9829_s22, %s10216_s1 }
   0x7   :  { %p9835_p2 = pnand %p9833_p1, %p9830_p0 }
   0x9   :  { %9838 = shalt.err (!%p9835_p2)
}
   0xa   :  { %s9839_s27 = scalar_lea.vmem %s32_s19, 65536  ;;  %p9844_p4 = scmp.lt.s32.totalorder %s32_s19, %s32_s19 }
   0xb   :  { %p9840_p3 = scmp.ne.s32.totalorder %s32_s19, %s9839_s27  ;;  %p9845_p5 = scmp.lt.s32.totalorder %s9839_s27, %s9839_s27 }
   0xd   :  { %p9846_p6 = por %p9845_p5, %p9844_p4 }
   0xf   :  { %p9847_p7 = pnand %p9846_p6, %p9840_p3 }
  0x11   :  { %9850 = shalt.err (!%p9847_p7)
}
  0x12   :  { %s9970_s28 = smov 1024   ;;  %s9971_s29 = smov 64  }
  0x13   :  { %37 = dma.hbm_to_vmem [thread:$0]  %s10216_s1, 65536, %s32_s19, [#allocation6], %s9970_s28, %s9970_s28, %s9971_s29  }
  0x14   :  { %s9972_s7 = smov [#allocation8]   ;;  %s9851_s11 = scalar_lea.hbm %s10218_s3, 65536 }
  0x15   :  { %s53_s8 = sshll.u32 %s9972_s7, 4  ;;  %p9852_p8 = scmp.ne.s32.totalorder %s10218_s3, %s9851_s11  ;;  %s54_s8 = int_to_ptr.vmem [resolvable:$true] %s53_s8 }
  0x16   :  { %p9855_p9 = scmp.lt.u32.totalorder %s9851_s11, %s10218_s3 }
  0x18   :  { %p9857_p10 = pnand %p9855_p9, %p9852_p8 }
  0x1a   :  { %9860 = shalt.err (!%p9857_p10)
}
  0x1b   :  { %s9861_s16 = scalar_lea.vmem %s54_s8, 65536  ;;  %p9866_p12 = scmp.lt.s32.totalorder %s54_s8, %s54_s8 }
  0x1c   :  { %p9862_p11 = scmp.ne.s32.totalorder %s54_s8, %s9861_s16  ;;  %p9867_p13 = scmp.lt.s32.totalorder %s9861_s16, %s9861_s16 }
  0x1e   :  { %p9868_p0 = por %p9867_p13, %p9866_p12 }
  0x20   :  { %p9869_p1 = pnand %p9868_p0, %p9862_p11 }
  0x22   :  { %9872 = shalt.err (!%p9869_p1)
}
  0x23   :  { %s9973_s1 = smov 256   ;;  %s9974_s17 = smov 16  }
  0x24   :  { %59 = dma.hbm_to_vmem [thread:$0]  %s10218_s3, 65536, %s54_s8, [#allocation9], %s9973_s1, %s9973_s1, %s9974_s17  }
  0x25   :  { %s9975_s20 = smov [#allocation2]   ;;  %s9873_s24 = scalar_lea.hbm %s10215_s0, 1024 }
  0x26   :  { %s19_s21 = sshll.u32 %s9975_s20, 4  ;;  %p9874_p2 = scmp.ne.s32.totalorder %s10215_s0, %s9873_s24  ;;  %s20_s21 = int_to_ptr.vmem [resolvable:$true] %s19_s21 }
  0x27   :  { %p9877_p3 = scmp.lt.u32.totalorder %s9873_s24, %s10215_s0 }
  0x29   :  { %p9879_p4 = pnand %p9877_p3, %p9874_p2 }
  0x2b   :  { %9882 = shalt.err (!%p9879_p4)
}
  0x2c   :  { %s9883_s29 = scalar_lea.vmem %s20_s21, 1024  ;;  %p9888_p6 = scmp.lt.s32.totalorder %s20_s21, %s20_s21 }
  0x2d   :  { %p9884_p5 = scmp.ne.s32.totalorder %s20_s21, %s9883_s29  ;;  %p9889_p7 = scmp.lt.s32.totalorder %s9883_s29, %s9883_s29 }
  0x2f   :  { %p9890_p8 = por %p9889_p7, %p9888_p6 }
  0x31   :  { %p9891_p9 = pnand %p9890_p8, %p9884_p5 }
  0x33   :  { %9894 = shalt.err (!%p9891_p9)
}
  0x34   :  { %s9976_s3 = smov 512   ;;  %s9977_s30 = smov 32  }
  0x35   :  { %25 = dma.hbm_to_vmem [thread:$0]  %s10215_s0, 1024, %s20_s21, [#allocation3], %s9976_s3, %s9976_s3, %s9977_s30  }
  0x36   :  { %s9978_s8 = smov [#allocation7]   ;;  %s9979_s10 = smov [#allocation10]  }
  0x37   :  { %s44_s9 = sshll.u32 %s9978_s8, 4  ;;  %s66_s11 = sshll.u32 %s9979_s10, 4  ;;  %s45_s9 = int_to_ptr.vmem [resolvable:$true] %s44_s9  ;;  %s67_s11 = int_to_ptr.vmem [resolvable:$true] %s66_s11 }
  0x38   :  { %s9895_s14 = scalar_lea.hbm %s10217_s2, 256 }
  0x39   :  { %p9896_p10 = scmp.ne.s32.totalorder %s10217_s2, %s9895_s14  ;;  %p9899_p11 = scmp.lt.u32.totalorder %s9895_s14, %s10217_s2 }
  0x3b   :  { %p9901_p12 = pnand %p9899_p11, %p9896_p10 }
  0x3d   :  { %9904 = shalt.err (!%p9901_p12)
}
  0x3e   :  { %s9905_s0 = scalar_lea.vmem %s45_s9, 256  ;;  %p9910_p0 = scmp.lt.s32.totalorder %s45_s9, %s45_s9 }
  0x3f   :  { %p9906_p13 = scmp.ne.s32.totalorder %s45_s9, %s9905_s0  ;;  %p9911_p1 = scmp.lt.s32.totalorder %s9905_s0, %s9905_s0 }
  0x41   :  { %p9912_p2 = por %p9911_p1, %p9910_p0 }
  0x43   :  { %p9913_p3 = pnand %p9912_p2, %p9906_p13 }
  0x45   :  { %9916 = shalt.err (!%p9913_p3)
}
  0x46   :  { %47 = dma.hbm_to_vmem [thread:$0]  %s10217_s2, 256, %s45_s9, [#allocation6]  }
  0x47   :  { %s9917_s22 = scalar_lea.hbm %s10219_s4, 64 }
  0x48   :  { %p9918_p4 = scmp.ne.s32.totalorder %s10219_s4, %s9917_s22  ;;  %p9921_p5 = scmp.lt.u32.totalorder %s9917_s22, %s10219_s4 }
  0x4a   :  { %p9923_p6 = pnand %p9921_p5, %p9918_p4 }
  0x4c   :  { %9926 = shalt.err (!%p9923_p6)
}
  0x4d   :  { %s9927_s27 = scalar_lea.vmem %s67_s11, 64  ;;  %p9932_p8 = scmp.lt.s32.totalorder %s67_s11, %s67_s11 }
  0x4e   :  { %p9928_p7 = scmp.ne.s32.totalorder %s67_s11, %s9927_s27  ;;  %p9933_p9 = scmp.lt.s32.totalorder %s9927_s27, %s9927_s27 }
  0x50   :  { %p9934_p10 = por %p9933_p9, %p9932_p8 }
  0x52   :  { %p9935_p11 = pnand %p9934_p10, %p9928_p7 }
  0x54   :  { %9938 = shalt.err (!%p9935_p11)
}
  0x55   :  { %69 = dma.hbm_to_vmem [thread:$0]  %s10219_s4, 64, %s67_s11, [#allocation9]  }
  0x56   :  { %9961 = dma.done.wait [#allocation3], 1024  }
  0x57   :  { %9962 = vsyncadd [#allocation3], 4294966272 }
  0x58   :  { %9963 = dma.done.wait [#allocation6], 65792  }
  0x59   :  { %9964 = vsyncadd [#allocation6], 4294901504 }
  0x5a   :  { %9965 = dma.done.wait [#allocation9], 65600  }
  0x5b   :  { %9966 = vsyncadd [#allocation9], 4294901696  ;;  %v97_v0 = vld [vmem:[#allocation5] sm:$0xff]  ;;  %v98_v2 = vld [vmem:[#allocation5 + $0x8] sm:$0xff]  ;;  %s9980_s4 = smov [#allocation11]  }
  0x5c   :  { %v99_v1 = vld [vmem:[#allocation5 + $0x40] sm:$0xff]  ;;  %v100_v4 = vld [vmem:[#allocation5 + $0x48] sm:$0xff]  ;;  %s7879_s29 = sshll.u32 %s9980_s4, 4  ;;  %s7880_s29 = int_to_ptr.vmem [resolvable:$true] %s7879_s29 }
  0x5d   :  { %v7894_v3 = vcombine.high %v97_v0, %v99_v1  ;;  %v7893_v5 = vcombine.low %v97_v0, %v99_v1  ;;  %v101_v6 = vld [vmem:[#allocation5 + $0x80] sm:$0xff]  ;;  %v7896_v8 = vcombine.high %v98_v2, %v100_v4  ;;  %v7895_v9 = vcombine.low %v98_v2, %v100_v4  ;;  %v102_v11 = vld [vmem:[#allocation5 + $0x88] sm:$0xff]  ;;  %s9939_s6 = scalar_lea.vmem %s7880_s29, 1024  ;;  %p9944_p13 = scmp.lt.s32.totalorder %s7880_s29, %s7880_s29 }
  0x5e   :  { %v103_v7 = vld [vmem:[#allocation5 + $0xc0] sm:$0xff]  ;;  %v104_v12 = vld [vmem:[#allocation5 + $0xc8] sm:$0xff]  ;;  %p9940_p12 = scmp.ne.s32.totalorder %s7880_s29, %s9939_s6  ;;  %p9945_p0 = scmp.lt.s32.totalorder %s9939_s6, %s9939_s6 }
  0x5f   :  { %v7898_v10 = vcombine.high %v101_v6, %v103_v7  ;;  %v105_v13 = vld [vmem:[#allocation5 + $0x100] sm:$0xff]  ;;  %887 = vmatprep.subr.bf16.mxu0 %v7894_v3  ;;  %v7900_v14 = vcombine.high %v102_v11, %v104_v12  ;;  %v106_v16 = vld [vmem:[#allocation5 + $0x108] sm:$0xff]  ;;  %973 = vmatprep.subr.bf16.mxu1 %v7896_v8  ;;  %v7897_v18 = vcombine.low %v101_v6, %v103_v7 }
  0x60   :  { %v107_v15 = vld [vmem:[#allocation5 + $0x140] sm:$0xff]  ;;  %v108_v17 = vld [vmem:[#allocation5 + $0x148] sm:$0xff]  ;;  %888 = vmatpush1.bf16.msra.mxu0 %v7893_v5  ;;  %974 = vmatpush1.bf16.msra.mxu1 %v7895_v9  ;;  %v7899_v19 = vcombine.low %v102_v11, %v104_v12  ;;  %p9946_p1 = por %p9945_p0, %p9944_p13 }
  0x61   :  { %889 = vmatprep.subr.bf16.mxu0 %v7898_v10  ;;  %v7902_v20 = vcombine.high %v105_v13, %v107_v15  ;;  %975 = vmatprep.subr.bf16.mxu1 %v7900_v14  ;;  %v7904_v21 = vcombine.high %v106_v16, %v108_v17  ;;  %v109_v22 = vld [vmem:[#allocation5 + $0x180] sm:$0xff]  ;;  %v110_v24 = vld [vmem:[#allocation5 + $0x188] sm:$0xff]  ;;  %v7901_v26 = vcombine.low %v105_v13, %v107_v15 }
  0x62   :  { %v111_v23 = vld [vmem:[#allocation5 + $0x1c0] sm:$0xff]  ;;  %v112_v25 = vld [vmem:[#allocation5 + $0x1c8] sm:$0xff]  ;;  %v7903_v27 = vcombine.low %v106_v16, %v108_v17  ;;  %p9947_p2 = pnand %p9946_p1, %p9940_p12 }
  0x63   :  { %v7906_v28 = vcombine.high %v109_v22, %v111_v23  ;;  %v7908_v29 = vcombine.high %v110_v24, %v112_v25  ;;  %v113_v30 = vld [vmem:[#allocation5 + $0x200] sm:$0xff]  ;;  %v114_v32 = vld [vmem:[#allocation5 + $0x208] sm:$0xff]  ;;  %v7905_v34 = vcombine.low %v109_v22, %v111_v23  ;;  %v7907_v35 = vcombine.low %v110_v24, %v112_v25 }
  0x64   :  { %890 = vmatpush1.bf16.msra.mxu0 %v7897_v18  ;;  %976 = vmatpush1.bf16.msra.mxu1 %v7899_v19  ;;  %v115_v31 = vld [vmem:[#allocation5 + $0x240] sm:$0xff]  ;;  %v116_v33 = vld [vmem:[#allocation5 + $0x248] sm:$0xff] }
  0x65   :  { %891 = vmatprep.subr.bf16.mxu0 %v7902_v20  ;;  %977 = vmatprep.subr.bf16.mxu1 %v7904_v21  ;;  %v7910_v36 = vcombine.high %v113_v30, %v115_v31  ;;  %v7912_v37 = vcombine.high %v114_v32, %v116_v33  ;;  %v117_v38 = vld [vmem:[#allocation5 + $0x280] sm:$0xff]  ;;  %v118_v40 = vld [vmem:[#allocation5 + $0x288] sm:$0xff]  ;;  %v7909_v42 = vcombine.low %v113_v30, %v115_v31 }
  0x66   :  { %v119_v39 = vld [vmem:[#allocation5 + $0x2c0] sm:$0xff]  ;;  %v120_v41 = vld [vmem:[#allocation5 + $0x2c8] sm:$0xff]  ;;  %v7911_v43 = vcombine.low %v114_v32, %v116_v33 }
  0x67   :  { %v7914_v44 = vcombine.high %v117_v38, %v119_v39  ;;  %v7916_v45 = vcombine.high %v118_v40, %v120_v41  ;;  %v121_v46 = vld [vmem:[#allocation5 + $0x300] sm:$0xff]  ;;  %v122_v48 = vld [vmem:[#allocation5 + $0x308] sm:$0xff]  ;;  %v7913_v50 = vcombine.low %v117_v38, %v119_v39  ;;  %v7915_v51 = vcombine.low %v118_v40, %v120_v41 }
  0x68   :  { %892 = vmatpush1.bf16.msra.mxu0 %v7901_v26  ;;  %978 = vmatpush1.bf16.msra.mxu1 %v7903_v27  ;;  %v123_v47 = vld [vmem:[#allocation5 + $0x340] sm:$0xff]  ;;  %v124_v49 = vld [vmem:[#allocation5 + $0x348] sm:$0xff] }
  0x69   :  { %893 = vmatprep.subr.bf16.mxu0 %v7906_v28  ;;  %979 = vmatprep.subr.bf16.mxu1 %v7908_v29  ;;  %v7918_v52 = vcombine.high %v121_v46, %v123_v47  ;;  %v86_v53 = vld [vmem:[#allocation2 + $0x8] sm:$0xff]  ;;  %v7920_v55 = vcombine.high %v122_v48, %v124_v49  ;;  %v125_v56 = vld [vmem:[#allocation5 + $0x380] sm:$0xff]  ;;  %v7917_v61 = vcombine.low %v121_v46, %v123_v47 }
  0x6a   :  { %v90_v54 = vld [vmem:[#allocation2 + $0x28] sm:$0xff]  ;;  %v127_v57 = vld [vmem:[#allocation5 + $0x3c0] sm:$0xff]  ;;  %v7919_v62 = vcombine.low %v122_v48, %v124_v49 }
  0x6b   :  { %v10074_v58 = vpack.c.bf16 %v90_v54, %v86_v53  ;;  %v126_v59 = vld [vmem:[#allocation5 + $0x388] sm:$0xff]  ;;  %v7922_v63 = vcombine.high %v125_v56, %v127_v57  ;;  %v129_v1 = vld [vmem:[#allocation5 + $0x400] sm:$0xff]  ;;  %v7921_v5 = vcombine.low %v125_v56, %v127_v57 }
  0x6c   :  { %894 = vmatpush1.bf16.msra.mxu0 %v7905_v34  ;;  %980 = vmatpush1.bf16.msra.mxu1 %v7907_v35  ;;  %v128_v60 = vld [vmem:[#allocation5 + $0x3c8] sm:$0xff]  ;;  %v131_v2 = vld [vmem:[#allocation5 + $0x440] sm:$0xff] }
  0x6d   :  { %895 = vmatprep.subr.bf16.mxu0 %v7910_v36  ;;  %981 = vmatprep.subr.bf16.mxu1 %v7912_v37  ;;  %v7924_v0 = vcombine.high %v126_v59, %v128_v60  ;;  %v130_v3 = vld [vmem:[#allocation5 + $0x408] sm:$0xff]  ;;  %v7923_v6 = vcombine.low %v126_v59, %v128_v60  ;;  %v7926_v7 = vcombine.high %v129_v1, %v131_v2  ;;  %v133_v9 = vld [vmem:[#allocation5 + $0x480] sm:$0xff] }
  0x6e   :  { %919 = vmatprep.mubr.bf16.mxu0 %v10074_v58  ;;  %1005 = vmatprep.mubr.bf16.mxu1 %v10074_v58  ;;  %v132_v4 = vld [vmem:[#allocation5 + $0x448] sm:$0xff]  ;;  %v135_v10 = vld [vmem:[#allocation5 + $0x4c0] sm:$0xff]  ;;  %v7925_v13 = vcombine.low %v129_v1, %v131_v2 }
  0x6f   :  { %v7928_v8 = vcombine.high %v130_v3, %v132_v4  ;;  %v134_v11 = vld [vmem:[#allocation5 + $0x488] sm:$0xff]  ;;  %v7927_v14 = vcombine.low %v130_v3, %v132_v4  ;;  %v7930_v15 = vcombine.high %v133_v9, %v135_v10  ;;  %v137_v17 = vld [vmem:[#allocation5 + $0x500] sm:$0xff]  ;;  %v7929_v21 = vcombine.low %v133_v9, %v135_v10 }
  0x70   :  { %896 = vmatpush1.bf16.msra.mxu0 %v7909_v42  ;;  %982 = vmatpush1.bf16.msra.mxu1 %v7911_v43  ;;  %v136_v12 = vld [vmem:[#allocation5 + $0x4c8] sm:$0xff]  ;;  %v139_v18 = vld [vmem:[#allocation5 + $0x540] sm:$0xff] }
  0x71   :  { %897 = vmatprep.subr.bf16.mxu0 %v7914_v44  ;;  %983 = vmatprep.subr.bf16.mxu1 %v7916_v45  ;;  %v7932_v16 = vcombine.high %v134_v11, %v136_v12  ;;  %v138_v19 = vld [vmem:[#allocation5 + $0x508] sm:$0xff]  ;;  %v7931_v22 = vcombine.low %v134_v11, %v136_v12  ;;  %v7934_v23 = vcombine.high %v137_v17, %v139_v18  ;;  %v141_v25 = vld [vmem:[#allocation5 + $0x580] sm:$0xff] }
  0x72   :  { %v140_v20 = vld [vmem:[#allocation5 + $0x548] sm:$0xff]  ;;  %v143_v26 = vld [vmem:[#allocation5 + $0x5c0] sm:$0xff]  ;;  %v7933_v29 = vcombine.low %v137_v17, %v139_v18  ;;  %v88_v17 = vld [vmem:[#allocation2 + $0x18] sm:$0xff] }
  0x73   :  { %v7936_v24 = vcombine.high %v138_v19, %v140_v20  ;;  %v142_v27 = vld [vmem:[#allocation5 + $0x588] sm:$0xff]  ;;  %v7935_v30 = vcombine.low %v138_v19, %v140_v20  ;;  %v7938_v31 = vcombine.high %v141_v25, %v143_v26  ;;  %v145_v33 = vld [vmem:[#allocation5 + $0x600] sm:$0xff]  ;;  %v7937_v37 = vcombine.low %v141_v25, %v143_v26  ;;  %v92_v18 = vld [vmem:[#allocation2 + $0x38] sm:$0xff] }
  0x74   :  { %898 = vmatpush1.bf16.msra.mxu0 %v7913_v50  ;;  %984 = vmatpush1.bf16.msra.mxu1 %v7915_v51  ;;  %v144_v28 = vld [vmem:[#allocation5 + $0x5c8] sm:$0xff]  ;;  %v147_v34 = vld [vmem:[#allocation5 + $0x640] sm:$0xff]  ;;  %v10080_v25 = vpack.c.bf16 %v92_v18, %v88_v17 }
  0x75   :  { %899 = vmatprep.subr.bf16.mxu0 %v7918_v52  ;;  %985 = vmatprep.subr.bf16.mxu1 %v7920_v55  ;;  %v7940_v32 = vcombine.high %v142_v27, %v144_v28  ;;  %v146_v35 = vld [vmem:[#allocation5 + $0x608] sm:$0xff]  ;;  %v7939_v38 = vcombine.low %v142_v27, %v144_v28  ;;  %v7942_v39 = vcombine.high %v145_v33, %v147_v34  ;;  %v149_v41 = vld [vmem:[#allocation5 + $0x680] sm:$0xff] }
  0x76   :  { %v148_v36 = vld [vmem:[#allocation5 + $0x648] sm:$0xff]  ;;  %v151_v42 = vld [vmem:[#allocation5 + $0x6c0] sm:$0xff]  ;;  %v7941_v45 = vcombine.low %v145_v33, %v147_v34 }
  0x77   :  { %v7944_v40 = vcombine.high %v146_v35, %v148_v36  ;;  %v150_v43 = vld [vmem:[#allocation5 + $0x688] sm:$0xff]  ;;  %v7943_v46 = vcombine.low %v146_v35, %v148_v36  ;;  %v7946_v47 = vcombine.high %v149_v41, %v151_v42  ;;  %v153_v49 = vld [vmem:[#allocation5 + $0x700] sm:$0xff]  ;;  %v7945_v53 = vcombine.low %v149_v41, %v151_v42 }
  0x78   :  { %900 = vmatpush1.bf16.msra.mxu0 %v7917_v61  ;;  %986 = vmatpush1.bf16.msra.mxu1 %v7919_v62  ;;  %v152_v44 = vld [vmem:[#allocation5 + $0x6c8] sm:$0xff]  ;;  %v155_v50 = vld [vmem:[#allocation5 + $0x740] sm:$0xff] }
  0x79   :  { %901 = vmatprep.subr.bf16.mxu0 %v7922_v63  ;;  %987 = vmatprep.subr.bf16.mxu1 %v7924_v0  ;;  %v7948_v48 = vcombine.high %v150_v43, %v152_v44  ;;  %v154_v51 = vld [vmem:[#allocation5 + $0x708] sm:$0xff]  ;;  %v7947_v54 = vcombine.low %v150_v43, %v152_v44  ;;  %v7950_v55 = vcombine.high %v153_v49, %v155_v50  ;;  %v157_v57 = vld [vmem:[#allocation5 + $0x780] sm:$0xff] }
  0x7a   :  { %v156_v52 = vld [vmem:[#allocation5 + $0x748] sm:$0xff]  ;;  %v159_v59 = vld [vmem:[#allocation5 + $0x7c0] sm:$0xff]  ;;  %v7949_v62 = vcombine.low %v153_v49, %v155_v50 }
  0x7b   :  { %v7952_v56 = vcombine.high %v154_v51, %v156_v52  ;;  %v158_v60 = vld [vmem:[#allocation5 + $0x788] sm:$0xff]  ;;  %v7951_v63 = vcombine.low %v154_v51, %v156_v52  ;;  %v7954_v0 = vcombine.high %v157_v57, %v159_v59  ;;  %v161_v2 = vld [vmem:[#allocation5 + $0x800] sm:$0xff] }
  0x7c   :  { %902 = vmatpush1.bf16.msra.mxu0 %v7921_v5  ;;  %988 = vmatpush1.bf16.msra.mxu1 %v7923_v6  ;;  %v160_v61 = vld [vmem:[#allocation5 + $0x7c8] sm:$0xff]  ;;  %v163_v3 = vld [vmem:[#allocation5 + $0x840] sm:$0xff]  ;;  %v7953_v6 = vcombine.low %v157_v57, %v159_v59 }
  0x7d   :  { %903 = vmatprep.subr.bf16.mxu0 %v7926_v7  ;;  %989 = vmatprep.subr.bf16.mxu1 %v7928_v8  ;;  %v7956_v1 = vcombine.high %v158_v60, %v160_v61  ;;  %v162_v4 = vld [vmem:[#allocation5 + $0x808] sm:$0xff]  ;;  %v85_v7 = vld [vmem:[#allocation2] sm:$0xff]  ;;  %v7955_v9 = vcombine.low %v158_v60, %v160_v61  ;;  %v7958_v10 = vcombine.high %v161_v2, %v163_v3 }
  0x7e   :  { %v164_v5 = vld [vmem:[#allocation5 + $0x848] sm:$0xff]  ;;  %v89_v8 = vld [vmem:[#allocation2 + $0x20] sm:$0xff]  ;;  %v7957_v19 = vcombine.low %v161_v2, %v163_v3 }
  0x7f   :  { %v7960_v11 = vcombine.high %v162_v4, %v164_v5  ;;  %v165_v12 = vld [vmem:[#allocation5 + $0x880] sm:$0xff]  ;;  %v7959_v20 = vcombine.low %v162_v4, %v164_v5  ;;  %v170_v26 = vld [vmem:[#allocation5 + $0x908] sm:$0xff] }
  0x80   :  { %904 = vmatpush1.bf16.msra.mxu0 %v7925_v13  ;;  %990 = vmatpush1.bf16.msra.mxu1 %v7927_v14  ;;  %v167_v13 = vld [vmem:[#allocation5 + $0x8c0] sm:$0xff]  ;;  %v166_v14 = vld [vmem:[#allocation5 + $0x888] sm:$0xff] }
  0x81   :  { %905 = vmatprep.subr.bf16.mxu0 %v7930_v15  ;;  %991 = vmatprep.subr.bf16.mxu1 %v7932_v16  ;;  %v10078_v15 = vpack.c.bf16 %v89_v8, %v85_v7  ;;  %v168_v16 = vld [vmem:[#allocation5 + $0x8c8] sm:$0xff]  ;;  %v7961_v28 = vcombine.low %v165_v12, %v167_v13  ;;  %v193_v8 = vld [vmem:[#allocation5 + $0xc00] sm:$0xff] }
  0x82   :  { %v172_v27 = vld [vmem:[#allocation5 + $0x948] sm:$0xff]  ;;  %v197_v17 = vld [vmem:[#allocation5 + $0xc80] sm:$0xff] }
  0x83   :  { %v174_v33 = vld [vmem:[#allocation5 + $0x988] sm:$0xff]  ;;  %v7968_v34 = vcombine.high %v170_v26, %v172_v27  ;;  %v199_v18 = vld [vmem:[#allocation5 + $0xcc0] sm:$0xff] }
  0x84   :  { %906 = vmatpush1.bf16.msra.mxu0 %v7929_v21  ;;  %992 = vmatpush1.bf16.msra.mxu1 %v7931_v22  ;;  %v7962_v21 = vcombine.high %v165_v12, %v167_v13  ;;  %v7964_v22 = vcombine.high %v166_v14, %v168_v16  ;;  %v176_v35 = vld [vmem:[#allocation5 + $0x9c8] sm:$0xff] }
  0x85   :  { %907 = vmatprep.subr.bf16.mxu0 %v7934_v23  ;;  %993 = vmatprep.subr.bf16.mxu1 %v7936_v24  ;;  %v169_v23 = vld [vmem:[#allocation5 + $0x900] sm:$0xff]  ;;  %v178_v41 = vld [vmem:[#allocation5 + $0xa08] sm:$0xff]  ;;  %v7972_v42 = vcombine.high %v174_v33, %v176_v35 }
  0x86   :  { %v171_v24 = vld [vmem:[#allocation5 + $0x940] sm:$0xff]  ;;  %v180_v43 = vld [vmem:[#allocation5 + $0xa48] sm:$0xff] }
  0x87   :  { %v7965_v36 = vcombine.low %v169_v23, %v171_v24  ;;  %v182_v49 = vld [vmem:[#allocation5 + $0xa88] sm:$0xff]  ;;  %v7976_v50 = vcombine.high %v178_v41, %v180_v43 }
  0x88   :  { %908 = vmatpush1.bf16.msra.mxu0 %v7933_v29  ;;  %994 = vmatpush1.bf16.msra.mxu1 %v7935_v30  ;;  %v7963_v29 = vcombine.low %v166_v14, %v168_v16  ;;  %v7966_v30 = vcombine.high %v169_v23, %v171_v24  ;;  %v184_v51 = vld [vmem:[#allocation5 + $0xac8] sm:$0xff]  ;;  %v7994_v24 = vcombine.high %v197_v17, %v199_v18 }
  0x89   :  { %909 = vmatprep.subr.bf16.mxu0 %v7938_v31  ;;  %995 = vmatprep.subr.bf16.mxu1 %v7940_v32  ;;  %v173_v31 = vld [vmem:[#allocation5 + $0x980] sm:$0xff]  ;;  %v186_v57 = vld [vmem:[#allocation5 + $0xb08] sm:$0xff]  ;;  %v7980_v59 = vcombine.high %v182_v49, %v184_v51 }
  0x8a   :  { %v175_v32 = vld [vmem:[#allocation5 + $0x9c0] sm:$0xff]  ;;  %v188_v60 = vld [vmem:[#allocation5 + $0xb48] sm:$0xff] }
  0x8b   :  { %v7969_v44 = vcombine.low %v173_v31, %v175_v32  ;;  %v190_v2 = vld [vmem:[#allocation5 + $0xb88] sm:$0xff]  ;;  %v7984_v3 = vcombine.high %v186_v57, %v188_v60 }
  0x8c   :  { %910 = vmatpush1.bf16.msra.mxu0 %v7937_v37  ;;  %996 = vmatpush1.bf16.msra.mxu1 %v7939_v38  ;;  %v7967_v37 = vcombine.low %v170_v26, %v172_v27  ;;  %v7970_v38 = vcombine.high %v173_v31, %v175_v32  ;;  %v192_v4 = vld [vmem:[#allocation5 + $0xbc8] sm:$0xff]  ;;  %v201_v26 = vld [vmem:[#allocation5 + $0xd00] sm:$0xff]  ;;  %v7993_v31 = vcombine.low %v197_v17, %v199_v18  ;;  %v91_v17 = vld [vmem:[#allocation2 + $0x30] sm:$0xff] }
  0x8d   :  { %911 = vmatprep.subr.bf16.mxu0 %v7942_v39  ;;  %997 = vmatprep.subr.bf16.mxu1 %v7944_v40  ;;  %v177_v39 = vld [vmem:[#allocation5 + $0xa00] sm:$0xff]  ;;  %v196_v12 = vld [vmem:[#allocation5 + $0xc48] sm:$0xff]  ;;  %v7987_v14 = vcombine.low %v190_v2, %v192_v4  ;;  %v1202_v18 = vld [vmem:[#allocation5 + $0x58] sm:$0xff] }
  0x8e   :  { %v179_v40 = vld [vmem:[#allocation5 + $0xa40] sm:$0xff] }
  0x8f   :  { %v7973_v52 = vcombine.low %v177_v39, %v179_v40  ;;  %v203_v27 = vld [vmem:[#allocation5 + $0xd40] sm:$0xff] }
  0x90   :  { %912 = vmatpush1.bf16.msra.mxu0 %v7941_v45  ;;  %998 = vmatpush1.bf16.msra.mxu1 %v7943_v46  ;;  %v7971_v45 = vcombine.low %v174_v33, %v176_v35  ;;  %v7974_v46 = vcombine.high %v177_v39, %v179_v40  ;;  %v7998_v33 = vcombine.high %v201_v26, %v203_v27  ;;  %v207_v35 = vld [vmem:[#allocation5 + $0xdc0] sm:$0xff] }
  0x91   :  { %913 = vmatprep.subr.bf16.mxu0 %v7946_v47  ;;  %999 = vmatprep.subr.bf16.mxu1 %v7948_v48  ;;  %v181_v47 = vld [vmem:[#allocation5 + $0xa80] sm:$0xff]  ;;  %v7997_v39 = vcombine.low %v201_v26, %v203_v27  ;;  %v1206_v27 = vld [vmem:[#allocation5 + $0xd8] sm:$0xff] }
  0x92   :  { %v183_v48 = vld [vmem:[#allocation5 + $0xac0] sm:$0xff] }
  0x93   :  { %v7977_v61 = vcombine.low %v181_v47, %v183_v48 }
  0x94   :  { %914 = vmatpush1.bf16.msra.mxu0 %v7945_v53  ;;  %1000 = vmatpush1.bf16.msra.mxu1 %v7947_v54  ;;  %v7975_v53 = vcombine.low %v178_v41, %v180_v43  ;;  %v7978_v54 = vcombine.high %v181_v47, %v183_v48  ;;  %v211_v43 = vld [vmem:[#allocation5 + $0xe40] sm:$0xff] }
  0x95   :  { %915 = vmatprep.subr.bf16.mxu0 %v7950_v55  ;;  %1001 = vmatprep.subr.bf16.mxu1 %v7952_v56  ;;  %v185_v55 = vld [vmem:[#allocation5 + $0xb00] sm:$0xff] }
  0x96   :  { %v187_v56 = vld [vmem:[#allocation5 + $0xb40] sm:$0xff] }
  0x97   :  { %v7981_v5 = vcombine.low %v185_v55, %v187_v56 }
  0x98   :  { %916 = vmatpush1.bf16.msra.mxu0 %v7949_v62  ;;  %1002 = vmatpush1.bf16.msra.mxu1 %v7951_v63  ;;  %v7979_v62 = vcombine.low %v182_v49, %v184_v51  ;;  %v7982_v63 = vcombine.high %v185_v55, %v187_v56  ;;  %v215_v51 = vld [vmem:[#allocation5 + $0xec0] sm:$0xff] }
  0x99   :  { %917 = vmatprep.subr.bf16.mxu0 %v7954_v0  ;;  %1003 = vmatprep.subr.bf16.mxu1 %v7956_v1  ;;  %v189_v0 = vld [vmem:[#allocation5 + $0xb80] sm:$0xff] }
  0x9a   :  { %v191_v1 = vld [vmem:[#allocation5 + $0xbc0] sm:$0xff] }
  0x9b   :  { %v7986_v7 = vcombine.high %v189_v0, %v191_v1  ;;  %v7985_v13 = vcombine.low %v189_v0, %v191_v1 }
  0x9c   :  { %918 = vmatpush1.bf16.msra.mxu0 %v7953_v6  ;;  %1004 = vmatpush1.bf16.msra.mxu1 %v7955_v9  ;;  %v7983_v6 = vcombine.low %v186_v57, %v188_v60  ;;  %v195_v9 = vld [vmem:[#allocation5 + $0xc40] sm:$0xff] }
  0x9d   :  { %930 = vmatprep.subr.bf16.mxu0 %v7958_v10  ;;  %1016 = vmatprep.subr.bf16.mxu1 %v7960_v11  ;;  %v194_v10 = vld [vmem:[#allocation5 + $0xc08] sm:$0xff]  ;;  %v7988_v11 = vcombine.high %v190_v2, %v192_v4  ;;  %v7990_v16 = vcombine.high %v193_v8, %v195_v9  ;;  %v219_v60 = vld [vmem:[#allocation5 + $0xf40] sm:$0xff] }
  0x9e   :  { %v7991_v23 = vcombine.low %v194_v10, %v196_v12  ;;  %v223_v4 = vld [vmem:[#allocation5 + $0xfc0] sm:$0xff] }
  0x9f   :  { %920 = vmatmul.mubr.bf16.vlgmr.msra.gmra.mrb[0].mxu0 %v10078_v15  ;;  %1006 = vmatmul.mubr.bf16.vlgmr.msra.gmra.mrb[0].mxu1 %v10078_v15 }
  0xa0   :  { %931 = vmatpush1.bf16.msra.mxu0 %v7957_v19  ;;  %1017 = vmatpush1.bf16.msra.mxu1 %v7959_v20  ;;  %v198_v19 = vld [vmem:[#allocation5 + $0xc88] sm:$0xff]  ;;  %v7992_v20 = vcombine.high %v194_v10, %v196_v12  ;;  %v1201_v12 = vld [vmem:[#allocation5 + $0x50] sm:$0xff] }
  0xa1   :  { %932 = vmatprep.subr.bf16.mxu0 %v7962_v21  ;;  %1018 = vmatprep.subr.bf16.mxu1 %v7964_v22  ;;  %v200_v21 = vld [vmem:[#allocation5 + $0xcc8] sm:$0xff]  ;;  %v7989_v22 = vcombine.low %v193_v8, %v195_v9 }
  0xa2   :  { %962 = vmatprep.mubr.bf16.mxu0 %v10080_v25  ;;  %1048 = vmatprep.mubr.bf16.mxu1 %v10080_v25  ;;  %v7995_v32 = vcombine.low %v198_v19, %v200_v21 }
  0xa4   :  { %933 = vmatpush1.bf16.msra.mxu0 %v7961_v28  ;;  %1019 = vmatpush1.bf16.msra.mxu1 %v7963_v29  ;;  %v202_v28 = vld [vmem:[#allocation5 + $0xd08] sm:$0xff]  ;;  %v7996_v29 = vcombine.high %v198_v19, %v200_v21 }
  0xa5   :  { %934 = vmatprep.subr.bf16.mxu0 %v7966_v30  ;;  %1020 = vmatprep.subr.bf16.mxu1 %v7968_v34  ;;  %v204_v30 = vld [vmem:[#allocation5 + $0xd48] sm:$0xff]  ;;  %v205_v34 = vld [vmem:[#allocation5 + $0xd80] sm:$0xff] }
  0xa6   :  { %v7999_v40 = vcombine.low %v202_v28, %v204_v30  ;;  %v8002_v41 = vcombine.high %v205_v34, %v207_v35  ;;  %v8001_v47 = vcombine.low %v205_v34, %v207_v35  ;;  %v1208_v34 = vld [vmem:[#allocation5 + $0x118] sm:$0xff] }
  0xa7   :  { %v1210_v35 = vld [vmem:[#allocation5 + $0x158] sm:$0xff] }
  0xa8   :  { %935 = vmatpush1.bf16.msra.mxu0 %v7965_v36  ;;  %1021 = vmatpush1.bf16.msra.mxu1 %v7967_v37  ;;  %v206_v36 = vld [vmem:[#allocation5 + $0xd88] sm:$0xff]  ;;  %v8000_v37 = vcombine.high %v202_v28, %v204_v30  ;;  %v1207_v30 = vld [vmem:[#allocation5 + $0x110] sm:$0xff] }
  0xa9   :  { %936 = vmatprep.subr.bf16.mxu0 %v7970_v38  ;;  %1022 = vmatprep.subr.bf16.mxu1 %v7972_v42  ;;  %v208_v38 = vld [vmem:[#allocation5 + $0xdc8] sm:$0xff]  ;;  %v209_v42 = vld [vmem:[#allocation5 + $0xe00] sm:$0xff] }
  0xaa   :  { %v8003_v48 = vcombine.low %v206_v36, %v208_v38  ;;  %v8006_v49 = vcombine.high %v209_v42, %v211_v43  ;;  %v8005_v55 = vcombine.low %v209_v42, %v211_v43  ;;  %v1212_v42 = vld [vmem:[#allocation5 + $0x198] sm:$0xff] }
  0xab   :  { %v1214_v43 = vld [vmem:[#allocation5 + $0x1d8] sm:$0xff] }
  0xac   :  { %937 = vmatpush1.bf16.msra.mxu0 %v7969_v44  ;;  %1023 = vmatpush1.bf16.msra.mxu1 %v7971_v45  ;;  %v210_v44 = vld [vmem:[#allocation5 + $0xe08] sm:$0xff]  ;;  %v8004_v45 = vcombine.high %v206_v36, %v208_v38  ;;  %v1211_v38 = vld [vmem:[#allocation5 + $0x190] sm:$0xff] }
  0xad   :  { %938 = vmatprep.subr.bf16.mxu0 %v7974_v46  ;;  %1024 = vmatprep.subr.bf16.mxu1 %v7976_v50  ;;  %v212_v46 = vld [vmem:[#allocation5 + $0xe48] sm:$0xff]  ;;  %v213_v50 = vld [vmem:[#allocation5 + $0xe80] sm:$0xff] }
  0xae   :  { %v8007_v56 = vcombine.low %v210_v44, %v212_v46  ;;  %v8010_v57 = vcombine.high %v213_v50, %v215_v51  ;;  %v8009_v0 = vcombine.low %v213_v50, %v215_v51  ;;  %v1216_v50 = vld [vmem:[#allocation5 + $0x218] sm:$0xff] }
  0xaf   :  { %v1218_v51 = vld [vmem:[#allocation5 + $0x258] sm:$0xff] }
  0xb0   :  { %939 = vmatpush1.bf16.msra.mxu0 %v7973_v52  ;;  %1025 = vmatpush1.bf16.msra.mxu1 %v7975_v53  ;;  %v214_v52 = vld [vmem:[#allocation5 + $0xe88] sm:$0xff]  ;;  %v8008_v53 = vcombine.high %v210_v44, %v212_v46  ;;  %v8032_v44 = vcombine.high %v1208_v34, %v1210_v35  ;;  %v1215_v46 = vld [vmem:[#allocation5 + $0x210] sm:$0xff] }
  0xb1   :  { %940 = vmatprep.subr.bf16.mxu0 %v7978_v54  ;;  %1026 = vmatprep.subr.bf16.mxu1 %v7980_v59  ;;  %v216_v54 = vld [vmem:[#allocation5 + $0xec8] sm:$0xff]  ;;  %v217_v59 = vld [vmem:[#allocation5 + $0xf00] sm:$0xff] }
  0xb2   :  { %v8011_v1 = vcombine.low %v214_v52, %v216_v54  ;;  %v8014_v2 = vcombine.high %v217_v59, %v219_v60  ;;  %v8013_v8 = vcombine.low %v217_v59, %v219_v60  ;;  %v1220_v59 = vld [vmem:[#allocation5 + $0x298] sm:$0xff] }
  0xb3   :  { %v1222_v60 = vld [vmem:[#allocation5 + $0x2d8] sm:$0xff] }
  0xb4   :  { %941 = vmatpush1.bf16.msra.mxu0 %v7977_v61  ;;  %1027 = vmatpush1.bf16.msra.mxu1 %v7979_v62  ;;  %v218_v61 = vld [vmem:[#allocation5 + $0xf08] sm:$0xff]  ;;  %v8012_v62 = vcombine.high %v214_v52, %v216_v54  ;;  %v8036_v52 = vcombine.high %v1212_v42, %v1214_v43  ;;  %v1219_v54 = vld [vmem:[#allocation5 + $0x290] sm:$0xff] }
  0xb5   :  { %942 = vmatprep.subr.bf16.mxu0 %v7982_v63  ;;  %1028 = vmatprep.subr.bf16.mxu1 %v7984_v3  ;;  %v220_v63 = vld [vmem:[#allocation5 + $0xf48] sm:$0xff]  ;;  %v221_v3 = vld [vmem:[#allocation5 + $0xf80] sm:$0xff] }
  0xb6   :  { %v8015_v9 = vcombine.low %v218_v61, %v220_v63  ;;  %v8018_v10 = vcombine.high %v221_v3, %v223_v4  ;;  %v8017_v19 = vcombine.low %v221_v3, %v223_v4  ;;  %v1224_v3 = vld [vmem:[#allocation5 + $0x318] sm:$0xff] }
  0xb7   :  { %v1226_v4 = vld [vmem:[#allocation5 + $0x358] sm:$0xff] }
  0xb8   :  { %943 = vmatpush1.bf16.msra.mxu0 %v7981_v5  ;;  %1029 = vmatpush1.bf16.msra.mxu1 %v7983_v6  ;;  %v222_v5 = vld [vmem:[#allocation5 + $0xf88] sm:$0xff]  ;;  %v8016_v6 = vcombine.high %v218_v61, %v220_v63  ;;  %v8040_v61 = vcombine.high %v1216_v50, %v1218_v51  ;;  %v1223_v63 = vld [vmem:[#allocation5 + $0x310] sm:$0xff] }
  0xb9   :  { %944 = vmatprep.subr.bf16.mxu0 %v7986_v7  ;;  %1030 = vmatprep.subr.bf16.mxu1 %v7988_v11  ;;  %v224_v7 = vld [vmem:[#allocation5 + $0xfc8] sm:$0xff]  ;;  %v1199_v11 = vld [vmem:[#allocation5 + $0x10] sm:$0xff] }
  0xba   :  { %v8022_v21 = vcombine.high %v1199_v11, %v1201_v12 }
  0xbc   :  { %945 = vmatpush1.bf16.msra.mxu0 %v7985_v13  ;;  %1031 = vmatpush1.bf16.msra.mxu1 %v7987_v14  ;;  %v1200_v13 = vld [vmem:[#allocation5 + $0x18] sm:$0xff]  ;;  %v8020_v14 = vcombine.high %v222_v5, %v224_v7 }
  0xbd   :  { %946 = vmatprep.subr.bf16.mxu0 %v7990_v16  ;;  %1032 = vmatprep.subr.bf16.mxu1 %v7992_v20  ;;  %v87_v16 = vld [vmem:[#allocation2 + $0x10] sm:$0xff]  ;;  %v8019_v20 = vcombine.low %v222_v5, %v224_v7  ;;  %v8024_v26 = vcombine.high %v1200_v13, %v1202_v18  ;;  %v8044_v5 = vcombine.high %v1220_v59, %v1222_v60 }
  0xbe   :  { %v10086_v28 = vpack.c.bf16 %v91_v17, %v87_v16  ;;  %v1227_v7 = vld [vmem:[#allocation5 + $0x390] sm:$0xff] }
  0xbf   :  { %v1231_v16 = vld [vmem:[#allocation5 + $0x410] sm:$0xff] }
  0xc0   :  { %947 = vmatpush1.bf16.msra.mxu0 %v7989_v22  ;;  %1033 = vmatpush1.bf16.msra.mxu1 %v7991_v23  ;;  %v1203_v22 = vld [vmem:[#allocation5 + $0x90] sm:$0xff] }
  0xc1   :  { %948 = vmatprep.subr.bf16.mxu0 %v7994_v24  ;;  %1034 = vmatprep.subr.bf16.mxu1 %v7996_v29  ;;  %v1205_v23 = vld [vmem:[#allocation5 + $0xd0] sm:$0xff]  ;;  %v1204_v24 = vld [vmem:[#allocation5 + $0x98] sm:$0xff]  ;;  %v8021_v29 = vcombine.low %v1199_v11, %v1201_v12 }
  0xc2   :  { %v8028_v36 = vcombine.high %v1204_v24, %v1206_v27  ;;  %v1228_v11 = vld [vmem:[#allocation5 + $0x398] sm:$0xff]  ;;  %v1233_v17 = vld [vmem:[#allocation5 + $0x450] sm:$0xff] }
  0xc3   :  { %v1230_v12 = vld [vmem:[#allocation5 + $0x3d8] sm:$0xff] }
  0xc4   :  { %949 = vmatpush1.bf16.msra.mxu0 %v7993_v31  ;;  %1035 = vmatpush1.bf16.msra.mxu1 %v7995_v32  ;;  %v1209_v31 = vld [vmem:[#allocation5 + $0x150] sm:$0xff]  ;;  %v8023_v32 = vcombine.low %v1200_v13, %v1202_v18  ;;  %v8048_v13 = vcombine.high %v1224_v3, %v1226_v4  ;;  %v8047_v18 = vcombine.low %v1224_v3, %v1226_v4 }
  0xc5   :  { %950 = vmatprep.subr.bf16.mxu0 %v7998_v33  ;;  %1036 = vmatprep.subr.bf16.mxu1 %v8000_v37  ;;  %v8026_v33 = vcombine.high %v1203_v22, %v1205_v23  ;;  %v8025_v37 = vcombine.low %v1203_v22, %v1205_v23  ;;  %v8052_v22 = vcombine.high %v1228_v11, %v1230_v12  ;;  %v1255_v3 = vld [vmem:[#allocation5 + $0x710] sm:$0xff] }
  0xc6   :  { %v1257_v4 = vld [vmem:[#allocation5 + $0x750] sm:$0xff] }
  0xc8   :  { %951 = vmatpush1.bf16.msra.mxu0 %v7997_v39  ;;  %1037 = vmatpush1.bf16.msra.mxu1 %v7999_v40  ;;  %v1213_v39 = vld [vmem:[#allocation5 + $0x1d0] sm:$0xff]  ;;  %v8027_v40 = vcombine.low %v1204_v24, %v1206_v27  ;;  %v8051_v27 = vcombine.low %v1228_v11, %v1230_v12 }
  0xc9   :  { %952 = vmatprep.subr.bf16.mxu0 %v8002_v41  ;;  %1038 = vmatprep.subr.bf16.mxu1 %v8004_v45  ;;  %v8030_v41 = vcombine.high %v1207_v30, %v1209_v31  ;;  %v8029_v45 = vcombine.low %v1207_v30, %v1209_v31  ;;  %v1235_v24 = vld [vmem:[#allocation5 + $0x490] sm:$0xff]  ;;  %v1236_v30 = vld [vmem:[#allocation5 + $0x498] sm:$0xff] }
  0xca   :  { %v1238_v31 = vld [vmem:[#allocation5 + $0x4d8] sm:$0xff]  ;;  %v1259_v11 = vld [vmem:[#allocation5 + $0x790] sm:$0xff] }
  0xcb   :  { %v1261_v12 = vld [vmem:[#allocation5 + $0x7d0] sm:$0xff] }
  0xcc   :  { %953 = vmatpush1.bf16.msra.mxu0 %v8001_v47  ;;  %1039 = vmatpush1.bf16.msra.mxu1 %v8003_v48  ;;  %v1217_v47 = vld [vmem:[#allocation5 + $0x250] sm:$0xff]  ;;  %v8031_v48 = vcombine.low %v1208_v34, %v1210_v35 }
  0xcd   :  { %954 = vmatprep.subr.bf16.mxu0 %v8006_v49  ;;  %1040 = vmatprep.subr.bf16.mxu1 %v8008_v53  ;;  %v8034_v49 = vcombine.high %v1211_v38, %v1213_v39  ;;  %v8033_v53 = vcombine.low %v1211_v38, %v1213_v39  ;;  %v1239_v34 = vld [vmem:[#allocation5 + $0x510] sm:$0xff]  ;;  %v1240_v38 = vld [vmem:[#allocation5 + $0x518] sm:$0xff] }
  0xce   :  { %v1241_v35 = vld [vmem:[#allocation5 + $0x550] sm:$0xff]  ;;  %v1242_v39 = vld [vmem:[#allocation5 + $0x558] sm:$0xff] }
  0xd0   :  { %955 = vmatpush1.bf16.msra.mxu0 %v8005_v55  ;;  %1041 = vmatpush1.bf16.msra.mxu1 %v8007_v56  ;;  %v1221_v55 = vld [vmem:[#allocation5 + $0x2d0] sm:$0xff]  ;;  %v8035_v56 = vcombine.low %v1212_v42, %v1214_v43 }
  0xd1   :  { %956 = vmatprep.subr.bf16.mxu0 %v8010_v57  ;;  %1042 = vmatprep.subr.bf16.mxu1 %v8012_v62  ;;  %v8038_v57 = vcombine.high %v1215_v46, %v1217_v47  ;;  %v8037_v62 = vcombine.low %v1215_v46, %v1217_v47  ;;  %v1243_v42 = vld [vmem:[#allocation5 + $0x590] sm:$0xff]  ;;  %v1244_v46 = vld [vmem:[#allocation5 + $0x598] sm:$0xff] }
  0xd2   :  { %v1245_v43 = vld [vmem:[#allocation5 + $0x5d0] sm:$0xff]  ;;  %v1246_v47 = vld [vmem:[#allocation5 + $0x5d8] sm:$0xff] }
  0xd4   :  { %957 = vmatpush1.bf16.msra.mxu0 %v8009_v0  ;;  %1043 = vmatpush1.bf16.msra.mxu1 %v8011_v1  ;;  %v1225_v0 = vld [vmem:[#allocation5 + $0x350] sm:$0xff]  ;;  %v8039_v1 = vcombine.low %v1216_v50, %v1218_v51 }
  0xd5   :  { %958 = vmatprep.subr.bf16.mxu0 %v8014_v2  ;;  %1044 = vmatprep.subr.bf16.mxu1 %v8016_v6  ;;  %v8042_v2 = vcombine.high %v1219_v54, %v1221_v55  ;;  %v8041_v6 = vcombine.low %v1219_v54, %v1221_v55  ;;  %v1247_v50 = vld [vmem:[#allocation5 + $0x610] sm:$0xff]  ;;  %v1248_v54 = vld [vmem:[#allocation5 + $0x618] sm:$0xff] }
  0xd6   :  { %v1249_v51 = vld [vmem:[#allocation5 + $0x650] sm:$0xff]  ;;  %v1250_v55 = vld [vmem:[#allocation5 + $0x658] sm:$0xff] }
  0xd8   :  { %959 = vmatpush1.bf16.msra.mxu0 %v8013_v8  ;;  %1045 = vmatpush1.bf16.msra.mxu1 %v8015_v9  ;;  %v1229_v8 = vld [vmem:[#allocation5 + $0x3d0] sm:$0xff]  ;;  %v8043_v9 = vcombine.low %v1220_v59, %v1222_v60 }
  0xd9   :  { %960 = vmatprep.subr.bf16.mxu0 %v8018_v10  ;;  %1046 = vmatprep.subr.bf16.mxu1 %v8020_v14  ;;  %v8046_v10 = vcombine.high %v1223_v63, %v1225_v0  ;;  %v8045_v14 = vcombine.low %v1223_v63, %v1225_v0  ;;  %v8049_v23 = vcombine.low %v1227_v7, %v1229_v8  ;;  %v1251_v59 = vld [vmem:[#allocation5 + $0x690] sm:$0xff]  ;;  %v1252_v63 = vld [vmem:[#allocation5 + $0x698] sm:$0xff] }
  0xda   :  { %v1253_v60 = vld [vmem:[#allocation5 + $0x6d0] sm:$0xff]  ;;  %v1254_v0 = vld [vmem:[#allocation5 + $0x6d8] sm:$0xff] }
  0xdc   :  { %961 = vmatpush1.bf16.msra.mxu0 %v8017_v19  ;;  %1047 = vmatpush1.bf16.msra.mxu1 %v8019_v20  ;;  %v8050_v19 = vcombine.high %v1227_v7, %v1229_v8  ;;  %v1232_v20 = vld [vmem:[#allocation5 + $0x418] sm:$0xff] }
  0xdd   :  { %1989 = vmatprep.subr.bf16.mxu0 %v8022_v21  ;;  %2075 = vmatprep.subr.bf16.mxu1 %v8024_v26  ;;  %v1234_v21 = vld [vmem:[#allocation5 + $0x458] sm:$0xff]  ;;  %v1237_v26 = vld [vmem:[#allocation5 + $0x4d0] sm:$0xff] }
  0xde   :  { %v1256_v7 = vld [vmem:[#allocation5 + $0x718] sm:$0xff] }
  0xdf   :  { %963 = vmatmul.mubr.bf16.vlgmr.msra.gmra.mrb[0].mxu0 %v10086_v28  ;;  %1049 = vmatmul.mubr.bf16.vlgmr.msra.gmra.mrb[0].mxu1 %v10086_v28  ;;  %v1258_v8 = vld [vmem:[#allocation5 + $0x758] sm:$0xff] }
  0xe0   :  { %1990 = vmatpush1.bf16.msra.mxu0 %v8021_v29  ;;  %2076 = vmatpush1.bf16.msra.mxu1 %v8023_v32  ;;  %v8054_v29 = vcombine.high %v1231_v16, %v1233_v17  ;;  %v8056_v32 = vcombine.high %v1232_v20, %v1234_v21 }
  0xe1   :  { %1991 = vmatprep.subr.bf16.mxu0 %v8026_v33  ;;  %2077 = vmatprep.subr.bf16.mxu1 %v8028_v36  ;;  %v8053_v33 = vcombine.low %v1231_v16, %v1233_v17  ;;  %v8055_v36 = vcombine.low %v1232_v20, %v1234_v21  ;;  %v1260_v16 = vld [vmem:[#allocation5 + $0x798] sm:$0xff]  ;;  %v1263_v20 = vld [vmem:[#allocation5 + $0x810] sm:$0xff] }
  0xe2   :  { %2021 = vmatprep.mubr.bf16.mxu0 %v10074_v58  ;;  %2107 = vmatprep.mubr.bf16.mxu1 %v10074_v58  ;;  %v1262_v17 = vld [vmem:[#allocation5 + $0x7d8] sm:$0xff]  ;;  %v1265_v21 = vld [vmem:[#allocation5 + $0x850] sm:$0xff] }
  0xe4   :  { %1992 = vmatpush1.bf16.msra.mxu0 %v8025_v37  ;;  %2078 = vmatpush1.bf16.msra.mxu1 %v8027_v40  ;;  %v8058_v37 = vcombine.high %v1235_v24, %v1237_v26  ;;  %v8060_v40 = vcombine.high %v1236_v30, %v1238_v31 }
  0xe5   :  { %1993 = vmatprep.subr.bf16.mxu0 %v8030_v41  ;;  %2079 = vmatprep.subr.bf16.mxu1 %v8032_v44  ;;  %v8057_v41 = vcombine.low %v1235_v24, %v1237_v26  ;;  %v8059_v44 = vcombine.low %v1236_v30, %v1238_v31  ;;  %v1264_v24 = vld [vmem:[#allocation5 + $0x818] sm:$0xff]  ;;  %v1267_v30 = vld [vmem:[#allocation5 + $0x890] sm:$0xff] }
  0xe6   :  { %v1266_v26 = vld [vmem:[#allocation5 + $0x858] sm:$0xff]  ;;  %v1269_v31 = vld [vmem:[#allocation5 + $0x8d0] sm:$0xff] }
  0xe8   :  { %1994 = vmatpush1.bf16.msra.mxu0 %v8029_v45  ;;  %2080 = vmatpush1.bf16.msra.mxu1 %v8031_v48  ;;  %v8062_v45 = vcombine.high %v1239_v34, %v1241_v35  ;;  %v8064_v48 = vcombine.high %v1240_v38, %v1242_v39 }
  0xe9   :  { %1995 = vmatprep.subr.bf16.mxu0 %v8034_v49  ;;  %2081 = vmatprep.subr.bf16.mxu1 %v8036_v52  ;;  %v8061_v49 = vcombine.low %v1239_v34, %v1241_v35  ;;  %v8063_v52 = vcombine.low %v1240_v38, %v1242_v39  ;;  %v1268_v34 = vld [vmem:[#allocation5 + $0x898] sm:$0xff]  ;;  %v1271_v38 = vld [vmem:[#allocation5 + $0x910] sm:$0xff] }
  0xea   :  { %v1270_v35 = vld [vmem:[#allocation5 + $0x8d8] sm:$0xff]  ;;  %v1273_v39 = vld [vmem:[#allocation5 + $0x950] sm:$0xff] }
  0xec   :  { %1996 = vmatpush1.bf16.msra.mxu0 %v8033_v53  ;;  %2082 = vmatpush1.bf16.msra.mxu1 %v8035_v56  ;;  %v8066_v53 = vcombine.high %v1243_v42, %v1245_v43  ;;  %v8068_v56 = vcombine.high %v1244_v46, %v1246_v47 }
  0xed   :  { %1997 = vmatprep.subr.bf16.mxu0 %v8038_v57  ;;  %2083 = vmatprep.subr.bf16.mxu1 %v8040_v61  ;;  %v8065_v57 = vcombine.low %v1243_v42, %v1245_v43  ;;  %v8067_v61 = vcombine.low %v1244_v46, %v1246_v47  ;;  %v1272_v42 = vld [vmem:[#allocation5 + $0x918] sm:$0xff]  ;;  %v1275_v46 = vld [vmem:[#allocation5 + $0x990] sm:$0xff] }
  0xee   :  { %v1274_v43 = vld [vmem:[#allocation5 + $0x958] sm:$0xff]  ;;  %v1277_v47 = vld [vmem:[#allocation5 + $0x9d0] sm:$0xff] }
  0xf0   :  { %1998 = vmatpush1.bf16.msra.mxu0 %v8037_v62  ;;  %2084 = vmatpush1.bf16.msra.mxu1 %v8039_v1  ;;  %v8070_v62 = vcombine.high %v1247_v50, %v1249_v51  ;;  %v8072_v1 = vcombine.high %v1248_v54, %v1250_v55 }
  0xf1   :  { %1999 = vmatprep.subr.bf16.mxu0 %v8042_v2  ;;  %2085 = vmatprep.subr.bf16.mxu1 %v8044_v5  ;;  %v8069_v2 = vcombine.low %v1247_v50, %v1249_v51  ;;  %v8071_v5 = vcombine.low %v1248_v54, %v1250_v55  ;;  %v1276_v50 = vld [vmem:[#allocation5 + $0x998] sm:$0xff]  ;;  %v1279_v54 = vld [vmem:[#allocation5 + $0xa10] sm:$0xff] }
  0xf2   :  { %v1278_v51 = vld [vmem:[#allocation5 + $0x9d8] sm:$0xff]  ;;  %v1281_v55 = vld [vmem:[#allocation5 + $0xa50] sm:$0xff] }
  0xf4   :  { %2000 = vmatpush1.bf16.msra.mxu0 %v8041_v6  ;;  %2086 = vmatpush1.bf16.msra.mxu1 %v8043_v9  ;;  %v8074_v6 = vcombine.high %v1251_v59, %v1253_v60  ;;  %v8076_v9 = vcombine.high %v1252_v63, %v1254_v0 }
  0xf5   :  { %2001 = vmatprep.subr.bf16.mxu0 %v8046_v10  ;;  %2087 = vmatprep.subr.bf16.mxu1 %v8048_v13  ;;  %v8073_v10 = vcombine.low %v1251_v59, %v1253_v60  ;;  %v8075_v13 = vcombine.low %v1252_v63, %v1254_v0  ;;  %v1280_v59 = vld [vmem:[#allocation5 + $0xa18] sm:$0xff]  ;;  %v1283_v63 = vld [vmem:[#allocation5 + $0xa90] sm:$0xff] }
  0xf6   :  { %v1282_v60 = vld [vmem:[#allocation5 + $0xa58] sm:$0xff]  ;;  %v1285_v0 = vld [vmem:[#allocation5 + $0xad0] sm:$0xff] }
  0xf8   :  { %2002 = vmatpush1.bf16.msra.mxu0 %v8045_v14  ;;  %2088 = vmatpush1.bf16.msra.mxu1 %v8047_v18  ;;  %v8078_v14 = vcombine.high %v1255_v3, %v1257_v4  ;;  %v8080_v18 = vcombine.high %v1256_v7, %v1258_v8 }
  0xf9   :  { %2003 = vmatprep.subr.bf16.mxu0 %v8050_v19  ;;  %2089 = vmatprep.subr.bf16.mxu1 %v8052_v22  ;;  %v8077_v19 = vcombine.low %v1255_v3, %v1257_v4  ;;  %v8079_v22 = vcombine.low %v1256_v7, %v1258_v8  ;;  %v1284_v3 = vld [vmem:[#allocation5 + $0xa98] sm:$0xff]  ;;  %v1287_v7 = vld [vmem:[#allocation5 + $0xb10] sm:$0xff] }
  0xfa   :  { %v1286_v4 = vld [vmem:[#allocation5 + $0xad8] sm:$0xff]  ;;  %v1289_v8 = vld [vmem:[#allocation5 + $0xb50] sm:$0xff] }
  0xfc   :  { %2004 = vmatpush1.bf16.msra.mxu0 %v8049_v23  ;;  %2090 = vmatpush1.bf16.msra.mxu1 %v8051_v27  ;;  %v8082_v23 = vcombine.high %v1259_v11, %v1261_v12  ;;  %v8084_v27 = vcombine.high %v1260_v16, %v1262_v17 }
  0xfd   :  { %2005 = vmatprep.subr.bf16.mxu0 %v8054_v29  ;;  %2091 = vmatprep.subr.bf16.mxu1 %v8056_v32  ;;  %v8081_v29 = vcombine.low %v1259_v11, %v1261_v12  ;;  %v8083_v32 = vcombine.low %v1260_v16, %v1262_v17  ;;  %v1288_v11 = vld [vmem:[#allocation5 + $0xb18] sm:$0xff]  ;;  %v1291_v16 = vld [vmem:[#allocation5 + $0xb90] sm:$0xff] }
  0xfe   :  { %v1290_v12 = vld [vmem:[#allocation5 + $0xb58] sm:$0xff]  ;;  %v1293_v17 = vld [vmem:[#allocation5 + $0xbd0] sm:$0xff] }
 0x100   :  { %2006 = vmatpush1.bf16.msra.mxu0 %v8053_v33  ;;  %2092 = vmatpush1.bf16.msra.mxu1 %v8055_v36  ;;  %v8086_v33 = vcombine.high %v1263_v20, %v1265_v21  ;;  %v8088_v36 = vcombine.high %v1264_v24, %v1266_v26 }
 0x101   :  { %2007 = vmatprep.subr.bf16.mxu0 %v8058_v37  ;;  %2093 = vmatprep.subr.bf16.mxu1 %v8060_v40  ;;  %v8085_v37 = vcombine.low %v1263_v20, %v1265_v21  ;;  %v8087_v40 = vcombine.low %v1264_v24, %v1266_v26  ;;  %v1292_v20 = vld [vmem:[#allocation5 + $0xb98] sm:$0xff]  ;;  %v1295_v24 = vld [vmem:[#allocation5 + $0xc10] sm:$0xff] }
 0x102   :  { %v1294_v21 = vld [vmem:[#allocation5 + $0xbd8] sm:$0xff]  ;;  %v1297_v26 = vld [vmem:[#allocation5 + $0xc50] sm:$0xff] }
 0x104   :  { %2008 = vmatpush1.bf16.msra.mxu0 %v8057_v41  ;;  %2094 = vmatpush1.bf16.msra.mxu1 %v8059_v44  ;;  %v8090_v41 = vcombine.high %v1267_v30, %v1269_v31  ;;  %v8092_v44 = vcombine.high %v1268_v34, %v1270_v35 }
 0x105   :  { %2009 = vmatprep.subr.bf16.mxu0 %v8062_v45  ;;  %2095 = vmatprep.subr.bf16.mxu1 %v8064_v48  ;;  %v8089_v45 = vcombine.low %v1267_v30, %v1269_v31  ;;  %v8091_v48 = vcombine.low %v1268_v34, %v1270_v35  ;;  %v1296_v30 = vld [vmem:[#allocation5 + $0xc18] sm:$0xff]  ;;  %v1299_v34 = vld [vmem:[#allocation5 + $0xc90] sm:$0xff] }
 0x106   :  { %v1298_v31 = vld [vmem:[#allocation5 + $0xc58] sm:$0xff]  ;;  %v1301_v35 = vld [vmem:[#allocation5 + $0xcd0] sm:$0xff] }
 0x108   :  { %2010 = vmatpush1.bf16.msra.mxu0 %v8061_v49  ;;  %2096 = vmatpush1.bf16.msra.mxu1 %v8063_v52  ;;  %v8094_v49 = vcombine.high %v1271_v38, %v1273_v39  ;;  %v8096_v52 = vcombine.high %v1272_v42, %v1274_v43 }
 0x109   :  { %2011 = vmatprep.subr.bf16.mxu0 %v8066_v53  ;;  %2097 = vmatprep.subr.bf16.mxu1 %v8068_v56  ;;  %v8093_v53 = vcombine.low %v1271_v38, %v1273_v39  ;;  %v8095_v56 = vcombine.low %v1272_v42, %v1274_v43  ;;  %v8120_v38 = vcombine.high %v1296_v30, %v1298_v31  ;;  %v1300_v39 = vld [vmem:[#allocation5 + $0xc98] sm:$0xff] }
 0x10a   :  { %v8119_v42 = vcombine.low %v1296_v30, %v1298_v31  ;;  %v8122_v43 = vcombine.high %v1299_v34, %v1301_v35 }
 0x10c   :  { %2012 = vmatpush1.bf16.msra.mxu0 %v8065_v57  ;;  %2098 = vmatpush1.bf16.msra.mxu1 %v8067_v61  ;;  %v8098_v57 = vcombine.high %v1275_v46, %v1277_v47  ;;  %v8100_v61 = vcombine.high %v1276_v50, %v1278_v51 }
 0x10d   :  { %2013 = vmatprep.subr.bf16.mxu0 %v8070_v62  ;;  %2099 = vmatprep.subr.bf16.mxu1 %v8072_v1  ;;  %v8097_v62 = vcombine.low %v1275_v46, %v1277_v47  ;;  %v8099_v1 = vcombine.low %v1276_v50, %v1278_v51  ;;  %v1305_v46 = vld [vmem:[#allocation5 + $0xd50] sm:$0xff]  ;;  %v1304_v47 = vld [vmem:[#allocation5 + $0xd18] sm:$0xff] }
 0x110   :  { %2014 = vmatpush1.bf16.msra.mxu0 %v8069_v2  ;;  %2100 = vmatpush1.bf16.msra.mxu1 %v8071_v5  ;;  %v8102_v2 = vcombine.high %v1279_v54, %v1281_v55  ;;  %v8104_v5 = vcombine.high %v1280_v59, %v1282_v60 }
 0x111   :  { %2015 = vmatprep.subr.bf16.mxu0 %v8074_v6  ;;  %2101 = vmatprep.subr.bf16.mxu1 %v8076_v9  ;;  %v8101_v6 = vcombine.low %v1279_v54, %v1281_v55  ;;  %v8103_v9 = vcombine.low %v1280_v59, %v1282_v60  ;;  %v1309_v54 = vld [vmem:[#allocation5 + $0xdd0] sm:$0xff]  ;;  %v1308_v55 = vld [vmem:[#allocation5 + $0xd98] sm:$0xff] }
 0x114   :  { %2016 = vmatpush1.bf16.msra.mxu0 %v8073_v10  ;;  %2102 = vmatpush1.bf16.msra.mxu1 %v8075_v13  ;;  %v8106_v10 = vcombine.high %v1283_v63, %v1285_v0  ;;  %v8108_v13 = vcombine.high %v1284_v3, %v1286_v4 }
 0x115   :  { %2017 = vmatprep.subr.bf16.mxu0 %v8078_v14  ;;  %2103 = vmatprep.subr.bf16.mxu1 %v8080_v18  ;;  %v8105_v14 = vcombine.low %v1283_v63, %v1285_v0  ;;  %v8107_v18 = vcombine.low %v1284_v3, %v1286_v4  ;;  %v1313_v63 = vld [vmem:[#allocation5 + $0xe50] sm:$0xff]  ;;  %v1312_v0 = vld [vmem:[#allocation5 + $0xe18] sm:$0xff] }
 0x118   :  { %2018 = vmatpush1.bf16.msra.mxu0 %v8077_v19  ;;  %2104 = vmatpush1.bf16.msra.mxu1 %v8079_v22  ;;  %v8110_v19 = vcombine.high %v1287_v7, %v1289_v8  ;;  %v8112_v22 = vcombine.high %v1288_v11, %v1290_v12 }
 0x119   :  { %2019 = vmatprep.subr.bf16.mxu0 %v8082_v23  ;;  %2105 = vmatprep.subr.bf16.mxu1 %v8084_v27  ;;  %v8109_v23 = vcombine.low %v1287_v7, %v1289_v8  ;;  %v8111_v27 = vcombine.low %v1288_v11, %v1290_v12  ;;  %v1317_v7 = vld [vmem:[#allocation5 + $0xed0] sm:$0xff]  ;;  %v1316_v8 = vld [vmem:[#allocation5 + $0xe98] sm:$0xff] }
 0x11a   :  { %v1319_v11 = vld [vmem:[#allocation5 + $0xf10] sm:$0xff] }
 0x11c   :  { %2020 = vmatpush1.bf16.msra.mxu0 %v8081_v29  ;;  %2106 = vmatpush1.bf16.msra.mxu1 %v8083_v32  ;;  %v8114_v29 = vcombine.high %v1291_v16, %v1293_v17  ;;  %v8116_v32 = vcombine.high %v1292_v20, %v1294_v21 }
 0x11d   :  { %2032 = vmatprep.subr.bf16.mxu0 %v8086_v33  ;;  %2118 = vmatprep.subr.bf16.mxu1 %v8088_v36  ;;  %v8113_v33 = vcombine.low %v1291_v16, %v1293_v17  ;;  %v8115_v36 = vcombine.low %v1292_v20, %v1294_v21  ;;  %v1320_v16 = vld [vmem:[#allocation5 + $0xf18] sm:$0xff]  ;;  %v1323_v20 = vld [vmem:[#allocation5 + $0xf90] sm:$0xff] }
 0x11e   :  { %v1322_v17 = vld [vmem:[#allocation5 + $0xf58] sm:$0xff]  ;;  %v1325_v21 = vld [vmem:[#allocation5 + $0xfd0] sm:$0xff] }
 0x11f   :  { %2022 = vmatmul.mubr.bf16.vlgmr.msra.gmra.mrb[4].mxu0 %v10078_v15  ;;  %2108 = vmatmul.mubr.bf16.vlgmr.msra.gmra.mrb[4].mxu1 %v10078_v15  ;;  %v8143_v30 = vcombine.low %v1320_v16, %v1322_v17  ;;  %v8146_v31 = vcombine.high %v1323_v20, %v1325_v21 }
 0x120   :  { %2033 = vmatpush1.bf16.msra.mxu0 %v8085_v37  ;;  %2119 = vmatpush1.bf16.msra.mxu1 %v8087_v40  ;;  %v8118_v37 = vcombine.high %v1295_v24, %v1297_v26  ;;  %v1302_v40 = vld [vmem:[#allocation5 + $0xcd8] sm:$0xff] }
 0x121   :  { %2034 = vmatprep.subr.bf16.mxu0 %v8090_v41  ;;  %2120 = vmatprep.subr.bf16.mxu1 %v8092_v44  ;;  %v8117_v41 = vcombine.low %v1295_v24, %v1297_v26  ;;  %v8124_v44 = vcombine.high %v1300_v39, %v1302_v40  ;;  %v8123_v50 = vcombine.low %v1300_v39, %v1302_v40  ;;  %v1324_v24 = vld [vmem:[#allocation5 + $0xf98] sm:$0xff]  ;;  %v9057_v39 = vld [vmem:[#allocation8 + $0x424] ss:$16 sps:$4 sm:$0xff]  }
 0x122   :  { %2064 = vmatprep.mubr.bf16.mxu0 %v10080_v25  ;;  %2150 = vmatprep.mubr.bf16.mxu1 %v10080_v25  ;;  %v1326_v26 = vld [vmem:[#allocation5 + $0xfd8] sm:$0xff] }
 0x123   :  { %v9060_v40 = vld [vmem:[#allocation8 + $0x42c] ss:$16 sps:$4 sm:$0xff]  }
 0x124   :  { %2035 = vmatpush1.bf16.msra.mxu0 %v8089_v45  ;;  %2121 = vmatpush1.bf16.msra.mxu1 %v8091_v48  ;;  %v1303_v45 = vld [vmem:[#allocation5 + $0xd10] sm:$0xff]  ;;  %v1306_v48 = vld [vmem:[#allocation5 + $0xd58] sm:$0xff] }
 0x125   :  { %2036 = vmatprep.subr.bf16.mxu0 %v8094_v49  ;;  %2122 = vmatprep.subr.bf16.mxu1 %v8096_v52  ;;  %v8121_v49 = vcombine.low %v1299_v34, %v1301_v35  ;;  %v8126_v51 = vcombine.high %v1303_v45, %v1305_v46  ;;  %v8128_v52 = vcombine.high %v1304_v47, %v1306_v48  ;;  %v9054_v35 = vld [vmem:[#allocation8 + $0x40c] ss:$16 sps:$4 sm:$0xff]  }
 0x126   :  { %v8127_v59 = vcombine.low %v1304_v47, %v1306_v48  ;;  %v8145_v34 = vcombine.low %v1323_v20, %v1325_v21  ;;  %v9069_v47 = vld [vmem:[#allocation8 + $0x464] ss:$16 sps:$4 sm:$0xff]   ;;  %v9072_v48 = vld [vmem:[#allocation8 + $0x46c] ss:$16 sps:$4 sm:$0xff]   ;;  %v9118_v20 = vld [vmem:[#allocation8 + $0x568] ss:$16 sps:$4 sm:$0xff]  }
 0x127   :  { %v9123_v21 = vld [vmem:[#allocation8 + $0x584] ss:$16 sps:$4 sm:$0xff]  }
 0x128   :  { %2037 = vmatpush1.bf16.msra.mxu0 %v8093_v53  ;;  %2123 = vmatpush1.bf16.msra.mxu1 %v8095_v56  ;;  %v1307_v53 = vld [vmem:[#allocation5 + $0xd90] sm:$0xff]  ;;  %v1310_v56 = vld [vmem:[#allocation5 + $0xdd8] sm:$0xff] }
 0x129   :  { %2038 = vmatprep.subr.bf16.mxu0 %v8098_v57  ;;  %2124 = vmatprep.subr.bf16.mxu1 %v8100_v61  ;;  %v8125_v57 = vcombine.low %v1303_v45, %v1305_v46  ;;  %v8130_v60 = vcombine.high %v1307_v53, %v1309_v54  ;;  %v8132_v61 = vcombine.high %v1308_v55, %v1310_v56  ;;  %v9061_v45 = vld [vmem:[#allocation8 + $0x440] ss:$16 sps:$4 sm:$0xff]   ;;  %v9064_v46 = vld [vmem:[#allocation8 + $0x448] ss:$16 sps:$4 sm:$0xff]  }
 0x12a   :  { %v8131_v3 = vcombine.low %v1308_v55, %v1310_v56  ;;  %v9081_v55 = vld [vmem:[#allocation8 + $0x4a4] ss:$16 sps:$4 sm:$0xff]   ;;  %v9084_v56 = vld [vmem:[#allocation8 + $0x4ac] ss:$16 sps:$4 sm:$0xff]  }
 0x12c   :  { %2039 = vmatpush1.bf16.msra.mxu0 %v8097_v62  ;;  %2125 = vmatpush1.bf16.msra.mxu1 %v8099_v1  ;;  %v1311_v62 = vld [vmem:[#allocation5 + $0xe10] sm:$0xff]  ;;  %v1314_v1 = vld [vmem:[#allocation5 + $0xe58] sm:$0xff] }
 0x12d   :  { %2040 = vmatprep.subr.bf16.mxu0 %v8102_v2  ;;  %2126 = vmatprep.subr.bf16.mxu1 %v8104_v5  ;;  %v8129_v2 = vcombine.low %v1307_v53, %v1309_v54  ;;  %v8134_v4 = vcombine.high %v1311_v62, %v1313_v63  ;;  %v8136_v5 = vcombine.high %v1312_v0, %v1314_v1  ;;  %v9073_v53 = vld [vmem:[#allocation8 + $0x480] ss:$16 sps:$4 sm:$0xff]   ;;  %v9076_v54 = vld [vmem:[#allocation8 + $0x488] ss:$16 sps:$4 sm:$0xff]  }
 0x12e   :  { %v8135_v12 = vcombine.low %v1312_v0, %v1314_v1  ;;  %v9093_v0 = vld [vmem:[#allocation8 + $0x4e4] ss:$16 sps:$4 sm:$0xff]   ;;  %v9096_v1 = vld [vmem:[#allocation8 + $0x4ec] ss:$16 sps:$4 sm:$0xff]  }
 0x130   :  { %2041 = vmatpush1.bf16.msra.mxu0 %v8101_v6  ;;  %2127 = vmatpush1.bf16.msra.mxu1 %v8103_v9  ;;  %v1315_v6 = vld [vmem:[#allocation5 + $0xe90] sm:$0xff]  ;;  %v1318_v9 = vld [vmem:[#allocation5 + $0xed8] sm:$0xff] }
 0x131   :  { %2042 = vmatprep.subr.bf16.mxu0 %v8106_v10  ;;  %2128 = vmatprep.subr.bf16.mxu1 %v8108_v13  ;;  %v8133_v10 = vcombine.low %v1311_v62, %v1313_v63  ;;  %v8138_v13 = vcombine.high %v1315_v6, %v1317_v7  ;;  %v9085_v62 = vld [vmem:[#allocation8 + $0x4c0] ss:$16 sps:$4 sm:$0xff]   ;;  %v9088_v63 = vld [vmem:[#allocation8 + $0x4c8] ss:$16 sps:$4 sm:$0xff]  }
 0x134   :  { %2043 = vmatpush1.bf16.msra.mxu0 %v8105_v14  ;;  %2129 = vmatpush1.bf16.msra.mxu1 %v8107_v18  ;;  %v1321_v14 = vld [vmem:[#allocation5 + $0xf50] sm:$0xff]  ;;  %v8140_v18 = vcombine.high %v1316_v8, %v1318_v9 }
 0x135   :  { %2044 = vmatprep.subr.bf16.mxu0 %v8110_v19  ;;  %2130 = vmatprep.subr.bf16.mxu1 %v8112_v22  ;;  %v8137_v19 = vcombine.low %v1315_v6, %v1317_v7  ;;  %v8139_v22 = vcombine.low %v1316_v8, %v1318_v9  ;;  %v9097_v6 = vld [vmem:[#allocation8 + $0x500] ss:$16 sps:$4 sm:$0xff]   ;;  %v9100_v7 = vld [vmem:[#allocation8 + $0x508] ss:$16 sps:$4 sm:$0xff]   ;;  %v9105_v8 = vld [vmem:[#allocation8 + $0x524] ss:$16 sps:$4 sm:$0xff]  }
 0x136   :  { %v9108_v9 = vld [vmem:[#allocation8 + $0x52c] ss:$16 sps:$4 sm:$0xff]  }
 0x138   :  { %2045 = vmatpush1.bf16.msra.mxu0 %v8109_v23  ;;  %2131 = vmatpush1.bf16.msra.mxu1 %v8111_v27  ;;  %v8142_v23 = vcombine.high %v1319_v11, %v1321_v14  ;;  %v8144_v27 = vcombine.high %v1320_v16, %v1322_v17  ;;  %v9112_v16 = vld [vmem:[#allocation8 + $0x548] ss:$16 sps:$4 sm:$0xff]   ;;  %v9117_v17 = vld [vmem:[#allocation8 + $0x564] ss:$16 sps:$4 sm:$0xff]  }
 0x139   :  { %2046 = vmatprep.subr.bf16.mxu0 %v8114_v29  ;;  %2132 = vmatprep.subr.bf16.mxu1 %v8116_v32  ;;  %v8141_v29 = vcombine.low %v1319_v11, %v1321_v14  ;;  %v8148_v32 = vcombine.high %v1324_v24, %v1326_v26  ;;  %v9106_v11 = vld [vmem:[#allocation8 + $0x528] ss:$16 sps:$4 sm:$0xff]   ;;  %v9109_v14 = vld [vmem:[#allocation8 + $0x540] ss:$16 sps:$4 sm:$0xff]  }
 0x13c   :  { %2047 = vmatpush1.bf16.msra.mxu0 %v8113_v33  ;;  %2133 = vmatpush1.bf16.msra.mxu1 %v8115_v36  ;;  %v9051_v33 = vld [vmem:[#allocation8 + $0x404] ss:$16 sps:$4 sm:$0xff]   ;;  %v8147_v36 = vcombine.low %v1324_v24, %v1326_v26  ;;  %v9124_v24 = vld [vmem:[#allocation8 + $0x588] ss:$16 sps:$4 sm:$0xff]  }
 0x13d   :  { %2048 = vmatprep.subr.bf16.mxu0 %v8118_v37  ;;  %2134 = vmatprep.subr.bf16.mxu1 %v8120_v38  ;;  %v9049_v37 = vld [vmem:[#allocation8 + $0x400] ss:$16 sps:$4 sm:$0xff]   ;;  %v9052_v38 = vld [vmem:[#allocation8 + $0x408] ss:$16 sps:$4 sm:$0xff]   ;;  %v9129_v26 = vld [vmem:[#allocation8 + $0x5a4] ss:$16 sps:$4 sm:$0xff]  }
 0x140   :  { %2049 = vmatpush1.bf16.msra.mxu0 %v8117_v41  ;;  %2135 = vmatpush1.bf16.msra.mxu1 %v8119_v42  ;;  %v9055_v41 = vld [vmem:[#allocation8 + $0x420] ss:$16 sps:$4 sm:$0xff]   ;;  %v9058_v42 = vld [vmem:[#allocation8 + $0x428] ss:$16 sps:$4 sm:$0xff]  }
 0x141   :  { %2050 = vmatprep.subr.bf16.mxu0 %v8122_v43  ;;  %2136 = vmatprep.subr.bf16.mxu1 %v8124_v44  ;;  %v9063_v43 = vld [vmem:[#allocation8 + $0x444] ss:$16 sps:$4 sm:$0xff]   ;;  %v9066_v44 = vld [vmem:[#allocation8 + $0x44c] ss:$16 sps:$4 sm:$0xff]  }
 0x144   :  { %2051 = vmatpush1.bf16.msra.mxu0 %v8121_v49  ;;  %2137 = vmatpush1.bf16.msra.mxu1 %v8123_v50  ;;  %v9067_v49 = vld [vmem:[#allocation8 + $0x460] ss:$16 sps:$4 sm:$0xff]   ;;  %v9070_v50 = vld [vmem:[#allocation8 + $0x468] ss:$16 sps:$4 sm:$0xff]  }
 0x145   :  { %2052 = vmatprep.subr.bf16.mxu0 %v8126_v51  ;;  %2138 = vmatprep.subr.bf16.mxu1 %v8128_v52  ;;  %v9075_v51 = vld [vmem:[#allocation8 + $0x484] ss:$16 sps:$4 sm:$0xff]   ;;  %v9078_v52 = vld [vmem:[#allocation8 + $0x48c] ss:$16 sps:$4 sm:$0xff]  }
 0x148   :  { %2053 = vmatpush1.bf16.msra.mxu0 %v8125_v57  ;;  %2139 = vmatpush1.bf16.msra.mxu1 %v8127_v59  ;;  %v9079_v57 = vld [vmem:[#allocation8 + $0x4a0] ss:$16 sps:$4 sm:$0xff]   ;;  %v9082_v59 = vld [vmem:[#allocation8 + $0x4a8] ss:$16 sps:$4 sm:$0xff]  }
 0x149   :  { %2054 = vmatprep.subr.bf16.mxu0 %v8130_v60  ;;  %2140 = vmatprep.subr.bf16.mxu1 %v8132_v61  ;;  %v9087_v60 = vld [vmem:[#allocation8 + $0x4c4] ss:$16 sps:$4 sm:$0xff]   ;;  %v9090_v61 = vld [vmem:[#allocation8 + $0x4cc] ss:$16 sps:$4 sm:$0xff]  }
 0x14c   :  { %2055 = vmatpush1.bf16.msra.mxu0 %v8129_v2  ;;  %2141 = vmatpush1.bf16.msra.mxu1 %v8131_v3  ;;  %v9091_v2 = vld [vmem:[#allocation8 + $0x4e0] ss:$16 sps:$4 sm:$0xff]   ;;  %v9094_v3 = vld [vmem:[#allocation8 + $0x4e8] ss:$16 sps:$4 sm:$0xff]  }
 0x14d   :  { %2056 = vmatprep.subr.bf16.mxu0 %v8134_v4  ;;  %2142 = vmatprep.subr.bf16.mxu1 %v8136_v5  ;;  %v9099_v4 = vld [vmem:[#allocation8 + $0x504] ss:$16 sps:$4 sm:$0xff]   ;;  %v9102_v5 = vld [vmem:[#allocation8 + $0x50c] ss:$16 sps:$4 sm:$0xff]  }
 0x150   :  { %2057 = vmatpush1.bf16.msra.mxu0 %v8133_v10  ;;  %2143 = vmatpush1.bf16.msra.mxu1 %v8135_v12  ;;  %v9103_v10 = vld [vmem:[#allocation8 + $0x520] ss:$16 sps:$4 sm:$0xff]   ;;  %v9111_v12 = vld [vmem:[#allocation8 + $0x544] ss:$16 sps:$4 sm:$0xff]  }
 0x151   :  { %2058 = vmatprep.subr.bf16.mxu0 %v8138_v13  ;;  %2144 = vmatprep.subr.bf16.mxu1 %v8140_v18  ;;  %v9114_v13 = vld [vmem:[#allocation8 + $0x54c] ss:$16 sps:$4 sm:$0xff]  }
 0x152   :  { %v9120_v18 = vld [vmem:[#allocation8 + $0x56c] ss:$16 sps:$4 sm:$0xff]  }
 0x154   :  { %2059 = vmatpush1.bf16.msra.mxu0 %v8137_v19  ;;  %2145 = vmatpush1.bf16.msra.mxu1 %v8139_v22  ;;  %v9115_v19 = vld [vmem:[#allocation8 + $0x560] ss:$16 sps:$4 sm:$0xff]   ;;  %v9126_v22 = vld [vmem:[#allocation8 + $0x58c] ss:$16 sps:$4 sm:$0xff]  }
 0x155   :  { %2060 = vmatprep.subr.bf16.mxu0 %v8142_v23  ;;  %2146 = vmatprep.subr.bf16.mxu1 %v8144_v27  ;;  %v9121_v23 = vld [vmem:[#allocation8 + $0x580] ss:$16 sps:$4 sm:$0xff]   ;;  %v9132_v27 = vld [vmem:[#allocation8 + $0x5ac] ss:$16 sps:$4 sm:$0xff]  }
 0x158   :  { %2061 = vmatpush1.bf16.msra.mxu0 %v8141_v29  ;;  %2147 = vmatpush1.bf16.msra.mxu1 %v8143_v30  ;;  %v9127_v29 = vld [vmem:[#allocation8 + $0x5a0] ss:$16 sps:$4 sm:$0xff]   ;;  %v9130_v30 = vld [vmem:[#allocation8 + $0x5a8] ss:$16 sps:$4 sm:$0xff]  }
 0x159   :  { %2062 = vmatprep.subr.bf16.mxu0 %v8146_v31  ;;  %2148 = vmatprep.subr.bf16.mxu1 %v8148_v32  ;;  %v227_v31 = vlaneseq }
 0x15b   :  { %v228_v32 = vshrl.u32 %v227_v31, 7 }
 0x15c   :  { %2063 = vmatpush1.bf16.msra.mxu0 %v8145_v34  ;;  %2149 = vmatpush1.bf16.msra.mxu1 %v8147_v36  ;;  %v225_v34 = vld [vmem:[#allocation7] sm:$0xf] }
 0x15d   :  { %2941 = vmatprep.subr.bf16.mxu0 %v9051_v33  ;;  %3027 = vmatprep.subr.bf16.mxu1 %v9054_v35  ;;  %v10098_v33 = vsub.s32 0, %v228_v32  ;;  %v10100_v35 = vsub.s32 2, %v228_v32  ;;  %v10102_v36 = vsub.s32 1, %v228_v32 }
 0x15f   :  { %2065 = vmatmul.mubr.bf16.vlgmr.msra.gmra.mrb[4].mxu0 %v10086_v28  ;;  %2151 = vmatmul.mubr.bf16.vlgmr.msra.gmra.mrb[4].mxu1 %v10086_v28 }
 0x160   :  { %2942 = vmatpush1.bf16.msra.mxu0 %v9049_v37  ;;  %3028 = vmatpush1.bf16.msra.mxu1 %v9052_v38  ;;  %v10104_v37 = vsub.s32 3, %v228_v32  ;;  %v230_v38 = vrot.slane %v225_v34, %v10098_v33 }
 0x161   :  { %2943 = vmatprep.subr.bf16.mxu0 %v9057_v39  ;;  %3029 = vmatprep.subr.bf16.mxu1 %v9060_v40  ;;  %v238_v39 = vrot.slane %v225_v34, %v10100_v35  ;;  %v234_v40 = vrot.slane %v225_v34, %v10102_v36 }
 0x164   :  { %2944 = vmatpush1.bf16.msra.mxu0 %v9055_v41  ;;  %3030 = vmatpush1.bf16.msra.mxu1 %v9058_v42  ;;  %v242_v41 = vrot.slane %v225_v34, %v10104_v37 }
 0x165   :  { %2945 = vmatprep.subr.bf16.mxu0 %v9063_v43  ;;  %3031 = vmatprep.subr.bf16.mxu1 %v9066_v44 }
 0x168   :  { %2946 = vmatpush1.bf16.msra.mxu0 %v9061_v45  ;;  %3032 = vmatpush1.bf16.msra.mxu1 %v9064_v46  ;;  %v9135_v46 = vld [vmem:[#allocation8 + $0x5c4] ss:$16 sps:$4 sm:$0xff]  }
 0x169   :  { %2947 = vmatprep.subr.bf16.mxu0 %v9069_v47  ;;  %3033 = vmatprep.subr.bf16.mxu1 %v9072_v48  ;;  %v9138_v47 = vld [vmem:[#allocation8 + $0x5cc] ss:$16 sps:$4 sm:$0xff]  }
 0x16c   :  { %2948 = vmatpush1.bf16.msra.mxu0 %v9067_v49  ;;  %3034 = vmatpush1.bf16.msra.mxu1 %v9070_v50 }
 0x16d   :  { %2949 = vmatprep.subr.bf16.mxu0 %v9075_v51  ;;  %3035 = vmatprep.subr.bf16.mxu1 %v9078_v52  ;;  %v9133_v52 = vld [vmem:[#allocation8 + $0x5c0] ss:$16 sps:$4 sm:$0xff]  }
 0x170   :  { %2950 = vmatpush1.bf16.msra.mxu0 %v9073_v53  ;;  %3036 = vmatpush1.bf16.msra.mxu1 %v9076_v54  ;;  %v9136_v53 = vld [vmem:[#allocation8 + $0x5c8] ss:$16 sps:$4 sm:$0xff]  }
 0x171   :  { %2951 = vmatprep.subr.bf16.mxu0 %v9081_v55  ;;  %3037 = vmatprep.subr.bf16.mxu1 %v9084_v56 }
 0x174   :  { %2952 = vmatpush1.bf16.msra.mxu0 %v9079_v57  ;;  %3038 = vmatpush1.bf16.msra.mxu1 %v9082_v59 }
 0x175   :  { %2953 = vmatprep.subr.bf16.mxu0 %v9087_v60  ;;  %3039 = vmatprep.subr.bf16.mxu1 %v9090_v61 }
 0x178   :  { %2954 = vmatpush1.bf16.msra.mxu0 %v9085_v62  ;;  %3040 = vmatpush1.bf16.msra.mxu1 %v9088_v63 }
 0x179   :  { %2955 = vmatprep.subr.bf16.mxu0 %v9093_v0  ;;  %3041 = vmatprep.subr.bf16.mxu1 %v9096_v1 }
 0x17c   :  { %2956 = vmatpush1.bf16.msra.mxu0 %v9091_v2  ;;  %3042 = vmatpush1.bf16.msra.mxu1 %v9094_v3  ;;  %v9141_v3 = vld [vmem:[#allocation8 + $0x5e4] ss:$16 sps:$4 sm:$0xff]  }
 0x17d   :  { %2957 = vmatprep.subr.bf16.mxu0 %v9099_v4  ;;  %3043 = vmatprep.subr.bf16.mxu1 %v9102_v5  ;;  %v9144_v4 = vld [vmem:[#allocation8 + $0x5ec] ss:$16 sps:$4 sm:$0xff]  }
 0x180   :  { %2958 = vmatpush1.bf16.msra.mxu0 %v9097_v6  ;;  %3044 = vmatpush1.bf16.msra.mxu1 %v9100_v7  ;;  %v9139_v7 = vld [vmem:[#allocation8 + $0x5e0] ss:$16 sps:$4 sm:$0xff]  }
 0x181   :  { %2959 = vmatprep.subr.bf16.mxu0 %v9105_v8  ;;  %3045 = vmatprep.subr.bf16.mxu1 %v9108_v9  ;;  %v9142_v8 = vld [vmem:[#allocation8 + $0x5e8] ss:$16 sps:$4 sm:$0xff]  }
 0x184   :  { %2960 = vmatpush1.bf16.msra.mxu0 %v9103_v10  ;;  %3046 = vmatpush1.bf16.msra.mxu1 %v9106_v11 }
 0x185   :  { %2961 = vmatprep.subr.bf16.mxu0 %v9111_v12  ;;  %3047 = vmatprep.subr.bf16.mxu1 %v9114_v13 }
 0x188   :  { %2962 = vmatpush1.bf16.msra.mxu0 %v9109_v14  ;;  %3048 = vmatpush1.bf16.msra.mxu1 %v9112_v16  ;;  %v9147_v16 = vld [vmem:[#allocation8 + $0x604] ss:$16 sps:$4 sm:$0xff]  }
 0x189   :  { %2963 = vmatprep.subr.bf16.mxu0 %v9117_v17  ;;  %3049 = vmatprep.subr.bf16.mxu1 %v9120_v18  ;;  %v9150_v17 = vld [vmem:[#allocation8 + $0x60c] ss:$16 sps:$4 sm:$0xff]   ;;  %v1327_v18 = vld [vmem:[#allocation7 + $0x4] sm:$0xf] }
 0x18c   :  { %2964 = vmatpush1.bf16.msra.mxu0 %v9115_v19  ;;  %3050 = vmatpush1.bf16.msra.mxu1 %v9118_v20  ;;  %v1332_v19 = vrot.slane %v1327_v18, %v10098_v33  ;;  %v1340_v20 = vrot.slane %v1327_v18, %v10100_v35 }
 0x18d   :  { %2965 = vmatprep.subr.bf16.mxu0 %v9123_v21  ;;  %3051 = vmatprep.subr.bf16.mxu1 %v9126_v22  ;;  %v1336_v21 = vrot.slane %v1327_v18, %v10102_v36  ;;  %v1344_v22 = vrot.slane %v1327_v18, %v10104_v37  ;;  %v9180_v18 = vld [vmem:[#allocation8 + $0x6ac] ss:$16 sps:$4 sm:$0xff]  }
 0x190   :  { %2966 = vmatpush1.bf16.msra.mxu0 %v9121_v23  ;;  %3052 = vmatpush1.bf16.msra.mxu1 %v9124_v24 }
 0x191   :  { %2967 = vmatprep.subr.bf16.mxu0 %v9129_v26  ;;  %3053 = vmatprep.subr.bf16.mxu1 %v9132_v27 }
 0x194   :  { %2968 = vmatpush1.bf16.msra.mxu0 %v9127_v29  ;;  %3054 = vmatpush1.bf16.msra.mxu1 %v9130_v30 }
 0x195   :  { %2969 = vmatprep.subr.bf16.mxu0 %v9135_v46  ;;  %3055 = vmatprep.subr.bf16.mxu1 %v9138_v47 }
 0x198   :  { %2970 = vmatpush1.bf16.msra.mxu0 %v9133_v52  ;;  %3056 = vmatpush1.bf16.msra.mxu1 %v9136_v53 }
 0x199   :  { %2971 = vmatprep.subr.bf16.mxu0 %v9141_v3  ;;  %3057 = vmatprep.subr.bf16.mxu1 %v9144_v4  ;;  %v9160_v3 = vld [vmem:[#allocation8 + $0x648] ss:$16 sps:$4 sm:$0xff]   ;;  %v9165_v4 = vld [vmem:[#allocation8 + $0x664] ss:$16 sps:$4 sm:$0xff]  }
 0x19c   :  { %2972 = vmatpush1.bf16.msra.mxu0 %v9139_v7  ;;  %3058 = vmatpush1.bf16.msra.mxu1 %v9142_v8  ;;  %v9166_v7 = vld [vmem:[#allocation8 + $0x668] ss:$16 sps:$4 sm:$0xff]   ;;  %v9171_v8 = vld [vmem:[#allocation8 + $0x684] ss:$16 sps:$4 sm:$0xff]  }
 0x19d   :  { %2984 = vmatprep.subr.bf16.mxu0 %v9147_v16  ;;  %3070 = vmatprep.subr.bf16.mxu1 %v9150_v17  ;;  %v9172_v16 = vld [vmem:[#allocation8 + $0x688] ss:$16 sps:$4 sm:$0xff]   ;;  %v9177_v17 = vld [vmem:[#allocation8 + $0x6a4] ss:$16 sps:$4 sm:$0xff]  }
 0x1b2   :  { %v964_v42 = vpop.f32.mrb[0].mxu0  ;;  %v1050_v44 = vpop.f32.mrb[0].mxu1 }
 0x1b3   :  { %v8917_v43 = vadd.f32 %v964_v42, %v230_v38  ;;  %v966_v45 = vpop.f32.mrb[1].mxu0  ;;  %v8921_v48 = vadd.f32 %v1050_v44, %v238_v39  ;;  %v1052_v50 = vpop.f32.mrb[1].mxu1 }
 0x1b4   :  { %v8918_v49 = vadd.f32 %v966_v45, %v234_v40  ;;  %v968_v51 = vpop.f32.mrb[2].mxu0  ;;  %v8922_v54 = vadd.f32 %v1052_v50, %v242_v41  ;;  %v1054_v56 = vpop.f32.mrb[2].mxu1 }
 0x1b5   :  { %v8919_v55 = vadd.f32 %v968_v51, %v230_v38  ;;  %v970_v57 = vpop.f32.mrb[3].mxu0  ;;  %v1059_v59 = vmax.f32 %v8917_v43, 0.0  ;;  %v1061_v60 = vmax.f32 %v8921_v48, 0.0  ;;  %v8923_v61 = vadd.f32 %v1054_v56, %v238_v39  ;;  %v1056_v63 = vpop.f32.mrb[3].mxu1  ;;  %v9145_v56 = vld [vmem:[#allocation8 + $0x600] ss:$16 sps:$4 sm:$0xff]  }
 0x1b6   :  { %v8920_v62 = vadd.f32 %v970_v57, %v234_v40  ;;  %v1060_v0 = vmax.f32 %v8918_v49, 0.0  ;;  %v8924_v2 = vadd.f32 %v1056_v63, %v242_v41  ;;  %v1062_v9 = vmax.f32 %v8922_v54, 0.0  ;;  %v9148_v57 = vld [vmem:[#allocation8 + $0x608] ss:$16 sps:$4 sm:$0xff]  }
 0x1b7   :  { %v1063_v1 = vmax.f32 %v8919_v55, 0.0  ;;  %v1065_v5 = vmax.f32 %v8923_v61, 0.0  ;;  %v9156_v61 = vld [vmem:[#allocation8 + $0x62c] ss:$16 sps:$4 sm:$0xff]   ;;  %v9154_v63 = vld [vmem:[#allocation8 + $0x628] ss:$16 sps:$4 sm:$0xff]  }
 0x1b8   :  { %v1064_v6 = vmax.f32 %v8920_v62, 0.0  ;;  %v1066_v11 = vmax.f32 %v8924_v2, 0.0  ;;  %v9151_v62 = vld [vmem:[#allocation8 + $0x620] ss:$16 sps:$4 sm:$0xff]  }
 0x1b9   :  { %v10110_v10 = vpack.c.bf16 %v1063_v1, %v1059_v59  ;;  %v10112_v12 = vpack.c.bf16 %v1065_v5, %v1061_v60  ;;  %v9153_v60 = vld [vmem:[#allocation8 + $0x624] ss:$16 sps:$4 sm:$0xff]   ;;  %v9162_v1 = vld [vmem:[#allocation8 + $0x64c] ss:$16 sps:$4 sm:$0xff]   ;;  %v9157_v2 = vld [vmem:[#allocation8 + $0x640] ss:$16 sps:$4 sm:$0xff]  }
 0x1ba   :  { %v10114_v13 = vpack.c.bf16 %v1064_v6, %v1060_v0  ;;  %v10116_v14 = vpack.c.bf16 %v1066_v11, %v1062_v9  ;;  %v9159_v0 = vld [vmem:[#allocation8 + $0x644] ss:$16 sps:$4 sm:$0xff]   ;;  %v9168_v5 = vld [vmem:[#allocation8 + $0x66c] ss:$16 sps:$4 sm:$0xff]   ;;  %v9163_v6 = vld [vmem:[#allocation8 + $0x660] ss:$16 sps:$4 sm:$0xff]  }
 0x1bb   :  { %v9174_v9 = vld [vmem:[#allocation8 + $0x68c] ss:$16 sps:$4 sm:$0xff]   ;;  %v9169_v11 = vld [vmem:[#allocation8 + $0x680] ss:$16 sps:$4 sm:$0xff]  }
 0x232   :  { %v2066_v23 = vpop.f32.mrb[4].mxu0  ;;  %v2152_v26 = vpop.f32.mrb[4].mxu1 }
 0x233   :  { %v8925_v24 = vadd.f32 %v2066_v23, %v1332_v19  ;;  %v2068_v27 = vpop.f32.mrb[5].mxu0  ;;  %v8929_v29 = vadd.f32 %v2152_v26, %v1340_v20  ;;  %v2154_v31 = vpop.f32.mrb[5].mxu1  ;;  %v9181_v23 = vld [vmem:[#allocation8 + $0x6c0] ss:$16 sps:$4 sm:$0xff]   ;;  %v9189_v26 = vld [vmem:[#allocation8 + $0x6e4] ss:$16 sps:$4 sm:$0xff]  }
 0x234   :  { %v8926_v30 = vadd.f32 %v2068_v27, %v1336_v21  ;;  %v2070_v32 = vpop.f32.mrb[6].mxu0  ;;  %v8930_v34 = vadd.f32 %v2154_v31, %v1344_v22  ;;  %v2156_v39 = vpop.f32.mrb[6].mxu1  ;;  %v9192_v27 = vld [vmem:[#allocation8 + $0x6ec] ss:$16 sps:$4 sm:$0xff]   ;;  %v9195_v31 = vld [vmem:[#allocation8 + $0x704] ss:$16 sps:$4 sm:$0xff]  }
 0x235   :  { %v8927_v38 = vadd.f32 %v2070_v32, %v1332_v19  ;;  %v2072_v40 = vpop.f32.mrb[7].mxu0  ;;  %v2163_v41 = vmax.f32 %v8929_v29, 0.0  ;;  %v8931_v42 = vadd.f32 %v2156_v39, %v1340_v20  ;;  %v2158_v44 = vpop.f32.mrb[7].mxu1  ;;  %v2161_v45 = vmax.f32 %v8925_v24, 0.0  ;;  %v9175_v19 = vld [vmem:[#allocation8 + $0x6a0] ss:$16 sps:$4 sm:$0xff]  }
 0x236   :  { %v8928_v43 = vadd.f32 %v2072_v40, %v1336_v21  ;;  %v8932_v47 = vadd.f32 %v2158_v44, %v1344_v22  ;;  %v2162_v48 = vmax.f32 %v8926_v30, 0.0  ;;  %v2164_v51 = vmax.f32 %v8930_v34, 0.0  ;;  %v9178_v20 = vld [vmem:[#allocation8 + $0x6a8] ss:$16 sps:$4 sm:$0xff]   ;;  %v9183_v21 = vld [vmem:[#allocation8 + $0x6c4] ss:$16 sps:$4 sm:$0xff]  }
 0x237   :  { %v2165_v46 = vmax.f32 %v8927_v38, 0.0  ;;  %v2167_v49 = vmax.f32 %v8931_v42, 0.0  ;;  %v9186_v22 = vld [vmem:[#allocation8 + $0x6cc] ss:$16 sps:$4 sm:$0xff]   ;;  %v9184_v24 = vld [vmem:[#allocation8 + $0x6c8] ss:$16 sps:$4 sm:$0xff]  }
 0x238   :  { %v2166_v50 = vmax.f32 %v8928_v43, 0.0  ;;  %v2168_v53 = vmax.f32 %v8932_v47, 0.0  ;;  %v9187_v29 = vld [vmem:[#allocation8 + $0x6e0] ss:$16 sps:$4 sm:$0xff]   ;;  %v9190_v30 = vld [vmem:[#allocation8 + $0x6e8] ss:$16 sps:$4 sm:$0xff]  }
 0x239   :  { %v2169_v52 = vpack.c.bf16 %v2165_v46, %v2161_v45  ;;  %v10122_v54 = vpack.c.bf16 %v2167_v49, %v2163_v41  ;;  %v9198_v32 = vld [vmem:[#allocation8 + $0x70c] ss:$16 sps:$4 sm:$0xff]   ;;  %v9193_v34 = vld [vmem:[#allocation8 + $0x700] ss:$16 sps:$4 sm:$0xff]   ;;  %v9196_v38 = vld [vmem:[#allocation8 + $0x708] ss:$16 sps:$4 sm:$0xff]  }
 0x23a   :  { %v2170_v55 = vpack.c.bf16 %v2166_v50, %v2162_v48  ;;  %v2172_v59 = vpack.c.bf16 %v2168_v53, %v2164_v51  ;;  %v9201_v39 = vld [vmem:[#allocation8 + $0x724] ss:$16 sps:$4 sm:$0xff]   ;;  %v9204_v40 = vld [vmem:[#allocation8 + $0x72c] ss:$16 sps:$4 sm:$0xff]   ;;  %v9199_v41 = vld [vmem:[#allocation8 + $0x720] ss:$16 sps:$4 sm:$0xff]  }
 0x23b   :  { %v9202_v42 = vld [vmem:[#allocation8 + $0x728] ss:$16 sps:$4 sm:$0xff]   ;;  %v9207_v43 = vld [vmem:[#allocation8 + $0x744] ss:$16 sps:$4 sm:$0xff]   ;;  %v9210_v44 = vld [vmem:[#allocation8 + $0x74c] ss:$16 sps:$4 sm:$0xff]  }
 0x23c   :  { %2973 = vmatprep.mubr.bf16.mxu0 %v2170_v55  ;;  %3059 = vmatprep.mubr.bf16.mxu1 %v2170_v55  ;;  %v9205_v45 = vld [vmem:[#allocation8 + $0x740] ss:$16 sps:$4 sm:$0xff]   ;;  %v9208_v46 = vld [vmem:[#allocation8 + $0x748] ss:$16 sps:$4 sm:$0xff]   ;;  %v9213_v47 = vld [vmem:[#allocation8 + $0x764] ss:$16 sps:$4 sm:$0xff]  }
 0x23d   :  { %2974 = vmatmul.mubr.bf16.vlgmr.msra.gmra.mrb[8].mxu0 %v2169_v52  ;;  %3060 = vmatmul.mubr.bf16.vlgmr.msra.gmra.mrb[8].mxu1 %v2169_v52  ;;  %v9216_v48 = vld [vmem:[#allocation8 + $0x76c] ss:$16 sps:$4 sm:$0xff]   ;;  %v9211_v49 = vld [vmem:[#allocation8 + $0x760] ss:$16 sps:$4 sm:$0xff]   ;;  %v9214_v50 = vld [vmem:[#allocation8 + $0x768] ss:$16 sps:$4 sm:$0xff]  }
 0x23e   :  { %2985 = vmatpush1.bf16.msra.mxu0 %v9145_v56  ;;  %3071 = vmatpush1.bf16.msra.mxu1 %v9148_v57  ;;  %v9219_v51 = vld [vmem:[#allocation8 + $0x784] ss:$16 sps:$4 sm:$0xff]   ;;  %v9222_v52 = vld [vmem:[#allocation8 + $0x78c] ss:$16 sps:$4 sm:$0xff]   ;;  %v9217_v53 = vld [vmem:[#allocation8 + $0x780] ss:$16 sps:$4 sm:$0xff]  }
 0x23f   :  { %3016 = vmatprep.mubr.bf16.mxu0 %v2172_v59  ;;  %3102 = vmatprep.mubr.bf16.mxu1 %v2172_v59  ;;  %v9220_v55 = vld [vmem:[#allocation8 + $0x788] ss:$16 sps:$4 sm:$0xff]   ;;  %v9225_v56 = vld [vmem:[#allocation8 + $0x7a4] ss:$16 sps:$4 sm:$0xff]   ;;  %v9228_v57 = vld [vmem:[#allocation8 + $0x7ac] ss:$16 sps:$4 sm:$0xff]  }
 0x240   :  { %2986 = vmatprep.subr.bf16.mxu0 %v9153_v60  ;;  %3072 = vmatprep.subr.bf16.mxu1 %v9156_v61  ;;  %v9223_v59 = vld [vmem:[#allocation8 + $0x7a0] ss:$16 sps:$4 sm:$0xff]   ;;  %v9226_v60 = vld [vmem:[#allocation8 + $0x7a8] ss:$16 sps:$4 sm:$0xff]   ;;  %v9231_v61 = vld [vmem:[#allocation8 + $0x7c4] ss:$16 sps:$4 sm:$0xff]  }
 0x242   :  { %2987 = vmatpush1.bf16.msra.mxu0 %v9151_v62  ;;  %3073 = vmatpush1.bf16.msra.mxu1 %v9154_v63  ;;  %v9234_v62 = vld [vmem:[#allocation8 + $0x7cc] ss:$16 sps:$4 sm:$0xff]   ;;  %v9229_v63 = vld [vmem:[#allocation8 + $0x7c0] ss:$16 sps:$4 sm:$0xff]  }
 0x243   :  { %2988 = vmatprep.subr.bf16.mxu0 %v9159_v0  ;;  %3074 = vmatprep.subr.bf16.mxu1 %v9162_v1  ;;  %v9232_v0 = vld [vmem:[#allocation8 + $0x7c8] ss:$16 sps:$4 sm:$0xff]   ;;  %v9237_v1 = vld [vmem:[#allocation8 + $0x7e4] ss:$16 sps:$4 sm:$0xff]  }
 0x246   :  { %2989 = vmatpush1.bf16.msra.mxu0 %v9157_v2  ;;  %3075 = vmatpush1.bf16.msra.mxu1 %v9160_v3  ;;  %v9240_v2 = vld [vmem:[#allocation8 + $0x7ec] ss:$16 sps:$4 sm:$0xff]   ;;  %v9235_v3 = vld [vmem:[#allocation8 + $0x7e0] ss:$16 sps:$4 sm:$0xff]  }
 0x247   :  { %2990 = vmatprep.subr.bf16.mxu0 %v9165_v4  ;;  %3076 = vmatprep.subr.bf16.mxu1 %v9168_v5  ;;  %v9238_v4 = vld [vmem:[#allocation8 + $0x7e8] ss:$16 sps:$4 sm:$0xff]   ;;  %v9243_v5 = vld [vmem:[#allocation8 + $0x4] ss:$16 sps:$4 sm:$0xff]  }
 0x24a   :  { %2991 = vmatpush1.bf16.msra.mxu0 %v9163_v6  ;;  %3077 = vmatpush1.bf16.msra.mxu1 %v9166_v7  ;;  %v9246_v6 = vld [vmem:[#allocation8 + $0xc] ss:$16 sps:$4 sm:$0xff]   ;;  %v9241_v7 = vld [vmem:[#allocation8] ss:$16 sps:$4 sm:$0xff]  }
 0x24b   :  { %2992 = vmatprep.subr.bf16.mxu0 %v9171_v8  ;;  %3078 = vmatprep.subr.bf16.mxu1 %v9174_v9  ;;  %v9244_v8 = vld [vmem:[#allocation8 + $0x8] ss:$16 sps:$4 sm:$0xff]   ;;  %v9249_v9 = vld [vmem:[#allocation8 + $0x24] ss:$16 sps:$4 sm:$0xff]  }
 0x24e   :  { %2993 = vmatpush1.bf16.msra.mxu0 %v9169_v11  ;;  %3079 = vmatpush1.bf16.msra.mxu1 %v9172_v16  ;;  %v9252_v11 = vld [vmem:[#allocation8 + $0x2c] ss:$16 sps:$4 sm:$0xff]   ;;  %v9247_v16 = vld [vmem:[#allocation8 + $0x20] ss:$16 sps:$4 sm:$0xff]  }
 0x24f   :  { %2994 = vmatprep.subr.bf16.mxu0 %v9177_v17  ;;  %3080 = vmatprep.subr.bf16.mxu1 %v9180_v18  ;;  %v9250_v17 = vld [vmem:[#allocation8 + $0x28] ss:$16 sps:$4 sm:$0xff]   ;;  %v9255_v18 = vld [vmem:[#allocation8 + $0x44] ss:$16 sps:$4 sm:$0xff]  }
 0x252   :  { %2995 = vmatpush1.bf16.msra.mxu0 %v9175_v19  ;;  %3081 = vmatpush1.bf16.msra.mxu1 %v9178_v20  ;;  %v9258_v19 = vld [vmem:[#allocation8 + $0x4c] ss:$16 sps:$4 sm:$0xff]   ;;  %v9253_v20 = vld [vmem:[#allocation8 + $0x40] ss:$16 sps:$4 sm:$0xff]  }
 0x253   :  { %2996 = vmatprep.subr.bf16.mxu0 %v9183_v21  ;;  %3082 = vmatprep.subr.bf16.mxu1 %v9186_v22  ;;  %v9256_v21 = vld [vmem:[#allocation8 + $0x48] ss:$16 sps:$4 sm:$0xff]   ;;  %v9261_v22 = vld [vmem:[#allocation8 + $0x64] ss:$16 sps:$4 sm:$0xff]  }
 0x256   :  { %2997 = vmatpush1.bf16.msra.mxu0 %v9181_v23  ;;  %3083 = vmatpush1.bf16.msra.mxu1 %v9184_v24  ;;  %v9259_v23 = vld [vmem:[#allocation8 + $0x60] ss:$16 sps:$4 sm:$0xff]   ;;  %v9262_v24 = vld [vmem:[#allocation8 + $0x68] ss:$16 sps:$4 sm:$0xff]  }
 0x257   :  { %2998 = vmatprep.subr.bf16.mxu0 %v9189_v26  ;;  %3084 = vmatprep.subr.bf16.mxu1 %v9192_v27  ;;  %v9267_v26 = vld [vmem:[#allocation8 + $0x84] ss:$16 sps:$4 sm:$0xff]   ;;  %v9265_v27 = vld [vmem:[#allocation8 + $0x80] ss:$16 sps:$4 sm:$0xff]  }
 0x25a   :  { %2999 = vmatpush1.bf16.msra.mxu0 %v9187_v29  ;;  %3085 = vmatpush1.bf16.msra.mxu1 %v9190_v30  ;;  %v9268_v29 = vld [vmem:[#allocation8 + $0x88] ss:$16 sps:$4 sm:$0xff]   ;;  %v9273_v30 = vld [vmem:[#allocation8 + $0xa4] ss:$16 sps:$4 sm:$0xff]  }
 0x25b   :  { %3000 = vmatprep.subr.bf16.mxu0 %v9195_v31  ;;  %3086 = vmatprep.subr.bf16.mxu1 %v9198_v32  ;;  %v9276_v31 = vld [vmem:[#allocation8 + $0xac] ss:$16 sps:$4 sm:$0xff]   ;;  %v9271_v32 = vld [vmem:[#allocation8 + $0xa0] ss:$16 sps:$4 sm:$0xff]  }
 0x25e   :  { %3001 = vmatpush1.bf16.msra.mxu0 %v9193_v34  ;;  %3087 = vmatpush1.bf16.msra.mxu1 %v9196_v38  ;;  %v9274_v34 = vld [vmem:[#allocation8 + $0xa8] ss:$16 sps:$4 sm:$0xff]   ;;  %v9279_v38 = vld [vmem:[#allocation8 + $0xc4] ss:$16 sps:$4 sm:$0xff]  }
 0x25f   :  { %3002 = vmatprep.subr.bf16.mxu0 %v9201_v39  ;;  %3088 = vmatprep.subr.bf16.mxu1 %v9204_v40  ;;  %v9282_v39 = vld [vmem:[#allocation8 + $0xcc] ss:$16 sps:$4 sm:$0xff]   ;;  %v9277_v40 = vld [vmem:[#allocation8 + $0xc0] ss:$16 sps:$4 sm:$0xff]  }
 0x262   :  { %3003 = vmatpush1.bf16.msra.mxu0 %v9199_v41  ;;  %3089 = vmatpush1.bf16.msra.mxu1 %v9202_v42  ;;  %v9280_v41 = vld [vmem:[#allocation8 + $0xc8] ss:$16 sps:$4 sm:$0xff]   ;;  %v9285_v42 = vld [vmem:[#allocation8 + $0xe4] ss:$16 sps:$4 sm:$0xff]  }
 0x263   :  { %3004 = vmatprep.subr.bf16.mxu0 %v9207_v43  ;;  %3090 = vmatprep.subr.bf16.mxu1 %v9210_v44  ;;  %v9288_v43 = vld [vmem:[#allocation8 + $0xec] ss:$16 sps:$4 sm:$0xff]   ;;  %v9283_v44 = vld [vmem:[#allocation8 + $0xe0] ss:$16 sps:$4 sm:$0xff]  }
 0x266   :  { %3005 = vmatpush1.bf16.msra.mxu0 %v9205_v45  ;;  %3091 = vmatpush1.bf16.msra.mxu1 %v9208_v46  ;;  %v9286_v45 = vld [vmem:[#allocation8 + $0xe8] ss:$16 sps:$4 sm:$0xff]   ;;  %v9291_v46 = vld [vmem:[#allocation8 + $0x104] ss:$16 sps:$4 sm:$0xff]  }
 0x267   :  { %3006 = vmatprep.subr.bf16.mxu0 %v9213_v47  ;;  %3092 = vmatprep.subr.bf16.mxu1 %v9216_v48  ;;  %v9294_v47 = vld [vmem:[#allocation8 + $0x10c] ss:$16 sps:$4 sm:$0xff]   ;;  %v9289_v48 = vld [vmem:[#allocation8 + $0x100] ss:$16 sps:$4 sm:$0xff]  }
 0x26a   :  { %3007 = vmatpush1.bf16.msra.mxu0 %v9211_v49  ;;  %3093 = vmatpush1.bf16.msra.mxu1 %v9214_v50  ;;  %v9292_v49 = vld [vmem:[#allocation8 + $0x108] ss:$16 sps:$4 sm:$0xff]   ;;  %v9297_v50 = vld [vmem:[#allocation8 + $0x124] ss:$16 sps:$4 sm:$0xff]  }
 0x26b   :  { %3008 = vmatprep.subr.bf16.mxu0 %v9219_v51  ;;  %3094 = vmatprep.subr.bf16.mxu1 %v9222_v52  ;;  %v9300_v51 = vld [vmem:[#allocation8 + $0x12c] ss:$16 sps:$4 sm:$0xff]   ;;  %v9295_v52 = vld [vmem:[#allocation8 + $0x120] ss:$16 sps:$4 sm:$0xff]  }
 0x26e   :  { %3009 = vmatpush1.bf16.msra.mxu0 %v9217_v53  ;;  %3095 = vmatpush1.bf16.msra.mxu1 %v9220_v55  ;;  %v9298_v53 = vld [vmem:[#allocation8 + $0x128] ss:$16 sps:$4 sm:$0xff]   ;;  %v9303_v55 = vld [vmem:[#allocation8 + $0x144] ss:$16 sps:$4 sm:$0xff]  }
 0x26f   :  { %3010 = vmatprep.subr.bf16.mxu0 %v9225_v56  ;;  %3096 = vmatprep.subr.bf16.mxu1 %v9228_v57  ;;  %v9306_v56 = vld [vmem:[#allocation8 + $0x14c] ss:$16 sps:$4 sm:$0xff]   ;;  %v9301_v57 = vld [vmem:[#allocation8 + $0x140] ss:$16 sps:$4 sm:$0xff]  }
 0x272   :  { %3011 = vmatpush1.bf16.msra.mxu0 %v9223_v59  ;;  %3097 = vmatpush1.bf16.msra.mxu1 %v9226_v60  ;;  %v9304_v59 = vld [vmem:[#allocation8 + $0x148] ss:$16 sps:$4 sm:$0xff]   ;;  %v9309_v60 = vld [vmem:[#allocation8 + $0x164] ss:$16 sps:$4 sm:$0xff]  }
 0x273   :  { %3012 = vmatprep.subr.bf16.mxu0 %v9231_v61  ;;  %3098 = vmatprep.subr.bf16.mxu1 %v9234_v62  ;;  %v9312_v61 = vld [vmem:[#allocation8 + $0x16c] ss:$16 sps:$4 sm:$0xff]   ;;  %v9307_v62 = vld [vmem:[#allocation8 + $0x160] ss:$16 sps:$4 sm:$0xff]  }
 0x276   :  { %3013 = vmatpush1.bf16.msra.mxu0 %v9229_v63  ;;  %3099 = vmatpush1.bf16.msra.mxu1 %v9232_v0  ;;  %v9310_v63 = vld [vmem:[#allocation8 + $0x168] ss:$16 sps:$4 sm:$0xff]   ;;  %v9315_v0 = vld [vmem:[#allocation8 + $0x184] ss:$16 sps:$4 sm:$0xff]  }
 0x277   :  { %3014 = vmatprep.subr.bf16.mxu0 %v9237_v1  ;;  %3100 = vmatprep.subr.bf16.mxu1 %v9240_v2  ;;  %v9318_v1 = vld [vmem:[#allocation8 + $0x18c] ss:$16 sps:$4 sm:$0xff]   ;;  %v9313_v2 = vld [vmem:[#allocation8 + $0x180] ss:$16 sps:$4 sm:$0xff]  }
 0x27a   :  { %3015 = vmatpush1.bf16.msra.mxu0 %v9235_v3  ;;  %3101 = vmatpush1.bf16.msra.mxu1 %v9238_v4  ;;  %v9316_v3 = vld [vmem:[#allocation8 + $0x188] ss:$16 sps:$4 sm:$0xff]   ;;  %v9321_v4 = vld [vmem:[#allocation8 + $0x1a4] ss:$16 sps:$4 sm:$0xff]  }
 0x27b   :  { %3753 = vmatprep.subr.bf16.mxu0 %v9243_v5  ;;  %3839 = vmatprep.subr.bf16.mxu1 %v9246_v6  ;;  %v9324_v5 = vld [vmem:[#allocation8 + $0x1ac] ss:$16 sps:$4 sm:$0xff]   ;;  %v9319_v6 = vld [vmem:[#allocation8 + $0x1a0] ss:$16 sps:$4 sm:$0xff]  }
 0x27d   :  { %3017 = vmatmul.mubr.bf16.vlgmr.msra.gmra.mrb[8].mxu0 %v10122_v54  ;;  %3103 = vmatmul.mubr.bf16.vlgmr.msra.gmra.mrb[8].mxu1 %v10122_v54  ;;  %v9264_v54 = vld [vmem:[#allocation8 + $0x6c] ss:$16 sps:$4 sm:$0xff]  }
 0x27e   :  { %3754 = vmatpush1.bf16.msra.mxu0 %v9241_v7  ;;  %3785 = vmatprep.mubr.bf16.mxu0 %v10114_v13  ;;  %v9322_v7 = vld [vmem:[#allocation8 + $0x1a8] ss:$16 sps:$4 sm:$0xff]  }
 0x27f   :  { %3840 = vmatpush1.bf16.msra.mxu1 %v9244_v8  ;;  %3871 = vmatprep.mubr.bf16.mxu1 %v10114_v13  ;;  %v9270_v13 = vld [vmem:[#allocation8 + $0x8c] ss:$16 sps:$4 sm:$0xff]   ;;  %v9327_v8 = vld [vmem:[#allocation8 + $0x1c4] ss:$16 sps:$4 sm:$0xff]  }
 0x280   :  { %3755 = vmatprep.subr.bf16.mxu0 %v9249_v9  ;;  %3841 = vmatprep.subr.bf16.mxu1 %v9252_v11  ;;  %v9330_v9 = vld [vmem:[#allocation8 + $0x1cc] ss:$16 sps:$4 sm:$0xff]   ;;  %v9325_v11 = vld [vmem:[#allocation8 + $0x1c0] ss:$16 sps:$4 sm:$0xff]  }
 0x282   :  { %3756 = vmatpush1.bf16.msra.mxu0 %v9247_v16  ;;  %v9328_v16 = vld [vmem:[#allocation8 + $0x1c8] ss:$16 sps:$4 sm:$0xff]  }
 0x283   :  { %3842 = vmatpush1.bf16.msra.mxu1 %v9250_v17  ;;  %3757 = vmatprep.subr.bf16.mxu0 %v9255_v18  ;;  %v9333_v17 = vld [vmem:[#allocation8 + $0x1e4] ss:$16 sps:$4 sm:$0xff]   ;;  %v9336_v18 = vld [vmem:[#allocation8 + $0x1ec] ss:$16 sps:$4 sm:$0xff]  }
 0x284   :  { %3843 = vmatprep.subr.bf16.mxu1 %v9258_v19  ;;  %v9331_v19 = vld [vmem:[#allocation8 + $0x1e0] ss:$16 sps:$4 sm:$0xff]  }
 0x286   :  { %3758 = vmatpush1.bf16.msra.mxu0 %v9253_v20  ;;  %v9334_v20 = vld [vmem:[#allocation8 + $0x1e8] ss:$16 sps:$4 sm:$0xff]  }
 0x287   :  { %3844 = vmatpush1.bf16.msra.mxu1 %v9256_v21  ;;  %3759 = vmatprep.subr.bf16.mxu0 %v9261_v22  ;;  %v9339_v21 = vld [vmem:[#allocation8 + $0x204] ss:$16 sps:$4 sm:$0xff]   ;;  %v9342_v22 = vld [vmem:[#allocation8 + $0x20c] ss:$16 sps:$4 sm:$0xff]  }
 0x288   :  { %3845 = vmatprep.subr.bf16.mxu1 %v9264_v54  ;;  %v9337_v54 = vld [vmem:[#allocation8 + $0x200] ss:$16 sps:$4 sm:$0xff]  }
 0x28a   :  { %3760 = vmatpush1.bf16.msra.mxu0 %v9259_v23  ;;  %v9340_v23 = vld [vmem:[#allocation8 + $0x208] ss:$16 sps:$4 sm:$0xff]  }
 0x28b   :  { %3846 = vmatpush1.bf16.msra.mxu1 %v9262_v24  ;;  %3761 = vmatprep.subr.bf16.mxu0 %v9267_v26  ;;  %v9345_v24 = vld [vmem:[#allocation8 + $0x224] ss:$16 sps:$4 sm:$0xff]   ;;  %v9348_v26 = vld [vmem:[#allocation8 + $0x22c] ss:$16 sps:$4 sm:$0xff]  }
 0x28c   :  { %3847 = vmatprep.subr.bf16.mxu1 %v9270_v13  ;;  %v9343_v13 = vld [vmem:[#allocation8 + $0x220] ss:$16 sps:$4 sm:$0xff]  }
 0x28e   :  { %3762 = vmatpush1.bf16.msra.mxu0 %v9265_v27  ;;  %v9346_v27 = vld [vmem:[#allocation8 + $0x228] ss:$16 sps:$4 sm:$0xff]  }
 0x28f   :  { %3848 = vmatpush1.bf16.msra.mxu1 %v9268_v29  ;;  %3763 = vmatprep.subr.bf16.mxu0 %v9273_v30  ;;  %v9351_v29 = vld [vmem:[#allocation8 + $0x244] ss:$16 sps:$4 sm:$0xff]   ;;  %v9354_v30 = vld [vmem:[#allocation8 + $0x24c] ss:$16 sps:$4 sm:$0xff]  }
 0x290   :  { %3849 = vmatprep.subr.bf16.mxu1 %v9276_v31  ;;  %v9349_v31 = vld [vmem:[#allocation8 + $0x240] ss:$16 sps:$4 sm:$0xff]  }
 0x292   :  { %3764 = vmatpush1.bf16.msra.mxu0 %v9271_v32  ;;  %v9352_v32 = vld [vmem:[#allocation8 + $0x248] ss:$16 sps:$4 sm:$0xff]  }
 0x293   :  { %3850 = vmatpush1.bf16.msra.mxu1 %v9274_v34  ;;  %3765 = vmatprep.subr.bf16.mxu0 %v9279_v38  ;;  %v9357_v34 = vld [vmem:[#allocation8 + $0x264] ss:$16 sps:$4 sm:$0xff]   ;;  %v9355_v38 = vld [vmem:[#allocation8 + $0x260] ss:$16 sps:$4 sm:$0xff]  }
 0x294   :  { %3851 = vmatprep.subr.bf16.mxu1 %v9282_v39  ;;  %v9358_v39 = vld [vmem:[#allocation8 + $0x268] ss:$16 sps:$4 sm:$0xff]  }
 0x296   :  { %3766 = vmatpush1.bf16.msra.mxu0 %v9277_v40  ;;  %v9363_v40 = vld [vmem:[#allocation8 + $0x284] ss:$16 sps:$4 sm:$0xff]  }
 0x297   :  { %3852 = vmatpush1.bf16.msra.mxu1 %v9280_v41  ;;  %3767 = vmatprep.subr.bf16.mxu0 %v9285_v42  ;;  %v9366_v41 = vld [vmem:[#allocation8 + $0x28c] ss:$16 sps:$4 sm:$0xff]   ;;  %v9364_v42 = vld [vmem:[#allocation8 + $0x288] ss:$16 sps:$4 sm:$0xff]  }
 0x298   :  { %3853 = vmatprep.subr.bf16.mxu1 %v9288_v43  ;;  %v9369_v43 = vld [vmem:[#allocation8 + $0x2a4] ss:$16 sps:$4 sm:$0xff]  }
 0x29a   :  { %3768 = vmatpush1.bf16.msra.mxu0 %v9283_v44  ;;  %v9372_v44 = vld [vmem:[#allocation8 + $0x2ac] ss:$16 sps:$4 sm:$0xff]  }
 0x29b   :  { %3854 = vmatpush1.bf16.msra.mxu1 %v9286_v45  ;;  %3769 = vmatprep.subr.bf16.mxu0 %v9291_v46  ;;  %v9367_v45 = vld [vmem:[#allocation8 + $0x2a0] ss:$16 sps:$4 sm:$0xff]   ;;  %v9370_v46 = vld [vmem:[#allocation8 + $0x2a8] ss:$16 sps:$4 sm:$0xff]  }
 0x29c   :  { %3855 = vmatprep.subr.bf16.mxu1 %v9294_v47  ;;  %v9375_v47 = vld [vmem:[#allocation8 + $0x2c4] ss:$16 sps:$4 sm:$0xff]  }
 0x29e   :  { %3770 = vmatpush1.bf16.msra.mxu0 %v9289_v48  ;;  %v9378_v48 = vld [vmem:[#allocation8 + $0x2cc] ss:$16 sps:$4 sm:$0xff]  }
 0x29f   :  { %3856 = vmatpush1.bf16.msra.mxu1 %v9292_v49  ;;  %3771 = vmatprep.subr.bf16.mxu0 %v9297_v50  ;;  %v9373_v49 = vld [vmem:[#allocation8 + $0x2c0] ss:$16 sps:$4 sm:$0xff]   ;;  %v9376_v50 = vld [vmem:[#allocation8 + $0x2c8] ss:$16 sps:$4 sm:$0xff]  }
 0x2a0   :  { %3857 = vmatprep.subr.bf16.mxu1 %v9300_v51  ;;  %v9381_v51 = vld [vmem:[#allocation8 + $0x2e4] ss:$16 sps:$4 sm:$0xff]  }
 0x2a2   :  { %3772 = vmatpush1.bf16.msra.mxu0 %v9295_v52  ;;  %v9384_v52 = vld [vmem:[#allocation8 + $0x2ec] ss:$16 sps:$4 sm:$0xff]  }
 0x2a3   :  { %3858 = vmatpush1.bf16.msra.mxu1 %v9298_v53  ;;  %3773 = vmatprep.subr.bf16.mxu0 %v9303_v55  ;;  %v9379_v53 = vld [vmem:[#allocation8 + $0x2e0] ss:$16 sps:$4 sm:$0xff]   ;;  %v9382_v55 = vld [vmem:[#allocation8 + $0x2e8] ss:$16 sps:$4 sm:$0xff]  }
 0x2a4   :  { %3859 = vmatprep.subr.bf16.mxu1 %v9306_v56  ;;  %v9387_v56 = vld [vmem:[#allocation8 + $0x304] ss:$16 sps:$4 sm:$0xff]  }
 0x2a6   :  { %3774 = vmatpush1.bf16.msra.mxu0 %v9301_v57  ;;  %v9390_v57 = vld [vmem:[#allocation8 + $0x30c] ss:$16 sps:$4 sm:$0xff]  }
 0x2a7   :  { %3860 = vmatpush1.bf16.msra.mxu1 %v9304_v59  ;;  %3775 = vmatprep.subr.bf16.mxu0 %v9309_v60  ;;  %v9385_v59 = vld [vmem:[#allocation8 + $0x300] ss:$16 sps:$4 sm:$0xff]   ;;  %v9388_v60 = vld [vmem:[#allocation8 + $0x308] ss:$16 sps:$4 sm:$0xff]  }
 0x2a8   :  { %3861 = vmatprep.subr.bf16.mxu1 %v9312_v61  ;;  %v9393_v61 = vld [vmem:[#allocation8 + $0x324] ss:$16 sps:$4 sm:$0xff]  }
 0x2aa   :  { %3776 = vmatpush1.bf16.msra.mxu0 %v9307_v62  ;;  %v9396_v62 = vld [vmem:[#allocation8 + $0x32c] ss:$16 sps:$4 sm:$0xff]  }
 0x2ab   :  { %3862 = vmatpush1.bf16.msra.mxu1 %v9310_v63  ;;  %3777 = vmatprep.subr.bf16.mxu0 %v9315_v0  ;;  %v9391_v63 = vld [vmem:[#allocation8 + $0x320] ss:$16 sps:$4 sm:$0xff]   ;;  %v9394_v0 = vld [vmem:[#allocation8 + $0x328] ss:$16 sps:$4 sm:$0xff]  }
 0x2ac   :  { %3863 = vmatprep.subr.bf16.mxu1 %v9318_v1  ;;  %v9399_v1 = vld [vmem:[#allocation8 + $0x344] ss:$16 sps:$4 sm:$0xff]  }
 0x2ae   :  { %3778 = vmatpush1.bf16.msra.mxu0 %v9313_v2  ;;  %v9402_v2 = vld [vmem:[#allocation8 + $0x34c] ss:$16 sps:$4 sm:$0xff]  }
 0x2af   :  { %3864 = vmatpush1.bf16.msra.mxu1 %v9316_v3  ;;  %3779 = vmatprep.subr.bf16.mxu0 %v9321_v4  ;;  %v9397_v3 = vld [vmem:[#allocation8 + $0x340] ss:$16 sps:$4 sm:$0xff]   ;;  %v9400_v4 = vld [vmem:[#allocation8 + $0x348] ss:$16 sps:$4 sm:$0xff]  }
 0x2b0   :  { %3865 = vmatprep.subr.bf16.mxu1 %v9324_v5  ;;  %v9405_v5 = vld [vmem:[#allocation8 + $0x364] ss:$16 sps:$4 sm:$0xff]  }
 0x2b2   :  { %3780 = vmatpush1.bf16.msra.mxu0 %v9319_v6  ;;  %v9408_v6 = vld [vmem:[#allocation8 + $0x36c] ss:$16 sps:$4 sm:$0xff]  }
 0x2b3   :  { %3866 = vmatpush1.bf16.msra.mxu1 %v9322_v7  ;;  %3781 = vmatprep.subr.bf16.mxu0 %v9327_v8  ;;  %v9403_v7 = vld [vmem:[#allocation8 + $0x360] ss:$16 sps:$4 sm:$0xff]   ;;  %v9406_v8 = vld [vmem:[#allocation8 + $0x368] ss:$16 sps:$4 sm:$0xff]  }
 0x2b4   :  { %3867 = vmatprep.subr.bf16.mxu1 %v9330_v9  ;;  %v9411_v9 = vld [vmem:[#allocation8 + $0x384] ss:$16 sps:$4 sm:$0xff]  }
 0x2b6   :  { %3782 = vmatpush1.bf16.msra.mxu0 %v9325_v11  ;;  %v9414_v11 = vld [vmem:[#allocation8 + $0x38c] ss:$16 sps:$4 sm:$0xff]  }
 0x2b7   :  { %3868 = vmatpush1.bf16.msra.mxu1 %v9328_v16  ;;  %3783 = vmatprep.subr.bf16.mxu0 %v9333_v17  ;;  %v9409_v16 = vld [vmem:[#allocation8 + $0x380] ss:$16 sps:$4 sm:$0xff]   ;;  %v9412_v17 = vld [vmem:[#allocation8 + $0x388] ss:$16 sps:$4 sm:$0xff]  }
 0x2b8   :  { %3869 = vmatprep.subr.bf16.mxu1 %v9336_v18  ;;  %v9417_v18 = vld [vmem:[#allocation8 + $0x3a4] ss:$16 sps:$4 sm:$0xff]  }
 0x2ba   :  { %3784 = vmatpush1.bf16.msra.mxu0 %v9331_v19  ;;  %v9420_v19 = vld [vmem:[#allocation8 + $0x3ac] ss:$16 sps:$4 sm:$0xff]  }
 0x2bb   :  { %3870 = vmatpush1.bf16.msra.mxu1 %v9334_v20  ;;  %3796 = vmatprep.subr.bf16.mxu0 %v9339_v21  ;;  %v9415_v20 = vld [vmem:[#allocation8 + $0x3a0] ss:$16 sps:$4 sm:$0xff]   ;;  %v9418_v21 = vld [vmem:[#allocation8 + $0x3a8] ss:$16 sps:$4 sm:$0xff]  }
 0x2bc   :  { %3882 = vmatprep.subr.bf16.mxu1 %v9342_v22  ;;  %v9423_v22 = vld [vmem:[#allocation8 + $0x3c4] ss:$16 sps:$4 sm:$0xff]  }
 0x2bd   :  { %3786 = vmatmul.mubr.bf16.vlgmr.msra.gmra.mrb[8].mxu0 %v10110_v10 }
 0x2be   :  { %3872 = vmatmul.mubr.bf16.vlgmr.msra.gmra.mrb[8].mxu1 %v10110_v10  ;;  %3797 = vmatpush1.bf16.msra.mxu0 %v9337_v54  ;;  %v9360_v10 = vld [vmem:[#allocation8 + $0x26c] ss:$16 sps:$4 sm:$0xff]  }
 0x2bf   :  { %3828 = vmatprep.mubr.bf16.mxu0 %v10116_v14  ;;  %3883 = vmatpush1.bf16.msra.mxu1 %v9340_v23  ;;  %v9426_v54 = vld [vmem:[#allocation8 + $0x3cc] ss:$16 sps:$4 sm:$0xff]   ;;  %v9421_v23 = vld [vmem:[#allocation8 + $0x3c0] ss:$16 sps:$4 sm:$0xff]  }
 0x2c0   :  { %3914 = vmatprep.mubr.bf16.mxu1 %v10116_v14  ;;  %3798 = vmatprep.subr.bf16.mxu0 %v9345_v24  ;;  %v9361_v14 = vld [vmem:[#allocation8 + $0x280] ss:$16 sps:$4 sm:$0xff]   ;;  %v9424_v24 = vld [vmem:[#allocation8 + $0x3c8] ss:$16 sps:$4 sm:$0xff]  }
 0x2c1   :  { %3884 = vmatprep.subr.bf16.mxu1 %v9348_v26  ;;  %v9429_v26 = vld [vmem:[#allocation8 + $0x3e4] ss:$16 sps:$4 sm:$0xff]  }
 0x2c2   :  { %3799 = vmatpush1.bf16.msra.mxu0 %v9343_v13  ;;  %v9432_v13 = vld [vmem:[#allocation8 + $0x3ec] ss:$16 sps:$4 sm:$0xff]  }
 0x2c3   :  { %3885 = vmatpush1.bf16.msra.mxu1 %v9346_v27  ;;  %3800 = vmatprep.subr.bf16.mxu0 %v9351_v29  ;;  %v3925_v27 = vld [vmem:[#allocation5 + $0x20] sm:$0xff] }
 0x2c4   :  { %3886 = vmatprep.subr.bf16.mxu1 %v9354_v30  ;;  %v3927_v29 = vld [vmem:[#allocation5 + $0x60] sm:$0xff]  ;;  %v3926_v30 = vld [vmem:[#allocation5 + $0x28] sm:$0xff] }
 0x2c6   :  { %3801 = vmatpush1.bf16.msra.mxu0 %v9349_v31  ;;  %v3928_v31 = vld [vmem:[#allocation5 + $0x68] sm:$0xff] }
 0x2c7   :  { %3887 = vmatpush1.bf16.msra.mxu1 %v9352_v32  ;;  %3802 = vmatprep.subr.bf16.mxu0 %v9357_v34  ;;  %v9427_v32 = vld [vmem:[#allocation8 + $0x3e0] ss:$16 sps:$4 sm:$0xff]   ;;  %v9430_v34 = vld [vmem:[#allocation8 + $0x3e8] ss:$16 sps:$4 sm:$0xff]  }
 0x2c8   :  { %3888 = vmatprep.subr.bf16.mxu1 %v9360_v10  ;;  %v8406_v10 = vcombine.high %v3925_v27, %v3927_v29 }
 0x2ca   :  { %3803 = vmatpush1.bf16.msra.mxu0 %v9355_v38  ;;  %v8408_v38 = vcombine.high %v3926_v30, %v3928_v31 }
 0x2cb   :  { %3889 = vmatpush1.bf16.msra.mxu1 %v9358_v39  ;;  %3804 = vmatprep.subr.bf16.mxu0 %v9363_v40  ;;  %v3929_v39 = vld [vmem:[#allocation5 + $0xa0] sm:$0xff] }
 0x2cc   :  { %3890 = vmatprep.subr.bf16.mxu1 %v9366_v41  ;;  %v3931_v40 = vld [vmem:[#allocation5 + $0xe0] sm:$0xff]  ;;  %v3930_v41 = vld [vmem:[#allocation5 + $0xa8] sm:$0xff] }
 0x2ce   :  { %3805 = vmatpush1.bf16.msra.mxu0 %v9361_v14  ;;  %v3932_v14 = vld [vmem:[#allocation5 + $0xe8] sm:$0xff] }
 0x2cf   :  { %3891 = vmatpush1.bf16.msra.mxu1 %v9364_v42  ;;  %3806 = vmatprep.subr.bf16.mxu0 %v9369_v43  ;;  %v8405_v42 = vcombine.low %v3925_v27, %v3927_v29  ;;  %v8407_v43 = vcombine.low %v3926_v30, %v3928_v31  ;;  %v3953_v27 = vld [vmem:[#allocation5 + $0x3a0] sm:$0xff]  ;;  %v3954_v30 = vld [vmem:[#allocation5 + $0x3a8] sm:$0xff] }
 0x2d0   :  { %3892 = vmatprep.subr.bf16.mxu1 %v9372_v44  ;;  %v8410_v44 = vcombine.high %v3929_v39, %v3931_v40  ;;  %v3955_v29 = vld [vmem:[#allocation5 + $0x3e0] sm:$0xff]  ;;  %v3956_v31 = vld [vmem:[#allocation5 + $0x3e8] sm:$0xff] }
 0x2d2   :  { %3807 = vmatpush1.bf16.msra.mxu0 %v9367_v45  ;;  %v8412_v45 = vcombine.high %v3930_v41, %v3932_v14 }
 0x2d3   :  { %3893 = vmatpush1.bf16.msra.mxu1 %v9370_v46  ;;  %3808 = vmatprep.subr.bf16.mxu0 %v9375_v47  ;;  %v3933_v46 = vld [vmem:[#allocation5 + $0x120] sm:$0xff] }
 0x2d4   :  { %3894 = vmatprep.subr.bf16.mxu1 %v9378_v48  ;;  %v3935_v47 = vld [vmem:[#allocation5 + $0x160] sm:$0xff]  ;;  %v3934_v48 = vld [vmem:[#allocation5 + $0x128] sm:$0xff] }
 0x2d6   :  { %3809 = vmatpush1.bf16.msra.mxu0 %v9373_v49  ;;  %v3936_v49 = vld [vmem:[#allocation5 + $0x168] sm:$0xff] }
 0x2d7   :  { %3895 = vmatpush1.bf16.msra.mxu1 %v9376_v50  ;;  %3810 = vmatprep.subr.bf16.mxu0 %v9381_v51  ;;  %v8409_v50 = vcombine.low %v3929_v39, %v3931_v40  ;;  %v8411_v51 = vcombine.low %v3930_v41, %v3932_v14  ;;  %v3957_v39 = vld [vmem:[#allocation5 + $0x420] sm:$0xff]  ;;  %v3958_v41 = vld [vmem:[#allocation5 + $0x428] sm:$0xff] }
 0x2d8   :  { %3896 = vmatprep.subr.bf16.mxu1 %v9384_v52  ;;  %v8414_v52 = vcombine.high %v3933_v46, %v3935_v47  ;;  %v3959_v40 = vld [vmem:[#allocation5 + $0x460] sm:$0xff]  ;;  %v3960_v14 = vld [vmem:[#allocation5 + $0x468] sm:$0xff] }
 0x2da   :  { %3811 = vmatpush1.bf16.msra.mxu0 %v9379_v53  ;;  %v8416_v53 = vcombine.high %v3934_v48, %v3936_v49 }
 0x2db   :  { %3897 = vmatpush1.bf16.msra.mxu1 %v9382_v55  ;;  %3812 = vmatprep.subr.bf16.mxu0 %v9387_v56  ;;  %v3937_v55 = vld [vmem:[#allocation5 + $0x1a0] sm:$0xff] }
 0x2dc   :  { %3898 = vmatprep.subr.bf16.mxu1 %v9390_v57  ;;  %v3939_v56 = vld [vmem:[#allocation5 + $0x1e0] sm:$0xff]  ;;  %v3938_v57 = vld [vmem:[#allocation5 + $0x1a8] sm:$0xff] }
 0x2de   :  { %3813 = vmatpush1.bf16.msra.mxu0 %v9385_v59  ;;  %v3940_v59 = vld [vmem:[#allocation5 + $0x1e8] sm:$0xff] }
 0x2df   :  { %3899 = vmatpush1.bf16.msra.mxu1 %v9388_v60  ;;  %3814 = vmatprep.subr.bf16.mxu0 %v9393_v61  ;;  %v8413_v60 = vcombine.low %v3933_v46, %v3935_v47  ;;  %v8418_v61 = vcombine.high %v3937_v55, %v3939_v56  ;;  %v3961_v46 = vld [vmem:[#allocation5 + $0x4a0] sm:$0xff] }
 0x2e0   :  { %3900 = vmatprep.subr.bf16.mxu1 %v9396_v62  ;;  %v8420_v62 = vcombine.high %v3938_v57, %v3940_v59  ;;  %v3963_v47 = vld [vmem:[#allocation5 + $0x4e0] sm:$0xff] }
 0x2e2   :  { %3815 = vmatpush1.bf16.msra.mxu0 %v9391_v63  ;;  %v3941_v63 = vld [vmem:[#allocation5 + $0x220] sm:$0xff] }
 0x2e3   :  { %3901 = vmatpush1.bf16.msra.mxu1 %v9394_v0  ;;  %3816 = vmatprep.subr.bf16.mxu0 %v9399_v1  ;;  %v3943_v0 = vld [vmem:[#allocation5 + $0x260] sm:$0xff]  ;;  %v3942_v1 = vld [vmem:[#allocation5 + $0x228] sm:$0xff] }
 0x2e4   :  { %3902 = vmatprep.subr.bf16.mxu1 %v9402_v2  ;;  %v3944_v2 = vld [vmem:[#allocation5 + $0x268] sm:$0xff] }
 0x2e6   :  { %3817 = vmatpush1.bf16.msra.mxu0 %v9397_v3  ;;  %v8417_v3 = vcombine.low %v3937_v55, %v3939_v56  ;;  %v3965_v55 = vld [vmem:[#allocation5 + $0x520] sm:$0xff] }
 0x2e7   :  { %3903 = vmatpush1.bf16.msra.mxu1 %v9400_v4  ;;  %3818 = vmatprep.subr.bf16.mxu0 %v9405_v5  ;;  %v8419_v4 = vcombine.low %v3938_v57, %v3940_v59  ;;  %v8422_v5 = vcombine.high %v3941_v63, %v3943_v0  ;;  %v3967_v56 = vld [vmem:[#allocation5 + $0x560] sm:$0xff]  ;;  %v3966_v57 = vld [vmem:[#allocation5 + $0x528] sm:$0xff] }
 0x2e8   :  { %3904 = vmatprep.subr.bf16.mxu1 %v9408_v6  ;;  %v8424_v6 = vcombine.high %v3942_v1, %v3944_v2  ;;  %v3968_v59 = vld [vmem:[#allocation5 + $0x568] sm:$0xff] }
 0x2ea   :  { %3819 = vmatpush1.bf16.msra.mxu0 %v9403_v7  ;;  %v3945_v7 = vld [vmem:[#allocation5 + $0x2a0] sm:$0xff] }
 0x2eb   :  { %3905 = vmatpush1.bf16.msra.mxu1 %v9406_v8  ;;  %3820 = vmatprep.subr.bf16.mxu0 %v9411_v9  ;;  %v3947_v8 = vld [vmem:[#allocation5 + $0x2e0] sm:$0xff]  ;;  %v3946_v9 = vld [vmem:[#allocation5 + $0x2a8] sm:$0xff] }
 0x2ec   :  { %3906 = vmatprep.subr.bf16.mxu1 %v9414_v11  ;;  %v3948_v11 = vld [vmem:[#allocation5 + $0x2e8] sm:$0xff] }
 0x2ee   :  { %3821 = vmatpush1.bf16.msra.mxu0 %v9409_v16  ;;  %v8421_v16 = vcombine.low %v3941_v63, %v3943_v0  ;;  %v3969_v63 = vld [vmem:[#allocation5 + $0x5a0] sm:$0xff] }
 0x2ef   :  { %3907 = vmatpush1.bf16.msra.mxu1 %v9412_v17  ;;  %3822 = vmatprep.subr.bf16.mxu0 %v9417_v18  ;;  %v8423_v17 = vcombine.low %v3942_v1, %v3944_v2  ;;  %v8426_v18 = vcombine.high %v3945_v7, %v3947_v8  ;;  %v3971_v0 = vld [vmem:[#allocation5 + $0x5e0] sm:$0xff]  ;;  %v3970_v1 = vld [vmem:[#allocation5 + $0x5a8] sm:$0xff] }
 0x2f0   :  { %3908 = vmatprep.subr.bf16.mxu1 %v9420_v19  ;;  %v8428_v19 = vcombine.high %v3946_v9, %v3948_v11  ;;  %v3972_v2 = vld [vmem:[#allocation5 + $0x5e8] sm:$0xff] }
 0x2f2   :  { %3823 = vmatpush1.bf16.msra.mxu0 %v9415_v20  ;;  %v3949_v20 = vld [vmem:[#allocation5 + $0x320] sm:$0xff] }
 0x2f3   :  { %3909 = vmatpush1.bf16.msra.mxu1 %v9418_v21  ;;  %3824 = vmatprep.subr.bf16.mxu0 %v9423_v22  ;;  %v3951_v21 = vld [vmem:[#allocation5 + $0x360] sm:$0xff]  ;;  %v3950_v22 = vld [vmem:[#allocation5 + $0x328] sm:$0xff] }
 0x2f4   :  { %3910 = vmatprep.subr.bf16.mxu1 %v9426_v54  ;;  %v3952_v54 = vld [vmem:[#allocation5 + $0x368] sm:$0xff] }
 0x2f6   :  { %3825 = vmatpush1.bf16.msra.mxu0 %v9421_v23  ;;  %v8425_v23 = vcombine.low %v3945_v7, %v3947_v8  ;;  %v3973_v7 = vld [vmem:[#allocation5 + $0x620] sm:$0xff] }
 0x2f7   :  { %3911 = vmatpush1.bf16.msra.mxu1 %v9424_v24  ;;  %3826 = vmatprep.subr.bf16.mxu0 %v9429_v26  ;;  %v8427_v24 = vcombine.low %v3946_v9, %v3948_v11  ;;  %v8430_v26 = vcombine.high %v3949_v20, %v3951_v21  ;;  %v3975_v8 = vld [vmem:[#allocation5 + $0x660] sm:$0xff]  ;;  %v3974_v9 = vld [vmem:[#allocation5 + $0x628] sm:$0xff] }
 0x2f8   :  { %3912 = vmatprep.subr.bf16.mxu1 %v9432_v13  ;;  %v8432_v13 = vcombine.high %v3950_v22, %v3952_v54  ;;  %v3976_v11 = vld [vmem:[#allocation5 + $0x668] sm:$0xff] }
 0x2fa   :  { %3827 = vmatpush1.bf16.msra.mxu0 %v9427_v32  ;;  %v8429_v32 = vcombine.low %v3949_v20, %v3951_v21  ;;  %v3977_v20 = vld [vmem:[#allocation5 + $0x6a0] sm:$0xff] }
 0x2fb   :  { %3913 = vmatpush1.bf16.msra.mxu1 %v9430_v34  ;;  %4715 = vmatprep.subr.bf16.mxu0 %v8406_v10  ;;  %v8431_v34 = vcombine.low %v3950_v22, %v3952_v54  ;;  %v8434_v10 = vcombine.high %v3953_v27, %v3955_v29  ;;  %v3979_v21 = vld [vmem:[#allocation5 + $0x6e0] sm:$0xff]  ;;  %v3978_v22 = vld [vmem:[#allocation5 + $0x6a8] sm:$0xff] }
 0x2fc   :  { %4801 = vmatprep.subr.bf16.mxu1 %v8408_v38  ;;  %v8436_v38 = vcombine.high %v3954_v30, %v3956_v31  ;;  %v3980_v54 = vld [vmem:[#allocation5 + $0x6e8] sm:$0xff] }
 0x2fd   :  { %3829 = vmatmul.mubr.bf16.vlgmr.msra.gmra.mrb[8].mxu0 %v10112_v12 }
 0x2fe   :  { %3915 = vmatmul.mubr.bf16.vlgmr.msra.gmra.mrb[8].mxu1 %v10112_v12  ;;  %4716 = vmatpush1.bf16.msra.mxu0 %v8405_v42  ;;  %v8415_v12 = vcombine.low %v3934_v48, %v3936_v49  ;;  %v8433_v42 = vcombine.low %v3953_v27, %v3955_v29  ;;  %v3962_v48 = vld [vmem:[#allocation5 + $0x4a8] sm:$0xff]  ;;  %v3981_v27 = vld [vmem:[#allocation5 + $0x720] sm:$0xff] }
 0x2ff   :  { %4802 = vmatpush1.bf16.msra.mxu1 %v8407_v43  ;;  %4717 = vmatprep.subr.bf16.mxu0 %v8410_v44  ;;  %v8435_v43 = vcombine.low %v3954_v30, %v3956_v31  ;;  %v8438_v44 = vcombine.high %v3957_v39, %v3959_v40  ;;  %v3964_v49 = vld [vmem:[#allocation5 + $0x4e8] sm:$0xff]  ;;  %v3983_v29 = vld [vmem:[#allocation5 + $0x760] sm:$0xff] }
 0x300   :  { %4803 = vmatprep.subr.bf16.mxu1 %v8412_v45  ;;  %4747 = vmatprep.mubr.bf16.mxu0 %v10074_v58  ;;  %v8440_v45 = vcombine.high %v3958_v41, %v3960_v14  ;;  %v3982_v30 = vld [vmem:[#allocation5 + $0x728] sm:$0xff] }
 0x301   :  { %4833 = vmatprep.mubr.bf16.mxu1 %v10074_v58  ;;  %v3984_v31 = vld [vmem:[#allocation5 + $0x768] sm:$0xff] }
 0x302   :  { %4718 = vmatpush1.bf16.msra.mxu0 %v8409_v50  ;;  %v8437_v50 = vcombine.low %v3957_v39, %v3959_v40  ;;  %v3985_v39 = vld [vmem:[#allocation5 + $0x7a0] sm:$0xff] }
 0x303   :  { %4804 = vmatpush1.bf16.msra.mxu1 %v8411_v51  ;;  %4719 = vmatprep.subr.bf16.mxu0 %v8414_v52  ;;  %v8439_v51 = vcombine.low %v3958_v41, %v3960_v14  ;;  %v8442_v52 = vcombine.high %v3961_v46, %v3963_v47  ;;  %v3987_v40 = vld [vmem:[#allocation5 + $0x7e0] sm:$0xff]  ;;  %v3986_v41 = vld [vmem:[#allocation5 + $0x7a8] sm:$0xff] }
 0x304   :  { %4805 = vmatprep.subr.bf16.mxu1 %v8416_v53  ;;  %v8444_v53 = vcombine.high %v3962_v48, %v3964_v49  ;;  %v3988_v14 = vld [vmem:[#allocation5 + $0x7e8] sm:$0xff] }
 0x306   :  { %4720 = vmatpush1.bf16.msra.mxu0 %v8413_v60  ;;  %v8441_v60 = vcombine.low %v3961_v46, %v3963_v47  ;;  %v3989_v46 = vld [vmem:[#allocation5 + $0x820] sm:$0xff] }
 0x307   :  { %4806 = vmatpush1.bf16.msra.mxu1 %v8415_v12  ;;  %4721 = vmatprep.subr.bf16.mxu0 %v8418_v61  ;;  %v8443_v12 = vcombine.low %v3962_v48, %v3964_v49  ;;  %v8446_v61 = vcombine.high %v3965_v55, %v3967_v56  ;;  %v3991_v47 = vld [vmem:[#allocation5 + $0x860] sm:$0xff]  ;;  %v3990_v48 = vld [vmem:[#allocation5 + $0x828] sm:$0xff] }
 0x308   :  { %4807 = vmatprep.subr.bf16.mxu1 %v8420_v62  ;;  %v8448_v62 = vcombine.high %v3966_v57, %v3968_v59  ;;  %v3992_v49 = vld [vmem:[#allocation5 + $0x868] sm:$0xff] }
 0x30a   :  { %4722 = vmatpush1.bf16.msra.mxu0 %v8417_v3  ;;  %v8445_v3 = vcombine.low %v3965_v55, %v3967_v56  ;;  %v3993_v55 = vld [vmem:[#allocation5 + $0x8a0] sm:$0xff] }
 0x30b   :  { %4808 = vmatpush1.bf16.msra.mxu1 %v8419_v4  ;;  %4723 = vmatprep.subr.bf16.mxu0 %v8422_v5  ;;  %v8447_v4 = vcombine.low %v3966_v57, %v3968_v59  ;;  %v8450_v5 = vcombine.high %v3969_v63, %v3971_v0  ;;  %v3995_v56 = vld [vmem:[#allocation5 + $0x8e0] sm:$0xff]  ;;  %v3994_v57 = vld [vmem:[#allocation5 + $0x8a8] sm:$0xff] }
 0x30c   :  { %4809 = vmatprep.subr.bf16.mxu1 %v8424_v6  ;;  %v8452_v6 = vcombine.high %v3970_v1, %v3972_v2  ;;  %v3996_v59 = vld [vmem:[#allocation5 + $0x8e8] sm:$0xff] }
 0x30e   :  { %4724 = vmatpush1.bf16.msra.mxu0 %v8421_v16  ;;  %v8449_v16 = vcombine.low %v3969_v63, %v3971_v0  ;;  %v3997_v63 = vld [vmem:[#allocation5 + $0x920] sm:$0xff] }
 0x30f   :  { %4810 = vmatpush1.bf16.msra.mxu1 %v8423_v17  ;;  %4725 = vmatprep.subr.bf16.mxu0 %v8426_v18  ;;  %v8451_v17 = vcombine.low %v3970_v1, %v3972_v2  ;;  %v8454_v18 = vcombine.high %v3973_v7, %v3975_v8  ;;  %v3999_v0 = vld [vmem:[#allocation5 + $0x960] sm:$0xff]  ;;  %v3998_v1 = vld [vmem:[#allocation5 + $0x928] sm:$0xff] }
 0x310   :  { %4811 = vmatprep.subr.bf16.mxu1 %v8428_v19  ;;  %v8456_v19 = vcombine.high %v3974_v9, %v3976_v11  ;;  %v4000_v2 = vld [vmem:[#allocation5 + $0x968] sm:$0xff] }
 0x312   :  { %4726 = vmatpush1.bf16.msra.mxu0 %v8425_v23  ;;  %v8453_v23 = vcombine.low %v3973_v7, %v3975_v8  ;;  %v4001_v7 = vld [vmem:[#allocation5 + $0x9a0] sm:$0xff] }
 0x313   :  { %4812 = vmatpush1.bf16.msra.mxu1 %v8427_v24  ;;  %4727 = vmatprep.subr.bf16.mxu0 %v8430_v26  ;;  %v8455_v24 = vcombine.low %v3974_v9, %v3976_v11  ;;  %v8458_v26 = vcombine.high %v3977_v20, %v3979_v21  ;;  %v4003_v8 = vld [vmem:[#allocation5 + $0x9e0] sm:$0xff]  ;;  %v4002_v9 = vld [vmem:[#allocation5 + $0x9a8] sm:$0xff] }
 0x314   :  { %4813 = vmatprep.subr.bf16.mxu1 %v8432_v13  ;;  %v8460_v13 = vcombine.high %v3978_v22, %v3980_v54  ;;  %v4004_v11 = vld [vmem:[#allocation5 + $0x9e8] sm:$0xff] }
 0x316   :  { %4728 = vmatpush1.bf16.msra.mxu0 %v8429_v32  ;;  %v8457_v32 = vcombine.low %v3977_v20, %v3979_v21  ;;  %v4005_v20 = vld [vmem:[#allocation5 + $0xa20] sm:$0xff] }
 0x317   :  { %4814 = vmatpush1.bf16.msra.mxu1 %v8431_v34  ;;  %4729 = vmatprep.subr.bf16.mxu0 %v8434_v10  ;;  %v8459_v34 = vcombine.low %v3978_v22, %v3980_v54  ;;  %v8462_v10 = vcombine.high %v3981_v27, %v3983_v29  ;;  %v4007_v21 = vld [vmem:[#allocation5 + $0xa60] sm:$0xff]  ;;  %v4006_v22 = vld [vmem:[#allocation5 + $0xa28] sm:$0xff] }
 0x318   :  { %4815 = vmatprep.subr.bf16.mxu1 %v8436_v38  ;;  %v8464_v38 = vcombine.high %v3982_v30, %v3984_v31  ;;  %v4008_v54 = vld [vmem:[#allocation5 + $0xa68] sm:$0xff] }
 0x31a   :  { %4730 = vmatpush1.bf16.msra.mxu0 %v8433_v42  ;;  %v8461_v42 = vcombine.low %v3981_v27, %v3983_v29  ;;  %v4009_v27 = vld [vmem:[#allocation5 + $0xaa0] sm:$0xff] }
 0x31b   :  { %4816 = vmatpush1.bf16.msra.mxu1 %v8435_v43  ;;  %4731 = vmatprep.subr.bf16.mxu0 %v8438_v44  ;;  %v8463_v43 = vcombine.low %v3982_v30, %v3984_v31  ;;  %v8466_v44 = vcombine.high %v3985_v39, %v3987_v40  ;;  %v4011_v29 = vld [vmem:[#allocation5 + $0xae0] sm:$0xff]  ;;  %v4010_v30 = vld [vmem:[#allocation5 + $0xaa8] sm:$0xff] }
 0x31c   :  { %4817 = vmatprep.subr.bf16.mxu1 %v8440_v45  ;;  %v8468_v45 = vcombine.high %v3986_v41, %v3988_v14  ;;  %v4012_v31 = vld [vmem:[#allocation5 + $0xae8] sm:$0xff] }
 0x31e   :  { %4732 = vmatpush1.bf16.msra.mxu0 %v8437_v50  ;;  %v8465_v50 = vcombine.low %v3985_v39, %v3987_v40  ;;  %v4013_v39 = vld [vmem:[#allocation5 + $0xb20] sm:$0xff] }
 0x31f   :  { %4818 = vmatpush1.bf16.msra.mxu1 %v8439_v51  ;;  %4733 = vmatprep.subr.bf16.mxu0 %v8442_v52  ;;  %v8467_v51 = vcombine.low %v3986_v41, %v3988_v14  ;;  %v8470_v52 = vcombine.high %v3989_v46, %v3991_v47  ;;  %v4015_v40 = vld [vmem:[#allocation5 + $0xb60] sm:$0xff]  ;;  %v4014_v41 = vld [vmem:[#allocation5 + $0xb28] sm:$0xff] }
 0x320   :  { %4819 = vmatprep.subr.bf16.mxu1 %v8444_v53  ;;  %v8472_v53 = vcombine.high %v3990_v48, %v3992_v49  ;;  %v4016_v14 = vld [vmem:[#allocation5 + $0xb68] sm:$0xff] }
 0x322   :  { %4734 = vmatpush1.bf16.msra.mxu0 %v8441_v60  ;;  %v8469_v60 = vcombine.low %v3989_v46, %v3991_v47  ;;  %v4017_v46 = vld [vmem:[#allocation5 + $0xba0] sm:$0xff] }
 0x323   :  { %4820 = vmatpush1.bf16.msra.mxu1 %v8443_v12  ;;  %4735 = vmatprep.subr.bf16.mxu0 %v8446_v61  ;;  %v8471_v12 = vcombine.low %v3990_v48, %v3992_v49  ;;  %v8474_v61 = vcombine.high %v3993_v55, %v3995_v56  ;;  %v4019_v47 = vld [vmem:[#allocation5 + $0xbe0] sm:$0xff]  ;;  %v4018_v48 = vld [vmem:[#allocation5 + $0xba8] sm:$0xff] }
 0x324   :  { %4821 = vmatprep.subr.bf16.mxu1 %v8448_v62  ;;  %v8476_v62 = vcombine.high %v3994_v57, %v3996_v59  ;;  %v4020_v49 = vld [vmem:[#allocation5 + $0xbe8] sm:$0xff] }
 0x326   :  { %4736 = vmatpush1.bf16.msra.mxu0 %v8445_v3  ;;  %v8473_v3 = vcombine.low %v3993_v55, %v3995_v56  ;;  %v4021_v55 = vld [vmem:[#allocation5 + $0xc20] sm:$0xff] }
 0x327   :  { %4822 = vmatpush1.bf16.msra.mxu1 %v8447_v4  ;;  %4737 = vmatprep.subr.bf16.mxu0 %v8450_v5  ;;  %v8475_v4 = vcombine.low %v3994_v57, %v3996_v59  ;;  %v8478_v5 = vcombine.high %v3997_v63, %v3999_v0  ;;  %v4023_v56 = vld [vmem:[#allocation5 + $0xc60] sm:$0xff]  ;;  %v4022_v57 = vld [vmem:[#allocation5 + $0xc28] sm:$0xff] }
 0x328   :  { %4823 = vmatprep.subr.bf16.mxu1 %v8452_v6  ;;  %v8480_v6 = vcombine.high %v3998_v1, %v4000_v2  ;;  %v4024_v59 = vld [vmem:[#allocation5 + $0xc68] sm:$0xff] }
 0x32a   :  { %4738 = vmatpush1.bf16.msra.mxu0 %v8449_v16  ;;  %v8477_v16 = vcombine.low %v3997_v63, %v3999_v0  ;;  %v4025_v63 = vld [vmem:[#allocation5 + $0xca0] sm:$0xff] }
 0x32b   :  { %4824 = vmatpush1.bf16.msra.mxu1 %v8451_v17  ;;  %4739 = vmatprep.subr.bf16.mxu0 %v8454_v18  ;;  %v8479_v17 = vcombine.low %v3998_v1, %v4000_v2  ;;  %v8482_v18 = vcombine.high %v4001_v7, %v4003_v8  ;;  %v4027_v0 = vld [vmem:[#allocation5 + $0xce0] sm:$0xff]  ;;  %v4026_v1 = vld [vmem:[#allocation5 + $0xca8] sm:$0xff] }
 0x32c   :  { %4825 = vmatprep.subr.bf16.mxu1 %v8456_v19  ;;  %v8484_v19 = vcombine.high %v4002_v9, %v4004_v11  ;;  %v4028_v2 = vld [vmem:[#allocation5 + $0xce8] sm:$0xff] }
 0x32e   :  { %4740 = vmatpush1.bf16.msra.mxu0 %v8453_v23  ;;  %v8481_v23 = vcombine.low %v4001_v7, %v4003_v8  ;;  %v4029_v7 = vld [vmem:[#allocation5 + $0xd20] sm:$0xff] }
 0x32f   :  { %4826 = vmatpush1.bf16.msra.mxu1 %v8455_v24  ;;  %4741 = vmatprep.subr.bf16.mxu0 %v8458_v26  ;;  %v8483_v24 = vcombine.low %v4002_v9, %v4004_v11  ;;  %v8486_v26 = vcombine.high %v4005_v20, %v4007_v21  ;;  %v4031_v8 = vld [vmem:[#allocation5 + $0xd60] sm:$0xff]  ;;  %v4030_v9 = vld [vmem:[#allocation5 + $0xd28] sm:$0xff] }
 0x330   :  { %4827 = vmatprep.subr.bf16.mxu1 %v8460_v13  ;;  %v8488_v13 = vcombine.high %v4006_v22, %v4008_v54  ;;  %v4032_v11 = vld [vmem:[#allocation5 + $0xd68] sm:$0xff] }
 0x332   :  { %4742 = vmatpush1.bf16.msra.mxu0 %v8457_v32  ;;  %v8485_v32 = vcombine.low %v4005_v20, %v4007_v21  ;;  %v4033_v20 = vld [vmem:[#allocation5 + $0xda0] sm:$0xff] }
 0x333   :  { %4828 = vmatpush1.bf16.msra.mxu1 %v8459_v34  ;;  %4743 = vmatprep.subr.bf16.mxu0 %v8462_v10  ;;  %v8487_v34 = vcombine.low %v4006_v22, %v4008_v54  ;;  %v8490_v10 = vcombine.high %v4009_v27, %v4011_v29  ;;  %v4035_v21 = vld [vmem:[#allocation5 + $0xde0] sm:$0xff]  ;;  %v4034_v22 = vld [vmem:[#allocation5 + $0xda8] sm:$0xff] }
 0x334   :  { %4829 = vmatprep.subr.bf16.mxu1 %v8464_v38  ;;  %v8492_v38 = vcombine.high %v4010_v30, %v4012_v31  ;;  %v4036_v54 = vld [vmem:[#allocation5 + $0xde8] sm:$0xff] }
 0x336   :  { %4744 = vmatpush1.bf16.msra.mxu0 %v8461_v42  ;;  %v8489_v42 = vcombine.low %v4009_v27, %v4011_v29  ;;  %v4037_v27 = vld [vmem:[#allocation5 + $0xe20] sm:$0xff] }
 0x337   :  { %4830 = vmatpush1.bf16.msra.mxu1 %v8463_v43  ;;  %4745 = vmatprep.subr.bf16.mxu0 %v8466_v44  ;;  %v8491_v43 = vcombine.low %v4010_v30, %v4012_v31  ;;  %v8494_v44 = vcombine.high %v4013_v39, %v4015_v40  ;;  %v4039_v29 = vld [vmem:[#allocation5 + $0xe60] sm:$0xff]  ;;  %v4038_v30 = vld [vmem:[#allocation5 + $0xe28] sm:$0xff] }
 0x338   :  { %4831 = vmatprep.subr.bf16.mxu1 %v8468_v45  ;;  %v8496_v45 = vcombine.high %v4014_v41, %v4016_v14  ;;  %v4040_v31 = vld [vmem:[#allocation5 + $0xe68] sm:$0xff] }
 0x33a   :  { %4746 = vmatpush1.bf16.msra.mxu0 %v8465_v50  ;;  %v8493_v50 = vcombine.low %v4013_v39, %v4015_v40  ;;  %v4041_v39 = vld [vmem:[#allocation5 + $0xea0] sm:$0xff] }
 0x33b   :  { %4832 = vmatpush1.bf16.msra.mxu1 %v8467_v51  ;;  %4758 = vmatprep.subr.bf16.mxu0 %v8470_v52  ;;  %v8495_v51 = vcombine.low %v4014_v41, %v4016_v14  ;;  %v8498_v52 = vcombine.high %v4017_v46, %v4019_v47  ;;  %v4043_v40 = vld [vmem:[#allocation5 + $0xee0] sm:$0xff]  ;;  %v4042_v41 = vld [vmem:[#allocation5 + $0xea8] sm:$0xff] }
 0x33c   :  { %4844 = vmatprep.subr.bf16.mxu1 %v8472_v53  ;;  %v8500_v53 = vcombine.high %v4018_v48, %v4020_v49  ;;  %v4044_v14 = vld [vmem:[#allocation5 + $0xee8] sm:$0xff] }
 0x33d   :  { %4748 = vmatmul.mubr.bf16.vlgmr.msra.gmra.mrb[12].mxu0 %v10078_v15 }
 0x33e   :  { %4759 = vmatpush1.bf16.msra.mxu0 %v8469_v60  ;;  %4834 = vmatmul.mubr.bf16.vlgmr.msra.gmra.mrb[12].mxu1 %v10078_v15  ;;  %v8497_v60 = vcombine.low %v4017_v46, %v4019_v47  ;;  %v4045_v46 = vld [vmem:[#allocation5 + $0xf20] sm:$0xff] }
 0x33f   :  { %4845 = vmatpush1.bf16.msra.mxu1 %v8471_v12  ;;  %4760 = vmatprep.subr.bf16.mxu0 %v8474_v61  ;;  %v8499_v12 = vcombine.low %v4018_v48, %v4020_v49  ;;  %v8502_v61 = vcombine.high %v4021_v55, %v4023_v56  ;;  %v4047_v47 = vld [vmem:[#allocation5 + $0xf60] sm:$0xff]  ;;  %v4046_v48 = vld [vmem:[#allocation5 + $0xf28] sm:$0xff] }
 0x340   :  { %4846 = vmatprep.subr.bf16.mxu1 %v8476_v62  ;;  %4790 = vmatprep.mubr.bf16.mxu0 %v10080_v25  ;;  %v8504_v62 = vcombine.high %v4022_v57, %v4024_v59  ;;  %v4048_v49 = vld [vmem:[#allocation5 + $0xf68] sm:$0xff] }
 0x341   :  { %4876 = vmatprep.mubr.bf16.mxu1 %v10080_v25 }
 0x342   :  { %4761 = vmatpush1.bf16.msra.mxu0 %v8473_v3  ;;  %v8501_v3 = vcombine.low %v4021_v55, %v4023_v56  ;;  %v4049_v55 = vld [vmem:[#allocation5 + $0xfa0] sm:$0xff] }
 0x343   :  { %4847 = vmatpush1.bf16.msra.mxu1 %v8475_v4  ;;  %4762 = vmatprep.subr.bf16.mxu0 %v8478_v5  ;;  %v8503_v4 = vcombine.low %v4022_v57, %v4024_v59  ;;  %v8506_v5 = vcombine.high %v4025_v63, %v4027_v0  ;;  %v4051_v56 = vld [vmem:[#allocation5 + $0xfe0] sm:$0xff]  ;;  %v4050_v57 = vld [vmem:[#allocation5 + $0xfa8] sm:$0xff] }
 0x344   :  { %4848 = vmatprep.subr.bf16.mxu1 %v8480_v6  ;;  %v8508_v6 = vcombine.high %v4026_v1, %v4028_v2  ;;  %v4052_v59 = vld [vmem:[#allocation5 + $0xfe8] sm:$0xff] }
 0x346   :  { %4763 = vmatpush1.bf16.msra.mxu0 %v8477_v16  ;;  %v8505_v16 = vcombine.low %v4025_v63, %v4027_v0  ;;  %v8529_v63 = vcombine.low %v4049_v55, %v4051_v56  ;;  %v8531_v0 = vcombine.low %v4050_v57, %v4052_v59 }
 0x347   :  { %4849 = vmatpush1.bf16.msra.mxu1 %v8479_v17  ;;  %4764 = vmatprep.subr.bf16.mxu0 %v8482_v18  ;;  %v8507_v17 = vcombine.low %v4026_v1, %v4028_v2  ;;  %v8510_v18 = vcombine.high %v4029_v7, %v4031_v8  ;;  %v9435_v1 = vld [vmem:[#allocation8 + $0x804] ss:$16 sps:$4 sm:$0xff]   ;;  %v9438_v2 = vld [vmem:[#allocation8 + $0x80c] ss:$16 sps:$4 sm:$0xff]  }
 0x348   :  { %4850 = vmatprep.subr.bf16.mxu1 %v8484_v19  ;;  %v8512_v19 = vcombine.high %v4030_v9, %v4032_v11 }
 0x34a   :  { %4765 = vmatpush1.bf16.msra.mxu0 %v8481_v23  ;;  %v8509_v23 = vcombine.low %v4029_v7, %v4031_v8  ;;  %v9439_v7 = vld [vmem:[#allocation8 + $0x820] ss:$16 sps:$4 sm:$0xff]   ;;  %v9442_v8 = vld [vmem:[#allocation8 + $0x828] ss:$16 sps:$4 sm:$0xff]  }
 0x34b   :  { %4851 = vmatpush1.bf16.msra.mxu1 %v8483_v24  ;;  %4766 = vmatprep.subr.bf16.mxu0 %v8486_v26  ;;  %v8511_v24 = vcombine.low %v4030_v9, %v4032_v11  ;;  %v8514_v26 = vcombine.high %v4033_v20, %v4035_v21  ;;  %v9447_v9 = vld [vmem:[#allocation8 + $0x844] ss:$16 sps:$4 sm:$0xff]   ;;  %v9450_v11 = vld [vmem:[#allocation8 + $0x84c] ss:$16 sps:$4 sm:$0xff]  }
 0x34c   :  { %4852 = vmatprep.subr.bf16.mxu1 %v8488_v13  ;;  %v8516_v13 = vcombine.high %v4034_v22, %v4036_v54 }
 0x34e   :  { %4767 = vmatpush1.bf16.msra.mxu0 %v8485_v32  ;;  %v8513_v32 = vcombine.low %v4033_v20, %v4035_v21  ;;  %v9451_v20 = vld [vmem:[#allocation8 + $0x860] ss:$16 sps:$4 sm:$0xff]   ;;  %v9454_v21 = vld [vmem:[#allocation8 + $0x868] ss:$16 sps:$4 sm:$0xff]  }
 0x34f   :  { %4853 = vmatpush1.bf16.msra.mxu1 %v8487_v34  ;;  %4768 = vmatprep.subr.bf16.mxu0 %v8490_v10  ;;  %v8515_v34 = vcombine.low %v4034_v22, %v4036_v54  ;;  %v8518_v10 = vcombine.high %v4037_v27, %v4039_v29  ;;  %v9459_v22 = vld [vmem:[#allocation8 + $0x884] ss:$16 sps:$4 sm:$0xff]   ;;  %v9462_v54 = vld [vmem:[#allocation8 + $0x88c] ss:$16 sps:$4 sm:$0xff]  }
 0x350   :  { %4854 = vmatprep.subr.bf16.mxu1 %v8492_v38  ;;  %v8520_v38 = vcombine.high %v4038_v30, %v4040_v31 }
 0x352   :  { %4769 = vmatpush1.bf16.msra.mxu0 %v8489_v42  ;;  %v8517_v42 = vcombine.low %v4037_v27, %v4039_v29  ;;  %v9463_v27 = vld [vmem:[#allocation8 + $0x8a0] ss:$16 sps:$4 sm:$0xff]   ;;  %v9466_v29 = vld [vmem:[#allocation8 + $0x8a8] ss:$16 sps:$4 sm:$0xff]  }
 0x353   :  { %4855 = vmatpush1.bf16.msra.mxu1 %v8491_v43  ;;  %4770 = vmatprep.subr.bf16.mxu0 %v8494_v44  ;;  %v8519_v43 = vcombine.low %v4038_v30, %v4040_v31  ;;  %v8522_v44 = vcombine.high %v4041_v39, %v4043_v40  ;;  %v9471_v30 = vld [vmem:[#allocation8 + $0x8c4] ss:$16 sps:$4 sm:$0xff]   ;;  %v9474_v31 = vld [vmem:[#allocation8 + $0x8cc] ss:$16 sps:$4 sm:$0xff]  }
 0x354   :  { %4856 = vmatprep.subr.bf16.mxu1 %v8496_v45  ;;  %v8524_v45 = vcombine.high %v4042_v41, %v4044_v14 }
 0x356   :  { %4771 = vmatpush1.bf16.msra.mxu0 %v8493_v50  ;;  %v8521_v50 = vcombine.low %v4041_v39, %v4043_v40  ;;  %v9475_v39 = vld [vmem:[#allocation8 + $0x8e0] ss:$16 sps:$4 sm:$0xff]   ;;  %v9478_v40 = vld [vmem:[#allocation8 + $0x8e8] ss:$16 sps:$4 sm:$0xff]  }
 0x357   :  { %4857 = vmatpush1.bf16.msra.mxu1 %v8495_v51  ;;  %4772 = vmatprep.subr.bf16.mxu0 %v8498_v52  ;;  %v8523_v51 = vcombine.low %v4042_v41, %v4044_v14  ;;  %v8526_v52 = vcombine.high %v4045_v46, %v4047_v47  ;;  %v9483_v41 = vld [vmem:[#allocation8 + $0x904] ss:$16 sps:$4 sm:$0xff]   ;;  %v9486_v14 = vld [vmem:[#allocation8 + $0x90c] ss:$16 sps:$4 sm:$0xff]  }
 0x358   :  { %4858 = vmatprep.subr.bf16.mxu1 %v8500_v53  ;;  %v8528_v53 = vcombine.high %v4046_v48, %v4048_v49 }
 0x35a   :  { %4773 = vmatpush1.bf16.msra.mxu0 %v8497_v60  ;;  %v8525_v60 = vcombine.low %v4045_v46, %v4047_v47  ;;  %v9487_v46 = vld [vmem:[#allocation8 + $0x920] ss:$16 sps:$4 sm:$0xff]   ;;  %v9490_v47 = vld [vmem:[#allocation8 + $0x928] ss:$16 sps:$4 sm:$0xff]  }
 0x35b   :  { %4859 = vmatpush1.bf16.msra.mxu1 %v8499_v12  ;;  %4774 = vmatprep.subr.bf16.mxu0 %v8502_v61  ;;  %v8527_v12 = vcombine.low %v4046_v48, %v4048_v49  ;;  %v8530_v61 = vcombine.high %v4049_v55, %v4051_v56  ;;  %v9495_v48 = vld [vmem:[#allocation8 + $0x944] ss:$16 sps:$4 sm:$0xff]   ;;  %v9498_v49 = vld [vmem:[#allocation8 + $0x94c] ss:$16 sps:$4 sm:$0xff]   ;;  %v9499_v55 = vld [vmem:[#allocation8 + $0x960] ss:$16 sps:$4 sm:$0xff]  }
 0x35c   :  { %4860 = vmatprep.subr.bf16.mxu1 %v8504_v62  ;;  %v8532_v62 = vcombine.high %v4050_v57, %v4052_v59  ;;  %v9502_v56 = vld [vmem:[#allocation8 + $0x968] ss:$16 sps:$4 sm:$0xff]   ;;  %v9507_v57 = vld [vmem:[#allocation8 + $0x984] ss:$16 sps:$4 sm:$0xff]   ;;  %v9510_v59 = vld [vmem:[#allocation8 + $0x98c] ss:$16 sps:$4 sm:$0xff]  }
 0x35e   :  { %4775 = vmatpush1.bf16.msra.mxu0 %v8501_v3  ;;  %v9433_v3 = vld [vmem:[#allocation8 + $0x800] ss:$16 sps:$4 sm:$0xff]  }
 0x35f   :  { %4861 = vmatpush1.bf16.msra.mxu1 %v8503_v4  ;;  %4776 = vmatprep.subr.bf16.mxu0 %v8506_v5  ;;  %v9436_v4 = vld [vmem:[#allocation8 + $0x808] ss:$16 sps:$4 sm:$0xff]   ;;  %v9441_v5 = vld [vmem:[#allocation8 + $0x824] ss:$16 sps:$4 sm:$0xff]  }
 0x360   :  { %4862 = vmatprep.subr.bf16.mxu1 %v8508_v6  ;;  %v9444_v6 = vld [vmem:[#allocation8 + $0x82c] ss:$16 sps:$4 sm:$0xff]  }
 0x362   :  { %4777 = vmatpush1.bf16.msra.mxu0 %v8505_v16  ;;  %v9445_v16 = vld [vmem:[#allocation8 + $0x840] ss:$16 sps:$4 sm:$0xff]  }
 0x363   :  { %4863 = vmatpush1.bf16.msra.mxu1 %v8507_v17  ;;  %4778 = vmatprep.subr.bf16.mxu0 %v8510_v18  ;;  %v9448_v17 = vld [vmem:[#allocation8 + $0x848] ss:$16 sps:$4 sm:$0xff]   ;;  %v9453_v18 = vld [vmem:[#allocation8 + $0x864] ss:$16 sps:$4 sm:$0xff]  }
 0x364   :  { %4864 = vmatprep.subr.bf16.mxu1 %v8512_v19  ;;  %v9456_v19 = vld [vmem:[#allocation8 + $0x86c] ss:$16 sps:$4 sm:$0xff]  }
 0x366   :  { %4779 = vmatpush1.bf16.msra.mxu0 %v8509_v23  ;;  %v9457_v23 = vld [vmem:[#allocation8 + $0x880] ss:$16 sps:$4 sm:$0xff]  }
 0x367   :  { %4865 = vmatpush1.bf16.msra.mxu1 %v8511_v24  ;;  %4780 = vmatprep.subr.bf16.mxu0 %v8514_v26  ;;  %v9460_v24 = vld [vmem:[#allocation8 + $0x888] ss:$16 sps:$4 sm:$0xff]   ;;  %v9465_v26 = vld [vmem:[#allocation8 + $0x8a4] ss:$16 sps:$4 sm:$0xff]  }
 0x368   :  { %4866 = vmatprep.subr.bf16.mxu1 %v8516_v13  ;;  %v9468_v13 = vld [vmem:[#allocation8 + $0x8ac] ss:$16 sps:$4 sm:$0xff]  }
 0x36a   :  { %4781 = vmatpush1.bf16.msra.mxu0 %v8513_v32  ;;  %v9469_v32 = vld [vmem:[#allocation8 + $0x8c0] ss:$16 sps:$4 sm:$0xff]  }
 0x36b   :  { %4867 = vmatpush1.bf16.msra.mxu1 %v8515_v34  ;;  %4782 = vmatprep.subr.bf16.mxu0 %v8518_v10  ;;  %v9472_v34 = vld [vmem:[#allocation8 + $0x8c8] ss:$16 sps:$4 sm:$0xff]   ;;  %v9477_v10 = vld [vmem:[#allocation8 + $0x8e4] ss:$16 sps:$4 sm:$0xff]  }
 0x36c   :  { %4868 = vmatprep.subr.bf16.mxu1 %v8520_v38  ;;  %v9480_v38 = vld [vmem:[#allocation8 + $0x8ec] ss:$16 sps:$4 sm:$0xff]  }
 0x36e   :  { %4783 = vmatpush1.bf16.msra.mxu0 %v8517_v42  ;;  %v9481_v42 = vld [vmem:[#allocation8 + $0x900] ss:$16 sps:$4 sm:$0xff]  }
 0x36f   :  { %4869 = vmatpush1.bf16.msra.mxu1 %v8519_v43  ;;  %4784 = vmatprep.subr.bf16.mxu0 %v8522_v44  ;;  %v9484_v43 = vld [vmem:[#allocation8 + $0x908] ss:$16 sps:$4 sm:$0xff]   ;;  %v9489_v44 = vld [vmem:[#allocation8 + $0x924] ss:$16 sps:$4 sm:$0xff]  }
 0x370   :  { %4870 = vmatprep.subr.bf16.mxu1 %v8524_v45  ;;  %v9492_v45 = vld [vmem:[#allocation8 + $0x92c] ss:$16 sps:$4 sm:$0xff]  }
 0x372   :  { %4785 = vmatpush1.bf16.msra.mxu0 %v8521_v50  ;;  %v9493_v50 = vld [vmem:[#allocation8 + $0x940] ss:$16 sps:$4 sm:$0xff]  }
 0x373   :  { %4871 = vmatpush1.bf16.msra.mxu1 %v8523_v51  ;;  %4786 = vmatprep.subr.bf16.mxu0 %v8526_v52  ;;  %v9496_v51 = vld [vmem:[#allocation8 + $0x948] ss:$16 sps:$4 sm:$0xff]   ;;  %v9501_v52 = vld [vmem:[#allocation8 + $0x964] ss:$16 sps:$4 sm:$0xff]  }
 0x374   :  { %4872 = vmatprep.subr.bf16.mxu1 %v8528_v53  ;;  %v9504_v53 = vld [vmem:[#allocation8 + $0x96c] ss:$16 sps:$4 sm:$0xff]  }
 0x376   :  { %4787 = vmatpush1.bf16.msra.mxu0 %v8525_v60  ;;  %v9505_v60 = vld [vmem:[#allocation8 + $0x980] ss:$16 sps:$4 sm:$0xff]  }
 0x377   :  { %4873 = vmatpush1.bf16.msra.mxu1 %v8527_v12  ;;  %4788 = vmatprep.subr.bf16.mxu0 %v8530_v61  ;;  %v9508_v12 = vld [vmem:[#allocation8 + $0x988] ss:$16 sps:$4 sm:$0xff]   ;;  %v9513_v61 = vld [vmem:[#allocation8 + $0x9a4] ss:$16 sps:$4 sm:$0xff]  }
 0x378   :  { %4874 = vmatprep.subr.bf16.mxu1 %v8532_v62  ;;  %v9516_v62 = vld [vmem:[#allocation8 + $0x9ac] ss:$16 sps:$4 sm:$0xff]  }
 0x37a   :  { %4789 = vmatpush1.bf16.msra.mxu0 %v8529_v63  ;;  %v9511_v63 = vld [vmem:[#allocation8 + $0x9a0] ss:$16 sps:$4 sm:$0xff]  }
 0x37b   :  { %4875 = vmatpush1.bf16.msra.mxu1 %v8531_v0  ;;  %5667 = vmatprep.subr.bf16.mxu0 %v9435_v1  ;;  %v9514_v0 = vld [vmem:[#allocation8 + $0x9a8] ss:$16 sps:$4 sm:$0xff]   ;;  %v9519_v1 = vld [vmem:[#allocation8 + $0x9c4] ss:$16 sps:$4 sm:$0xff]  }
 0x37c   :  { %5753 = vmatprep.subr.bf16.mxu1 %v9438_v2  ;;  %v9522_v2 = vld [vmem:[#allocation8 + $0x9cc] ss:$16 sps:$4 sm:$0xff]  }
 0x37d   :  { %4791 = vmatmul.mubr.bf16.vlgmr.msra.gmra.mrb[12].mxu0 %v10086_v28 }
 0x37e   :  { %4877 = vmatmul.mubr.bf16.vlgmr.msra.gmra.mrb[12].mxu1 %v10086_v28  ;;  %5668 = vmatpush1.bf16.msra.mxu0 %v9433_v3  ;;  %v9517_v3 = vld [vmem:[#allocation8 + $0x9c0] ss:$16 sps:$4 sm:$0xff]  }
 0x37f   :  { %5754 = vmatpush1.bf16.msra.mxu1 %v9436_v4  ;;  %5669 = vmatprep.subr.bf16.mxu0 %v9441_v5  ;;  %v9520_v4 = vld [vmem:[#allocation8 + $0x9c8] ss:$16 sps:$4 sm:$0xff]   ;;  %v9525_v5 = vld [vmem:[#allocation8 + $0x9e4] ss:$16 sps:$4 sm:$0xff]  }
 0x380   :  { %5755 = vmatprep.subr.bf16.mxu1 %v9444_v6  ;;  %v9528_v6 = vld [vmem:[#allocation8 + $0x9ec] ss:$16 sps:$4 sm:$0xff]  }
 0x382   :  { %5670 = vmatpush1.bf16.msra.mxu0 %v9439_v7  ;;  %v9523_v7 = vld [vmem:[#allocation8 + $0x9e0] ss:$16 sps:$4 sm:$0xff]  }
 0x383   :  { %5756 = vmatpush1.bf16.msra.mxu1 %v9442_v8  ;;  %5671 = vmatprep.subr.bf16.mxu0 %v9447_v9  ;;  %v9526_v8 = vld [vmem:[#allocation8 + $0x9e8] ss:$16 sps:$4 sm:$0xff]   ;;  %v9531_v9 = vld [vmem:[#allocation8 + $0xa04] ss:$16 sps:$4 sm:$0xff]  }
 0x384   :  { %5757 = vmatprep.subr.bf16.mxu1 %v9450_v11  ;;  %v9534_v11 = vld [vmem:[#allocation8 + $0xa0c] ss:$16 sps:$4 sm:$0xff]  }
 0x386   :  { %5672 = vmatpush1.bf16.msra.mxu0 %v9445_v16  ;;  %v4053_v16 = vld [vmem:[#allocation7 + $0x8] sm:$0xf] }
 0x387   :  { %5758 = vmatpush1.bf16.msra.mxu1 %v9448_v17  ;;  %5673 = vmatprep.subr.bf16.mxu0 %v9453_v18  ;;  %v4058_v17 = vrot.slane %v4053_v16, %v10098_v33  ;;  %v4066_v18 = vrot.slane %v4053_v16, %v10100_v35 }
 0x388   :  { %5759 = vmatprep.subr.bf16.mxu1 %v9456_v19  ;;  %v4062_v19 = vrot.slane %v4053_v16, %v10102_v36 }
 0x38a   :  { %5674 = vmatpush1.bf16.msra.mxu0 %v9451_v20  ;;  %v4070_v20 = vrot.slane %v4053_v16, %v10104_v37  ;;  %v9570_v16 = vld [vmem:[#allocation8 + $0xacc] ss:$16 sps:$4 sm:$0xff]  }
 0x38b   :  { %5760 = vmatpush1.bf16.msra.mxu1 %v9454_v21  ;;  %5675 = vmatprep.subr.bf16.mxu0 %v9459_v22 }
 0x38c   :  { %5761 = vmatprep.subr.bf16.mxu1 %v9462_v54 }
 0x38e   :  { %5676 = vmatpush1.bf16.msra.mxu0 %v9457_v23 }
 0x38f   :  { %5762 = vmatpush1.bf16.msra.mxu1 %v9460_v24  ;;  %5677 = vmatprep.subr.bf16.mxu0 %v9465_v26 }
 0x390   :  { %5763 = vmatprep.subr.bf16.mxu1 %v9468_v13 }
 0x392   :  { %5678 = vmatpush1.bf16.msra.mxu0 %v9463_v27 }
 0x393   :  { %5764 = vmatpush1.bf16.msra.mxu1 %v9466_v29  ;;  %5679 = vmatprep.subr.bf16.mxu0 %v9471_v30 }
 0x394   :  { %5765 = vmatprep.subr.bf16.mxu1 %v9474_v31 }
 0x396   :  { %5680 = vmatpush1.bf16.msra.mxu0 %v9469_v32 }
 0x397   :  { %5766 = vmatpush1.bf16.msra.mxu1 %v9472_v34  ;;  %5681 = vmatprep.subr.bf16.mxu0 %v9477_v10 }
 0x398   :  { %5767 = vmatprep.subr.bf16.mxu1 %v9480_v38 }
 0x39a   :  { %5682 = vmatpush1.bf16.msra.mxu0 %v9475_v39 }
 0x39b   :  { %5768 = vmatpush1.bf16.msra.mxu1 %v9478_v40  ;;  %5683 = vmatprep.subr.bf16.mxu0 %v9483_v41 }
 0x39c   :  { %5769 = vmatprep.subr.bf16.mxu1 %v9486_v14 }
 0x39e   :  { %5684 = vmatpush1.bf16.msra.mxu0 %v9481_v42 }
 0x39f   :  { %5770 = vmatpush1.bf16.msra.mxu1 %v9484_v43  ;;  %5685 = vmatprep.subr.bf16.mxu0 %v9489_v44 }
 0x3a0   :  { %5771 = vmatprep.subr.bf16.mxu1 %v9492_v45 }
 0x3a2   :  { %5686 = vmatpush1.bf16.msra.mxu0 %v9487_v46 }
 0x3a3   :  { %5772 = vmatpush1.bf16.msra.mxu1 %v9490_v47  ;;  %5687 = vmatprep.subr.bf16.mxu0 %v9495_v48 }
 0x3a4   :  { %5773 = vmatprep.subr.bf16.mxu1 %v9498_v49 }
 0x3a6   :  { %5688 = vmatpush1.bf16.msra.mxu0 %v9493_v50  ;;  %v9529_v50 = vld [vmem:[#allocation8 + $0xa00] ss:$16 sps:$4 sm:$0xff]  }
 0x3a7   :  { %5774 = vmatpush1.bf16.msra.mxu1 %v9496_v51  ;;  %5689 = vmatprep.subr.bf16.mxu0 %v9501_v52  ;;  %v9532_v51 = vld [vmem:[#allocation8 + $0xa08] ss:$16 sps:$4 sm:$0xff]  }
 0x3a8   :  { %5775 = vmatprep.subr.bf16.mxu1 %v9504_v53  ;;  %v9537_v53 = vld [vmem:[#allocation8 + $0xa24] ss:$16 sps:$4 sm:$0xff]  }
 0x3aa   :  { %5690 = vmatpush1.bf16.msra.mxu0 %v9499_v55  ;;  %v9540_v55 = vld [vmem:[#allocation8 + $0xa2c] ss:$16 sps:$4 sm:$0xff]  }
 0x3ab   :  { %5776 = vmatpush1.bf16.msra.mxu1 %v9502_v56  ;;  %5691 = vmatprep.subr.bf16.mxu0 %v9507_v57  ;;  %v9535_v56 = vld [vmem:[#allocation8 + $0xa20] ss:$16 sps:$4 sm:$0xff]   ;;  %v9538_v57 = vld [vmem:[#allocation8 + $0xa28] ss:$16 sps:$4 sm:$0xff]  }
 0x3ac   :  { %5777 = vmatprep.subr.bf16.mxu1 %v9510_v59  ;;  %v9543_v59 = vld [vmem:[#allocation8 + $0xa44] ss:$16 sps:$4 sm:$0xff]  }
 0x3ae   :  { %5692 = vmatpush1.bf16.msra.mxu0 %v9505_v60  ;;  %v9546_v60 = vld [vmem:[#allocation8 + $0xa4c] ss:$16 sps:$4 sm:$0xff]  }
 0x3af   :  { %5778 = vmatpush1.bf16.msra.mxu1 %v9508_v12  ;;  %5693 = vmatprep.subr.bf16.mxu0 %v9513_v61  ;;  %v9541_v12 = vld [vmem:[#allocation8 + $0xa40] ss:$16 sps:$4 sm:$0xff]   ;;  %v9544_v61 = vld [vmem:[#allocation8 + $0xa48] ss:$16 sps:$4 sm:$0xff]  }
 0x3b0   :  { %5779 = vmatprep.subr.bf16.mxu1 %v9516_v62  ;;  %v9549_v62 = vld [vmem:[#allocation8 + $0xa64] ss:$16 sps:$4 sm:$0xff]  }
 0x3b2   :  { %5694 = vmatpush1.bf16.msra.mxu0 %v9511_v63  ;;  %v9552_v63 = vld [vmem:[#allocation8 + $0xa6c] ss:$16 sps:$4 sm:$0xff]  }
 0x3b3   :  { %5780 = vmatpush1.bf16.msra.mxu1 %v9514_v0  ;;  %5695 = vmatprep.subr.bf16.mxu0 %v9519_v1  ;;  %v9547_v0 = vld [vmem:[#allocation8 + $0xa60] ss:$16 sps:$4 sm:$0xff]   ;;  %v9550_v1 = vld [vmem:[#allocation8 + $0xa68] ss:$16 sps:$4 sm:$0xff]  }
 0x3b4   :  { %5781 = vmatprep.subr.bf16.mxu1 %v9522_v2  ;;  %v9555_v2 = vld [vmem:[#allocation8 + $0xa84] ss:$16 sps:$4 sm:$0xff]  }
 0x3b6   :  { %5696 = vmatpush1.bf16.msra.mxu0 %v9517_v3  ;;  %v9558_v3 = vld [vmem:[#allocation8 + $0xa8c] ss:$16 sps:$4 sm:$0xff]  }
 0x3b7   :  { %5782 = vmatpush1.bf16.msra.mxu1 %v9520_v4  ;;  %5697 = vmatprep.subr.bf16.mxu0 %v9525_v5  ;;  %v9553_v4 = vld [vmem:[#allocation8 + $0xa80] ss:$16 sps:$4 sm:$0xff]   ;;  %v9556_v5 = vld [vmem:[#allocation8 + $0xa88] ss:$16 sps:$4 sm:$0xff]  }
 0x3b8   :  { %5783 = vmatprep.subr.bf16.mxu1 %v9528_v6  ;;  %v9561_v6 = vld [vmem:[#allocation8 + $0xaa4] ss:$16 sps:$4 sm:$0xff]  }
 0x3ba   :  { %5698 = vmatpush1.bf16.msra.mxu0 %v9523_v7  ;;  %v9564_v7 = vld [vmem:[#allocation8 + $0xaac] ss:$16 sps:$4 sm:$0xff]  }
 0x3bb   :  { %5784 = vmatpush1.bf16.msra.mxu1 %v9526_v8  ;;  %5710 = vmatprep.subr.bf16.mxu0 %v9531_v9  ;;  %v9559_v8 = vld [vmem:[#allocation8 + $0xaa0] ss:$16 sps:$4 sm:$0xff]   ;;  %v9562_v9 = vld [vmem:[#allocation8 + $0xaa8] ss:$16 sps:$4 sm:$0xff]  }
 0x3bc   :  { %5796 = vmatprep.subr.bf16.mxu1 %v9534_v11  ;;  %v9567_v11 = vld [vmem:[#allocation8 + $0xac4] ss:$16 sps:$4 sm:$0xff]  }
 0x450   :  { %v4792_v21 = vpop.f32.mrb[12].mxu0 }
 0x451   :  { %v8933_v22 = vadd.f32 %v4792_v21, %v4058_v17  ;;  %v4878_v54 = vpop.f32.mrb[12].mxu1  ;;  %v4794_v23 = vpop.f32.mrb[13].mxu0  ;;  %v9571_v21 = vld [vmem:[#allocation8 + $0xae0] ss:$16 sps:$4 sm:$0xff]  }
 0x452   :  { %v8937_v24 = vadd.f32 %v4878_v54, %v4066_v18  ;;  %v8934_v26 = vadd.f32 %v4794_v23, %v4062_v19  ;;  %v4880_v13 = vpop.f32.mrb[13].mxu1  ;;  %v4796_v27 = vpop.f32.mrb[14].mxu0  ;;  %v9579_v54 = vld [vmem:[#allocation8 + $0xb04] ss:$16 sps:$4 sm:$0xff]   ;;  %v9582_v23 = vld [vmem:[#allocation8 + $0xb0c] ss:$16 sps:$4 sm:$0xff]  }
 0x453   :  { %v8938_v29 = vadd.f32 %v4880_v13, %v4070_v20  ;;  %v8935_v30 = vadd.f32 %v4796_v27, %v4058_v17  ;;  %v4882_v31 = vpop.f32.mrb[14].mxu1  ;;  %v4798_v32 = vpop.f32.mrb[15].mxu0  ;;  %v4887_v40 = vmax.f32 %v8933_v22, 0.0  ;;  %v9565_v17 = vld [vmem:[#allocation8 + $0xac0] ss:$16 sps:$4 sm:$0xff]  }
 0x454   :  { %v4889_v34 = vmax.f32 %v8937_v24, 0.0  ;;  %v8939_v10 = vadd.f32 %v4882_v31, %v4066_v18  ;;  %v8936_v38 = vadd.f32 %v4798_v32, %v4062_v19  ;;  %v4884_v39 = vpop.f32.mrb[15].mxu1  ;;  %v4888_v42 = vmax.f32 %v8934_v26, 0.0  ;;  %v9568_v18 = vld [vmem:[#allocation8 + $0xac8] ss:$16 sps:$4 sm:$0xff]  }
 0x455   :  { %v4891_v41 = vmax.f32 %v8935_v30, 0.0  ;;  %v8940_v14 = vadd.f32 %v4884_v39, %v4070_v20  ;;  %v4890_v45 = vmax.f32 %v8938_v29, 0.0  ;;  %v9573_v19 = vld [vmem:[#allocation8 + $0xae4] ss:$16 sps:$4 sm:$0xff]   ;;  %v9576_v20 = vld [vmem:[#allocation8 + $0xaec] ss:$16 sps:$4 sm:$0xff]  }
 0x456   :  { %v4893_v43 = vmax.f32 %v8939_v10, 0.0  ;;  %v4892_v44 = vmax.f32 %v8936_v38, 0.0  ;;  %v9574_v22 = vld [vmem:[#allocation8 + $0xae8] ss:$16 sps:$4 sm:$0xff]   ;;  %v9577_v24 = vld [vmem:[#allocation8 + $0xb00] ss:$16 sps:$4 sm:$0xff]  }
 0x457   :  { %v4895_v46 = vpack.c.bf16 %v4891_v41, %v4887_v40  ;;  %v4894_v47 = vmax.f32 %v8940_v14, 0.0  ;;  %v9580_v26 = vld [vmem:[#allocation8 + $0xb08] ss:$16 sps:$4 sm:$0xff]   ;;  %v9585_v13 = vld [vmem:[#allocation8 + $0xb24] ss:$16 sps:$4 sm:$0xff]  }
 0x458   :  { %v10146_v48 = vpack.c.bf16 %v4893_v43, %v4889_v34  ;;  %v4896_v49 = vpack.c.bf16 %v4892_v44, %v4888_v42  ;;  %v9588_v27 = vld [vmem:[#allocation8 + $0xb2c] ss:$16 sps:$4 sm:$0xff]   ;;  %v9583_v29 = vld [vmem:[#allocation8 + $0xb20] ss:$16 sps:$4 sm:$0xff]   ;;  %v9586_v30 = vld [vmem:[#allocation8 + $0xb28] ss:$16 sps:$4 sm:$0xff]  }
 0x459   :  { %v4898_v52 = vpack.c.bf16 %v4894_v47, %v4890_v45  ;;  %v9591_v31 = vld [vmem:[#allocation8 + $0xb44] ss:$16 sps:$4 sm:$0xff]   ;;  %v9594_v32 = vld [vmem:[#allocation8 + $0xb4c] ss:$16 sps:$4 sm:$0xff]   ;;  %v9589_v34 = vld [vmem:[#allocation8 + $0xb40] ss:$16 sps:$4 sm:$0xff]  }
 0x45a   :  { %5699 = vmatprep.mubr.bf16.mxu0 %v4896_v49  ;;  %5785 = vmatprep.mubr.bf16.mxu1 %v4896_v49  ;;  %v9592_v10 = vld [vmem:[#allocation8 + $0xb48] ss:$16 sps:$4 sm:$0xff]   ;;  %v9597_v38 = vld [vmem:[#allocation8 + $0xb64] ss:$16 sps:$4 sm:$0xff]   ;;  %v9600_v39 = vld [vmem:[#allocation8 + $0xb6c] ss:$16 sps:$4 sm:$0xff]  }
 0x45b   :  { %5700 = vmatmul.mubr.bf16.vlgmr.msra.gmra.mrb[8].mxu0 %v4895_v46  ;;  %5786 = vmatmul.mubr.bf16.vlgmr.msra.gmra.mrb[8].mxu1 %v4895_v46  ;;  %v9595_v40 = vld [vmem:[#allocation8 + $0xb60] ss:$16 sps:$4 sm:$0xff]   ;;  %v9598_v41 = vld [vmem:[#allocation8 + $0xb68] ss:$16 sps:$4 sm:$0xff]   ;;  %v9603_v14 = vld [vmem:[#allocation8 + $0xb84] ss:$16 sps:$4 sm:$0xff]  }
 0x45c   :  { %5711 = vmatpush1.bf16.msra.mxu0 %v9529_v50  ;;  %5797 = vmatpush1.bf16.msra.mxu1 %v9532_v51  ;;  %v9606_v42 = vld [vmem:[#allocation8 + $0xb8c] ss:$16 sps:$4 sm:$0xff]   ;;  %v9601_v43 = vld [vmem:[#allocation8 + $0xb80] ss:$16 sps:$4 sm:$0xff]   ;;  %v9604_v44 = vld [vmem:[#allocation8 + $0xb88] ss:$16 sps:$4 sm:$0xff]  }
 0x45d   :  { %5742 = vmatprep.mubr.bf16.mxu0 %v4898_v52  ;;  %5828 = vmatprep.mubr.bf16.mxu1 %v4898_v52  ;;  %v9609_v45 = vld [vmem:[#allocation8 + $0xba4] ss:$16 sps:$4 sm:$0xff]   ;;  %v9612_v46 = vld [vmem:[#allocation8 + $0xbac] ss:$16 sps:$4 sm:$0xff]   ;;  %v9607_v47 = vld [vmem:[#allocation8 + $0xba0] ss:$16 sps:$4 sm:$0xff]  }
 0x45e   :  { %5712 = vmatprep.subr.bf16.mxu0 %v9537_v53  ;;  %5798 = vmatprep.subr.bf16.mxu1 %v9540_v55  ;;  %v9610_v49 = vld [vmem:[#allocation8 + $0xba8] ss:$16 sps:$4 sm:$0xff]   ;;  %v9615_v50 = vld [vmem:[#allocation8 + $0xbc4] ss:$16 sps:$4 sm:$0xff]   ;;  %v9618_v51 = vld [vmem:[#allocation8 + $0xbcc] ss:$16 sps:$4 sm:$0xff]  }
 0x45f   :  { %v9613_v52 = vld [vmem:[#allocation8 + $0xbc0] ss:$16 sps:$4 sm:$0xff]   ;;  %v9616_v53 = vld [vmem:[#allocation8 + $0xbc8] ss:$16 sps:$4 sm:$0xff]   ;;  %v9621_v55 = vld [vmem:[#allocation8 + $0xbe4] ss:$16 sps:$4 sm:$0xff]  }
 0x460   :  { %5713 = vmatpush1.bf16.msra.mxu0 %v9535_v56  ;;  %5799 = vmatpush1.bf16.msra.mxu1 %v9538_v57  ;;  %v9624_v56 = vld [vmem:[#allocation8 + $0xbec] ss:$16 sps:$4 sm:$0xff]   ;;  %v5847_v57 = vld [vmem:[#allocation5 + $0x30] sm:$0xff] }
 0x461   :  { %5714 = vmatprep.subr.bf16.mxu0 %v9543_v59  ;;  %5800 = vmatprep.subr.bf16.mxu1 %v9546_v60  ;;  %v5849_v59 = vld [vmem:[#allocation5 + $0x70] sm:$0xff]  ;;  %v5848_v60 = vld [vmem:[#allocation5 + $0x38] sm:$0xff] }
 0x464   :  { %5715 = vmatpush1.bf16.msra.mxu0 %v9541_v12  ;;  %5801 = vmatpush1.bf16.msra.mxu1 %v9544_v61  ;;  %v5850_v12 = vld [vmem:[#allocation5 + $0x78] sm:$0xff]  ;;  %v9619_v61 = vld [vmem:[#allocation8 + $0xbe0] ss:$16 sps:$4 sm:$0xff]  }
 0x465   :  { %5716 = vmatprep.subr.bf16.mxu0 %v9549_v62  ;;  %5802 = vmatprep.subr.bf16.mxu1 %v9552_v63  ;;  %v9622_v62 = vld [vmem:[#allocation8 + $0xbe8] ss:$16 sps:$4 sm:$0xff]   ;;  %v8662_v63 = vcombine.high %v5847_v57, %v5849_v59 }
 0x468   :  { %5717 = vmatpush1.bf16.msra.mxu0 %v9547_v0  ;;  %5803 = vmatpush1.bf16.msra.mxu1 %v9550_v1  ;;  %v8664_v0 = vcombine.high %v5848_v60, %v5850_v12  ;;  %v5851_v1 = vld [vmem:[#allocation5 + $0xb0] sm:$0xff] }
 0x469   :  { %5718 = vmatprep.subr.bf16.mxu0 %v9555_v2  ;;  %5804 = vmatprep.subr.bf16.mxu1 %v9558_v3  ;;  %v5853_v2 = vld [vmem:[#allocation5 + $0xf0] sm:$0xff]  ;;  %v5852_v3 = vld [vmem:[#allocation5 + $0xb8] sm:$0xff] }
 0x46c   :  { %5719 = vmatpush1.bf16.msra.mxu0 %v9553_v4  ;;  %5805 = vmatpush1.bf16.msra.mxu1 %v9556_v5  ;;  %v5854_v4 = vld [vmem:[#allocation5 + $0xf8] sm:$0xff]  ;;  %v8661_v5 = vcombine.low %v5847_v57, %v5849_v59  ;;  %v5877_v57 = vld [vmem:[#allocation5 + $0x3f0] sm:$0xff] }
 0x46d   :  { %5720 = vmatprep.subr.bf16.mxu0 %v9561_v6  ;;  %5806 = vmatprep.subr.bf16.mxu1 %v9564_v7  ;;  %v8663_v6 = vcombine.low %v5848_v60, %v5850_v12  ;;  %v8666_v7 = vcombine.high %v5851_v1, %v5853_v2  ;;  %v5876_v59 = vld [vmem:[#allocation5 + $0x3b8] sm:$0xff] }
 0x46e   :  { %v5878_v60 = vld [vmem:[#allocation5 + $0x3f8] sm:$0xff] }
 0x470   :  { %5721 = vmatpush1.bf16.msra.mxu0 %v9559_v8  ;;  %5807 = vmatpush1.bf16.msra.mxu1 %v9562_v9  ;;  %v8668_v8 = vcombine.high %v5852_v3, %v5854_v4  ;;  %v5855_v9 = vld [vmem:[#allocation5 + $0x130] sm:$0xff] }
 0x471   :  { %5722 = vmatprep.subr.bf16.mxu0 %v9567_v11  ;;  %5808 = vmatprep.subr.bf16.mxu1 %v9570_v16  ;;  %v5857_v11 = vld [vmem:[#allocation5 + $0x170] sm:$0xff]  ;;  %v5856_v16 = vld [vmem:[#allocation5 + $0x138] sm:$0xff] }
 0x474   :  { %5723 = vmatpush1.bf16.msra.mxu0 %v9565_v17  ;;  %5809 = vmatpush1.bf16.msra.mxu1 %v9568_v18  ;;  %v5858_v17 = vld [vmem:[#allocation5 + $0x178] sm:$0xff]  ;;  %v8665_v18 = vcombine.low %v5851_v1, %v5853_v2  ;;  %v5881_v1 = vld [vmem:[#allocation5 + $0x470] sm:$0xff] }
 0x475   :  { %5724 = vmatprep.subr.bf16.mxu0 %v9573_v19  ;;  %5810 = vmatprep.subr.bf16.mxu1 %v9576_v20  ;;  %v8667_v19 = vcombine.low %v5852_v3, %v5854_v4  ;;  %v8670_v20 = vcombine.high %v5855_v9, %v5857_v11  ;;  %v5880_v2 = vld [vmem:[#allocation5 + $0x438] sm:$0xff] }
 0x476   :  { %v5882_v3 = vld [vmem:[#allocation5 + $0x478] sm:$0xff] }
 0x478   :  { %5725 = vmatpush1.bf16.msra.mxu0 %v9571_v21  ;;  %5811 = vmatpush1.bf16.msra.mxu1 %v9574_v22  ;;  %v8672_v21 = vcombine.high %v5856_v16, %v5858_v17  ;;  %v5859_v22 = vld [vmem:[#allocation5 + $0x1b0] sm:$0xff] }
 0x479   :  { %5726 = vmatprep.subr.bf16.mxu0 %v9579_v54  ;;  %5812 = vmatprep.subr.bf16.mxu1 %v9582_v23  ;;  %v5861_v54 = vld [vmem:[#allocation5 + $0x1f0] sm:$0xff]  ;;  %v5860_v23 = vld [vmem:[#allocation5 + $0x1b8] sm:$0xff] }
 0x47c   :  { %5727 = vmatpush1.bf16.msra.mxu0 %v9577_v24  ;;  %5813 = vmatpush1.bf16.msra.mxu1 %v9580_v26  ;;  %v5862_v24 = vld [vmem:[#allocation5 + $0x1f8] sm:$0xff]  ;;  %v8669_v26 = vcombine.low %v5855_v9, %v5857_v11  ;;  %v5885_v9 = vld [vmem:[#allocation5 + $0x4f0] sm:$0xff] }
 0x47d   :  { %5728 = vmatprep.subr.bf16.mxu0 %v9585_v13  ;;  %5814 = vmatprep.subr.bf16.mxu1 %v9588_v27  ;;  %v8674_v13 = vcombine.high %v5859_v22, %v5861_v54  ;;  %v8676_v27 = vcombine.high %v5860_v23, %v5862_v24  ;;  %v5884_v11 = vld [vmem:[#allocation5 + $0x4b8] sm:$0xff] }
 0x480   :  { %5729 = vmatpush1.bf16.msra.mxu0 %v9583_v29  ;;  %5815 = vmatpush1.bf16.msra.mxu1 %v9586_v30  ;;  %v5863_v29 = vld [vmem:[#allocation5 + $0x230] sm:$0xff] }
 0x481   :  { %5730 = vmatprep.subr.bf16.mxu0 %v9591_v31  ;;  %5816 = vmatprep.subr.bf16.mxu1 %v9594_v32  ;;  %v5865_v30 = vld [vmem:[#allocation5 + $0x270] sm:$0xff]  ;;  %v5864_v31 = vld [vmem:[#allocation5 + $0x238] sm:$0xff] }
 0x482   :  { %v5866_v32 = vld [vmem:[#allocation5 + $0x278] sm:$0xff] }
 0x484   :  { %5731 = vmatpush1.bf16.msra.mxu0 %v9589_v34  ;;  %5817 = vmatpush1.bf16.msra.mxu1 %v9592_v10  ;;  %v8673_v34 = vcombine.low %v5859_v22, %v5861_v54  ;;  %v8675_v10 = vcombine.low %v5860_v23, %v5862_v24  ;;  %v5889_v22 = vld [vmem:[#allocation5 + $0x570] sm:$0xff]  ;;  %v5888_v54 = vld [vmem:[#allocation5 + $0x538] sm:$0xff] }
 0x485   :  { %5732 = vmatprep.subr.bf16.mxu0 %v9597_v38  ;;  %5818 = vmatprep.subr.bf16.mxu1 %v9600_v39  ;;  %v8678_v38 = vcombine.high %v5863_v29, %v5865_v30  ;;  %v5867_v39 = vld [vmem:[#allocation5 + $0x2b0] sm:$0xff]  ;;  %v5890_v23 = vld [vmem:[#allocation5 + $0x578] sm:$0xff] }
 0x488   :  { %5733 = vmatpush1.bf16.msra.mxu0 %v9595_v40  ;;  %5819 = vmatpush1.bf16.msra.mxu1 %v9598_v41  ;;  %v5869_v40 = vld [vmem:[#allocation5 + $0x2f0] sm:$0xff]  ;;  %v5868_v41 = vld [vmem:[#allocation5 + $0x2b8] sm:$0xff] }
 0x489   :  { %5734 = vmatprep.subr.bf16.mxu0 %v9603_v14  ;;  %5820 = vmatprep.subr.bf16.mxu1 %v9606_v42  ;;  %v5870_v14 = vld [vmem:[#allocation5 + $0x2f8] sm:$0xff]  ;;  %v8677_v42 = vcombine.low %v5863_v29, %v5865_v30  ;;  %v5893_v29 = vld [vmem:[#allocation5 + $0x5f0] sm:$0xff] }
 0x48a   :  { %v5892_v30 = vld [vmem:[#allocation5 + $0x5b8] sm:$0xff] }
 0x48c   :  { %5735 = vmatpush1.bf16.msra.mxu0 %v9601_v43  ;;  %5821 = vmatpush1.bf16.msra.mxu1 %v9604_v44  ;;  %v8679_v43 = vcombine.low %v5864_v31, %v5866_v32  ;;  %v8682_v44 = vcombine.high %v5867_v39, %v5869_v40 }
 0x48d   :  { %5736 = vmatprep.subr.bf16.mxu0 %v9609_v45  ;;  %5822 = vmatprep.subr.bf16.mxu1 %v9612_v46  ;;  %v8684_v45 = vcombine.high %v5868_v41, %v5870_v14  ;;  %v5871_v46 = vld [vmem:[#allocation5 + $0x330] sm:$0xff] }
 0x490   :  { %5737 = vmatpush1.bf16.msra.mxu0 %v9607_v47  ;;  %5823 = vmatpush1.bf16.msra.mxu1 %v9610_v49  ;;  %v5873_v47 = vld [vmem:[#allocation5 + $0x370] sm:$0xff]  ;;  %v5872_v49 = vld [vmem:[#allocation5 + $0x338] sm:$0xff] }
 0x491   :  { %5738 = vmatprep.subr.bf16.mxu0 %v9615_v50  ;;  %5824 = vmatprep.subr.bf16.mxu1 %v9618_v51  ;;  %v5874_v50 = vld [vmem:[#allocation5 + $0x378] sm:$0xff]  ;;  %v8681_v51 = vcombine.low %v5867_v39, %v5869_v40  ;;  %v8685_v12 = vcombine.low %v5871_v46, %v5873_v47  ;;  %v5897_v39 = vld [vmem:[#allocation5 + $0x670] sm:$0xff] }
 0x492   :  { %v5896_v40 = vld [vmem:[#allocation5 + $0x638] sm:$0xff] }
 0x494   :  { %5739 = vmatpush1.bf16.msra.mxu0 %v9613_v52  ;;  %5825 = vmatpush1.bf16.msra.mxu1 %v9616_v53  ;;  %v8683_v52 = vcombine.low %v5868_v41, %v5870_v14  ;;  %v8686_v53 = vcombine.high %v5871_v46, %v5873_v47  ;;  %v5898_v41 = vld [vmem:[#allocation5 + $0x678] sm:$0xff]  ;;  %v5901_v46 = vld [vmem:[#allocation5 + $0x6f0] sm:$0xff] }
 0x495   :  { %5740 = vmatprep.subr.bf16.mxu0 %v9621_v55  ;;  %5826 = vmatprep.subr.bf16.mxu1 %v9624_v56  ;;  %v8688_v55 = vcombine.high %v5872_v49, %v5874_v50  ;;  %v5875_v56 = vld [vmem:[#allocation5 + $0x3b0] sm:$0xff]  ;;  %v5900_v47 = vld [vmem:[#allocation5 + $0x6b8] sm:$0xff] }
 0x496   :  { %v8689_v4 = vcombine.low %v5875_v56, %v5877_v57 }
 0x498   :  { %5741 = vmatpush1.bf16.msra.mxu0 %v9619_v61  ;;  %5827 = vmatpush1.bf16.msra.mxu1 %v9622_v62  ;;  %v8687_v61 = vcombine.low %v5872_v49, %v5874_v50  ;;  %v8690_v62 = vcombine.high %v5875_v56, %v5877_v57  ;;  %v5902_v49 = vld [vmem:[#allocation5 + $0x6f8] sm:$0xff]  ;;  %v5905_v56 = vld [vmem:[#allocation5 + $0x770] sm:$0xff] }
 0x499   :  { %6637 = vmatprep.subr.bf16.mxu0 %v8662_v63  ;;  %6723 = vmatprep.subr.bf16.mxu1 %v8664_v0  ;;  %v8692_v63 = vcombine.high %v5876_v59, %v5878_v60  ;;  %v5879_v0 = vld [vmem:[#allocation5 + $0x430] sm:$0xff]  ;;  %v5904_v57 = vld [vmem:[#allocation5 + $0x738] sm:$0xff] }
 0x49b   :  { %5743 = vmatmul.mubr.bf16.vlgmr.msra.gmra.mrb[8].mxu0 %v10146_v48  ;;  %5829 = vmatmul.mubr.bf16.vlgmr.msra.gmra.mrb[8].mxu1 %v10146_v48  ;;  %v8671_v48 = vcombine.low %v5856_v16, %v5858_v17  ;;  %v5886_v16 = vld [vmem:[#allocation5 + $0x4f8] sm:$0xff]  ;;  %v8693_v17 = vcombine.low %v5879_v0, %v5881_v1 }
 0x49c   :  { %6638 = vmatpush1.bf16.msra.mxu0 %v8661_v5  ;;  %6724 = vmatpush1.bf16.msra.mxu1 %v8663_v6  ;;  %v8691_v5 = vcombine.low %v5876_v59, %v5878_v60  ;;  %v8694_v6 = vcombine.high %v5879_v0, %v5881_v1  ;;  %v5906_v59 = vld [vmem:[#allocation5 + $0x778] sm:$0xff]  ;;  %v5909_v0 = vld [vmem:[#allocation5 + $0x7f0] sm:$0xff] }
 0x49d   :  { %6639 = vmatprep.subr.bf16.mxu0 %v8666_v7  ;;  %6725 = vmatprep.subr.bf16.mxu1 %v8668_v8  ;;  %v8696_v7 = vcombine.high %v5880_v2, %v5882_v3  ;;  %v5883_v8 = vld [vmem:[#allocation5 + $0x4b0] sm:$0xff]  ;;  %v5908_v1 = vld [vmem:[#allocation5 + $0x7b8] sm:$0xff] }
 0x49e   :  { %6669 = vmatprep.mubr.bf16.mxu0 %v10074_v58  ;;  %6755 = vmatprep.mubr.bf16.mxu1 %v10074_v58  ;;  %v8680_v58 = vcombine.high %v5864_v31, %v5866_v32  ;;  %v8697_v24 = vcombine.low %v5883_v8, %v5885_v9  ;;  %v5894_v31 = vld [vmem:[#allocation5 + $0x5f8] sm:$0xff] }
 0x4a0   :  { %6640 = vmatpush1.bf16.msra.mxu0 %v8665_v18  ;;  %6726 = vmatpush1.bf16.msra.mxu1 %v8667_v19  ;;  %v8695_v18 = vcombine.low %v5880_v2, %v5882_v3  ;;  %v8698_v19 = vcombine.high %v5883_v8, %v5885_v9  ;;  %v5910_v2 = vld [vmem:[#allocation5 + $0x7f8] sm:$0xff]  ;;  %v5913_v8 = vld [vmem:[#allocation5 + $0x870] sm:$0xff] }
 0x4a1   :  { %6641 = vmatprep.subr.bf16.mxu0 %v8670_v20  ;;  %6727 = vmatprep.subr.bf16.mxu1 %v8672_v21  ;;  %v8700_v20 = vcombine.high %v5884_v11, %v5886_v16  ;;  %v5887_v21 = vld [vmem:[#allocation5 + $0x530] sm:$0xff]  ;;  %v5912_v9 = vld [vmem:[#allocation5 + $0x838] sm:$0xff] }
 0x4a2   :  { %v8701_v32 = vcombine.low %v5887_v21, %v5889_v22 }
 0x4a4   :  { %6642 = vmatpush1.bf16.msra.mxu0 %v8669_v26  ;;  %6728 = vmatpush1.bf16.msra.mxu1 %v8671_v48  ;;  %v8699_v26 = vcombine.low %v5884_v11, %v5886_v16  ;;  %v8702_v48 = vcombine.high %v5887_v21, %v5889_v22  ;;  %v5914_v11 = vld [vmem:[#allocation5 + $0x878] sm:$0xff]  ;;  %v5917_v21 = vld [vmem:[#allocation5 + $0x8f0] sm:$0xff] }
 0x4a5   :  { %6643 = vmatprep.subr.bf16.mxu0 %v8674_v13  ;;  %6729 = vmatprep.subr.bf16.mxu1 %v8676_v27  ;;  %v8704_v13 = vcombine.high %v5888_v54, %v5890_v23  ;;  %v5891_v27 = vld [vmem:[#allocation5 + $0x5b0] sm:$0xff]  ;;  %v5916_v22 = vld [vmem:[#allocation5 + $0x8b8] sm:$0xff] }
 0x4a6   :  { %v8705_v14 = vcombine.low %v5891_v27, %v5893_v29 }
 0x4a8   :  { %6644 = vmatpush1.bf16.msra.mxu0 %v8673_v34  ;;  %6730 = vmatpush1.bf16.msra.mxu1 %v8675_v10  ;;  %v8703_v34 = vcombine.low %v5888_v54, %v5890_v23  ;;  %v8706_v10 = vcombine.high %v5891_v27, %v5893_v29  ;;  %v5918_v54 = vld [vmem:[#allocation5 + $0x8f8] sm:$0xff]  ;;  %v5921_v27 = vld [vmem:[#allocation5 + $0x970] sm:$0xff] }
 0x4a9   :  { %6645 = vmatprep.subr.bf16.mxu0 %v8678_v38  ;;  %6731 = vmatprep.subr.bf16.mxu1 %v8680_v58  ;;  %v8708_v38 = vcombine.high %v5892_v30, %v5894_v31  ;;  %v5895_v58 = vld [vmem:[#allocation5 + $0x630] sm:$0xff]  ;;  %v5920_v29 = vld [vmem:[#allocation5 + $0x938] sm:$0xff] }
 0x4aa   :  { %v8709_v50 = vcombine.low %v5895_v58, %v5897_v39 }
 0x4ac   :  { %6646 = vmatpush1.bf16.msra.mxu0 %v8677_v42  ;;  %6732 = vmatpush1.bf16.msra.mxu1 %v8679_v43  ;;  %v8707_v42 = vcombine.low %v5892_v30, %v5894_v31  ;;  %v8710_v43 = vcombine.high %v5895_v58, %v5897_v39  ;;  %v5922_v30 = vld [vmem:[#allocation5 + $0x978] sm:$0xff]  ;;  %v5925_v58 = vld [vmem:[#allocation5 + $0x9f0] sm:$0xff] }
 0x4ad   :  { %6647 = vmatprep.subr.bf16.mxu0 %v8682_v44  ;;  %6733 = vmatprep.subr.bf16.mxu1 %v8684_v45  ;;  %v8712_v44 = vcombine.high %v5896_v40, %v5898_v41  ;;  %v5899_v45 = vld [vmem:[#allocation5 + $0x6b0] sm:$0xff]  ;;  %v5924_v39 = vld [vmem:[#allocation5 + $0x9b8] sm:$0xff] }
 0x4ae   :  { %v8713_v60 = vcombine.low %v5899_v45, %v5901_v46 }
 0x4b0   :  { %6648 = vmatpush1.bf16.msra.mxu0 %v8681_v51  ;;  %6734 = vmatpush1.bf16.msra.mxu1 %v8683_v52  ;;  %v8711_v51 = vcombine.low %v5896_v40, %v5898_v41  ;;  %v8714_v52 = vcombine.high %v5899_v45, %v5901_v46  ;;  %v5926_v40 = vld [vmem:[#allocation5 + $0x9f8] sm:$0xff] }
 0x4b1   :  { %6649 = vmatprep.subr.bf16.mxu0 %v8686_v53  ;;  %6735 = vmatprep.subr.bf16.mxu1 %v8688_v55  ;;  %v8716_v53 = vcombine.high %v5900_v47, %v5902_v49  ;;  %v5903_v55 = vld [vmem:[#allocation5 + $0x730] sm:$0xff]  ;;  %v5928_v45 = vld [vmem:[#allocation5 + $0xa38] sm:$0xff] }
 0x4b2   :  { %v8717_v3 = vcombine.low %v5903_v55, %v5905_v56  ;;  %v5930_v46 = vld [vmem:[#allocation5 + $0xa78] sm:$0xff] }
 0x4b4   :  { %6650 = vmatpush1.bf16.msra.mxu0 %v8685_v12  ;;  %6736 = vmatpush1.bf16.msra.mxu1 %v8687_v61  ;;  %v8715_v12 = vcombine.low %v5900_v47, %v5902_v49  ;;  %v8718_v61 = vcombine.high %v5903_v55, %v5905_v56  ;;  %v8739_v49 = vcombine.low %v5924_v39, %v5926_v40  ;;  %v5934_v55 = vld [vmem:[#allocation5 + $0xaf8] sm:$0xff] }
 0x4b5   :  { %6651 = vmatprep.subr.bf16.mxu0 %v8690_v62  ;;  %6737 = vmatprep.subr.bf16.mxu1 %v8692_v63  ;;  %v8720_v62 = vcombine.high %v5904_v57, %v5906_v59  ;;  %v5907_v63 = vld [vmem:[#allocation5 + $0x7b0] sm:$0xff] }
 0x4b6   :  { %v8721_v16 = vcombine.low %v5907_v63, %v5909_v0 }
 0x4b8   :  { %6652 = vmatpush1.bf16.msra.mxu0 %v8689_v4  ;;  %6738 = vmatpush1.bf16.msra.mxu1 %v8691_v5  ;;  %v8719_v4 = vcombine.low %v5904_v57, %v5906_v59  ;;  %v8722_v5 = vcombine.high %v5907_v63, %v5909_v0  ;;  %v8743_v57 = vcombine.low %v5928_v45, %v5930_v46  ;;  %v5938_v63 = vld [vmem:[#allocation5 + $0xb78] sm:$0xff] }
 0x4b9   :  { %6653 = vmatprep.subr.bf16.mxu0 %v8694_v6  ;;  %6739 = vmatprep.subr.bf16.mxu1 %v8696_v7  ;;  %v8724_v6 = vcombine.high %v5908_v1, %v5910_v2  ;;  %v5911_v7 = vld [vmem:[#allocation5 + $0x830] sm:$0xff] }
 0x4ba   :  { %v8725_v23 = vcombine.low %v5911_v7, %v5913_v8 }
 0x4bc   :  { %6654 = vmatpush1.bf16.msra.mxu0 %v8693_v17  ;;  %6740 = vmatpush1.bf16.msra.mxu1 %v8695_v18  ;;  %v8723_v17 = vcombine.low %v5908_v1, %v5910_v2  ;;  %v8726_v18 = vcombine.high %v5911_v7, %v5913_v8  ;;  %v5942_v7 = vld [vmem:[#allocation5 + $0xbf8] sm:$0xff] }
 0x4bd   :  { %6655 = vmatprep.subr.bf16.mxu0 %v8698_v19  ;;  %6741 = vmatprep.subr.bf16.mxu1 %v8700_v20  ;;  %v8728_v19 = vcombine.high %v5912_v9, %v5914_v11  ;;  %v5915_v20 = vld [vmem:[#allocation5 + $0x8b0] sm:$0xff] }
 0x4be   :  { %v8729_v31 = vcombine.low %v5915_v20, %v5917_v21 }
 0x4c0   :  { %6656 = vmatpush1.bf16.msra.mxu0 %v8697_v24  ;;  %6742 = vmatpush1.bf16.msra.mxu1 %v8699_v26  ;;  %v8727_v24 = vcombine.low %v5912_v9, %v5914_v11  ;;  %v8730_v26 = vcombine.high %v5915_v20, %v5917_v21  ;;  %v5946_v20 = vld [vmem:[#allocation5 + $0xc78] sm:$0xff] }
 0x4c1   :  { %6657 = vmatprep.subr.bf16.mxu0 %v8702_v48  ;;  %6743 = vmatprep.subr.bf16.mxu1 %v8704_v13  ;;  %v8732_v48 = vcombine.high %v5916_v22, %v5918_v54  ;;  %v5919_v13 = vld [vmem:[#allocation5 + $0x930] sm:$0xff] }
 0x4c2   :  { %v8733_v41 = vcombine.low %v5919_v13, %v5921_v27 }
 0x4c4   :  { %6658 = vmatpush1.bf16.msra.mxu0 %v8701_v32  ;;  %6744 = vmatpush1.bf16.msra.mxu1 %v8703_v34  ;;  %v8731_v32 = vcombine.low %v5916_v22, %v5918_v54  ;;  %v8734_v34 = vcombine.high %v5919_v13, %v5921_v27  ;;  %v5950_v13 = vld [vmem:[#allocation5 + $0xcf8] sm:$0xff] }
 0x4c5   :  { %6659 = vmatprep.subr.bf16.mxu0 %v8706_v10  ;;  %6745 = vmatprep.subr.bf16.mxu1 %v8708_v38  ;;  %v8736_v10 = vcombine.high %v5920_v29, %v5922_v30  ;;  %v5923_v38 = vld [vmem:[#allocation5 + $0x9b0] sm:$0xff] }
 0x4c6   :  { %v8737_v47 = vcombine.low %v5923_v38, %v5925_v58 }
 0x4c8   :  { %6660 = vmatpush1.bf16.msra.mxu0 %v8705_v14  ;;  %6746 = vmatpush1.bf16.msra.mxu1 %v8707_v42  ;;  %v8738_v14 = vcombine.high %v5923_v38, %v5925_v58  ;;  %v8740_v42 = vcombine.high %v5924_v39, %v5926_v40  ;;  %v5954_v38 = vld [vmem:[#allocation5 + $0xd78] sm:$0xff] }
 0x4c9   :  { %6661 = vmatprep.subr.bf16.mxu0 %v8710_v43  ;;  %6747 = vmatprep.subr.bf16.mxu1 %v8712_v44  ;;  %v5927_v43 = vld [vmem:[#allocation5 + $0xa30] sm:$0xff] }
 0x4ca   :  { %v5929_v44 = vld [vmem:[#allocation5 + $0xa70] sm:$0xff] }
 0x4cb   :  { %v8741_v56 = vcombine.low %v5927_v43, %v5929_v44 }
 0x4cc   :  { %6662 = vmatpush1.bf16.msra.mxu0 %v8709_v50  ;;  %6748 = vmatpush1.bf16.msra.mxu1 %v8711_v51  ;;  %v8742_v50 = vcombine.high %v5927_v43, %v5929_v44  ;;  %v5931_v51 = vld [vmem:[#allocation5 + $0xab0] sm:$0xff]  ;;  %v5958_v43 = vld [vmem:[#allocation5 + $0xdf8] sm:$0xff] }
 0x4cd   :  { %6663 = vmatprep.subr.bf16.mxu0 %v8714_v52  ;;  %6749 = vmatprep.subr.bf16.mxu1 %v8716_v53  ;;  %v5933_v52 = vld [vmem:[#allocation5 + $0xaf0] sm:$0xff]  ;;  %v5932_v53 = vld [vmem:[#allocation5 + $0xab8] sm:$0xff] }
 0x4ce   :  { %v8746_v59 = vcombine.high %v5931_v51, %v5933_v52  ;;  %v8745_v0 = vcombine.low %v5931_v51, %v5933_v52  ;;  %v8747_v1 = vcombine.low %v5932_v53, %v5934_v55  ;;  %v5962_v51 = vld [vmem:[#allocation5 + $0xe78] sm:$0xff] }
 0x4d0   :  { %6664 = vmatpush1.bf16.msra.mxu0 %v8713_v60  ;;  %6750 = vmatpush1.bf16.msra.mxu1 %v8715_v12  ;;  %v8748_v60 = vcombine.high %v5932_v53, %v5934_v55  ;;  %v5935_v12 = vld [vmem:[#allocation5 + $0xb30] sm:$0xff] }
 0x4d1   :  { %6665 = vmatprep.subr.bf16.mxu0 %v8718_v61  ;;  %6751 = vmatprep.subr.bf16.mxu1 %v8720_v62  ;;  %v5937_v61 = vld [vmem:[#allocation5 + $0xb70] sm:$0xff]  ;;  %v5936_v62 = vld [vmem:[#allocation5 + $0xb38] sm:$0xff] }
 0x4d2   :  { %v8750_v2 = vcombine.high %v5935_v12, %v5937_v61  ;;  %v8749_v8 = vcombine.low %v5935_v12, %v5937_v61  ;;  %v8751_v9 = vcombine.low %v5936_v62, %v5938_v63  ;;  %v5966_v12 = vld [vmem:[#allocation5 + $0xef8] sm:$0xff] }
 0x4d4   :  { %6666 = vmatpush1.bf16.msra.mxu0 %v8717_v3  ;;  %6752 = vmatpush1.bf16.msra.mxu1 %v8719_v4  ;;  %v8752_v3 = vcombine.high %v5936_v62, %v5938_v63  ;;  %v5939_v4 = vld [vmem:[#allocation5 + $0xbb0] sm:$0xff] }
 0x4d5   :  { %6667 = vmatprep.subr.bf16.mxu0 %v8722_v5  ;;  %6753 = vmatprep.subr.bf16.mxu1 %v8724_v6  ;;  %v5941_v5 = vld [vmem:[#allocation5 + $0xbf0] sm:$0xff]  ;;  %v5940_v6 = vld [vmem:[#allocation5 + $0xbb8] sm:$0xff] }
 0x4d6   :  { %v8754_v11 = vcombine.high %v5939_v4, %v5941_v5  ;;  %v8753_v21 = vcombine.low %v5939_v4, %v5941_v5  ;;  %v8755_v22 = vcombine.low %v5940_v6, %v5942_v7  ;;  %v5970_v4 = vld [vmem:[#allocation5 + $0xf78] sm:$0xff] }
 0x4d8   :  { %6668 = vmatpush1.bf16.msra.mxu0 %v8721_v16  ;;  %6754 = vmatpush1.bf16.msra.mxu1 %v8723_v17  ;;  %v8756_v16 = vcombine.high %v5940_v6, %v5942_v7  ;;  %v5943_v17 = vld [vmem:[#allocation5 + $0xc30] sm:$0xff] }
 0x4d9   :  { %6680 = vmatprep.subr.bf16.mxu0 %v8726_v18  ;;  %6766 = vmatprep.subr.bf16.mxu1 %v8728_v19  ;;  %v5945_v18 = vld [vmem:[#allocation5 + $0xc70] sm:$0xff]  ;;  %v5944_v19 = vld [vmem:[#allocation5 + $0xc38] sm:$0xff] }
 0x4da   :  { %v8758_v54 = vcombine.high %v5943_v17, %v5945_v18  ;;  %v8757_v27 = vcombine.low %v5943_v17, %v5945_v18  ;;  %v5974_v17 = vld [vmem:[#allocation5 + $0xff8] sm:$0xff] }
 0x4db   :  { %6670 = vmatmul.mubr.bf16.vlgmr.msra.gmra.mrb[16].mxu0 %v10078_v15  ;;  %6756 = vmatmul.mubr.bf16.vlgmr.msra.gmra.mrb[16].mxu1 %v10078_v15  ;;  %v8735_v15 = vcombine.low %v5920_v29, %v5922_v30  ;;  %v8759_v29 = vcombine.low %v5944_v19, %v5946_v20 }
 0x4dc   :  { %6681 = vmatpush1.bf16.msra.mxu0 %v8725_v23  ;;  %6767 = vmatpush1.bf16.msra.mxu1 %v8727_v24  ;;  %v8760_v23 = vcombine.high %v5944_v19, %v5946_v20  ;;  %v5947_v24 = vld [vmem:[#allocation5 + $0xcb0] sm:$0xff] }
 0x4dd   :  { %6682 = vmatprep.subr.bf16.mxu0 %v8730_v26  ;;  %6768 = vmatprep.subr.bf16.mxu1 %v8732_v48  ;;  %v5949_v26 = vld [vmem:[#allocation5 + $0xcf0] sm:$0xff]  ;;  %v5948_v48 = vld [vmem:[#allocation5 + $0xcb8] sm:$0xff] }
 0x4de   :  { %6712 = vmatprep.mubr.bf16.mxu0 %v10080_v25  ;;  %6798 = vmatprep.mubr.bf16.mxu1 %v10080_v25  ;;  %v8744_v25 = vcombine.high %v5928_v45, %v5930_v46  ;;  %v8762_v30 = vcombine.high %v5947_v24, %v5949_v26  ;;  %v8761_v58 = vcombine.low %v5947_v24, %v5949_v26  ;;  %v9630_v24 = vld [vmem:[#allocation8 + $0xc0c] ss:$16 sps:$4 sm:$0xff]   ;;  %v9625_v26 = vld [vmem:[#allocation8 + $0xc00] ss:$16 sps:$4 sm:$0xff]  }
 0x4df   :  { %v8763_v39 = vcombine.low %v5948_v48, %v5950_v13 }
 0x4e0   :  { %6683 = vmatpush1.bf16.msra.mxu0 %v8729_v31  ;;  %6769 = vmatpush1.bf16.msra.mxu1 %v8731_v32  ;;  %v8764_v31 = vcombine.high %v5948_v48, %v5950_v13  ;;  %v5951_v32 = vld [vmem:[#allocation5 + $0xd30] sm:$0xff]  ;;  %v9628_v48 = vld [vmem:[#allocation8 + $0xc08] ss:$16 sps:$4 sm:$0xff]  }
 0x4e1   :  { %6684 = vmatprep.subr.bf16.mxu0 %v8734_v34  ;;  %6770 = vmatprep.subr.bf16.mxu1 %v8736_v10  ;;  %v5953_v34 = vld [vmem:[#allocation5 + $0xd70] sm:$0xff]  ;;  %v5952_v10 = vld [vmem:[#allocation5 + $0xd38] sm:$0xff] }
 0x4e2   :  { %v8766_v40 = vcombine.high %v5951_v32, %v5953_v34  ;;  %v8765_v44 = vcombine.low %v5951_v32, %v5953_v34  ;;  %v8767_v45 = vcombine.low %v5952_v10, %v5954_v38  ;;  %v9633_v13 = vld [vmem:[#allocation8 + $0xc24] ss:$16 sps:$4 sm:$0xff]   ;;  %v9642_v32 = vld [vmem:[#allocation8 + $0xc4c] ss:$16 sps:$4 sm:$0xff]   ;;  %v9637_v34 = vld [vmem:[#allocation8 + $0xc40] ss:$16 sps:$4 sm:$0xff]  }
 0x4e4   :  { %6685 = vmatpush1.bf16.msra.mxu0 %v8733_v41  ;;  %6771 = vmatpush1.bf16.msra.mxu1 %v8735_v15  ;;  %v8768_v41 = vcombine.high %v5952_v10, %v5954_v38  ;;  %v5955_v15 = vld [vmem:[#allocation5 + $0xdb0] sm:$0xff]  ;;  %v9640_v10 = vld [vmem:[#allocation8 + $0xc48] ss:$16 sps:$4 sm:$0xff]  }
 0x4e5   :  { %6686 = vmatprep.subr.bf16.mxu0 %v8738_v14  ;;  %6772 = vmatprep.subr.bf16.mxu1 %v8740_v42  ;;  %v5957_v14 = vld [vmem:[#allocation5 + $0xdf0] sm:$0xff]  ;;  %v5956_v42 = vld [vmem:[#allocation5 + $0xdb8] sm:$0xff] }
 0x4e6   :  { %v8770_v46 = vcombine.high %v5955_v15, %v5957_v14  ;;  %v8769_v52 = vcombine.low %v5955_v15, %v5957_v14  ;;  %v8771_v53 = vcombine.low %v5956_v42, %v5958_v43  ;;  %v9645_v38 = vld [vmem:[#allocation8 + $0xc64] ss:$16 sps:$4 sm:$0xff]   ;;  %v9649_v15 = vld [vmem:[#allocation8 + $0xc80] ss:$16 sps:$4 sm:$0xff]   ;;  %v9652_v14 = vld [vmem:[#allocation8 + $0xc88] ss:$16 sps:$4 sm:$0xff]  }
 0x4e8   :  { %6687 = vmatpush1.bf16.msra.mxu0 %v8737_v47  ;;  %6773 = vmatpush1.bf16.msra.mxu1 %v8739_v49  ;;  %v8772_v47 = vcombine.high %v5956_v42, %v5958_v43  ;;  %v5959_v49 = vld [vmem:[#allocation5 + $0xe30] sm:$0xff]  ;;  %v9660_v43 = vld [vmem:[#allocation8 + $0xcac] ss:$16 sps:$4 sm:$0xff]  }
 0x4e9   :  { %6688 = vmatprep.subr.bf16.mxu0 %v8742_v50  ;;  %6774 = vmatprep.subr.bf16.mxu1 %v8744_v25  ;;  %v5961_v50 = vld [vmem:[#allocation5 + $0xe70] sm:$0xff]  ;;  %v5960_v25 = vld [vmem:[#allocation5 + $0xe38] sm:$0xff] }
 0x4ea   :  { %v8774_v55 = vcombine.high %v5959_v49, %v5961_v50  ;;  %v8773_v61 = vcombine.low %v5959_v49, %v5961_v50  ;;  %v8775_v62 = vcombine.low %v5960_v25, %v5962_v51  ;;  %v9657_v42 = vld [vmem:[#allocation8 + $0xca4] ss:$16 sps:$4 sm:$0xff]   ;;  %v9661_v49 = vld [vmem:[#allocation8 + $0xcc0] ss:$16 sps:$4 sm:$0xff]   ;;  %v9664_v50 = vld [vmem:[#allocation8 + $0xcc8] ss:$16 sps:$4 sm:$0xff]  }
 0x4ec   :  { %6689 = vmatpush1.bf16.msra.mxu0 %v8741_v56  ;;  %6775 = vmatpush1.bf16.msra.mxu1 %v8743_v57  ;;  %v8776_v56 = vcombine.high %v5960_v25, %v5962_v51  ;;  %v5963_v57 = vld [vmem:[#allocation5 + $0xeb0] sm:$0xff]  ;;  %v9672_v51 = vld [vmem:[#allocation8 + $0xcec] ss:$16 sps:$4 sm:$0xff]  }
 0x4ed   :  { %6690 = vmatprep.subr.bf16.mxu0 %v8746_v59  ;;  %6776 = vmatprep.subr.bf16.mxu1 %v8748_v60  ;;  %v5965_v59 = vld [vmem:[#allocation5 + $0xef0] sm:$0xff]  ;;  %v5964_v60 = vld [vmem:[#allocation5 + $0xeb8] sm:$0xff] }
 0x4ee   :  { %v8778_v63 = vcombine.high %v5963_v57, %v5965_v59  ;;  %v8777_v5 = vcombine.low %v5963_v57, %v5965_v59  ;;  %v8779_v6 = vcombine.low %v5964_v60, %v5966_v12  ;;  %v9669_v25 = vld [vmem:[#allocation8 + $0xce4] ss:$16 sps:$4 sm:$0xff]   ;;  %v9673_v57 = vld [vmem:[#allocation8 + $0xd00] ss:$16 sps:$4 sm:$0xff]   ;;  %v9676_v59 = vld [vmem:[#allocation8 + $0xd08] ss:$16 sps:$4 sm:$0xff]  }
 0x4f0   :  { %6691 = vmatpush1.bf16.msra.mxu0 %v8745_v0  ;;  %6777 = vmatpush1.bf16.msra.mxu1 %v8747_v1  ;;  %v8780_v0 = vcombine.high %v5964_v60, %v5966_v12  ;;  %v5967_v1 = vld [vmem:[#allocation5 + $0xf30] sm:$0xff]  ;;  %v9684_v12 = vld [vmem:[#allocation8 + $0xd2c] ss:$16 sps:$4 sm:$0xff]  }
 0x4f1   :  { %6692 = vmatprep.subr.bf16.mxu0 %v8750_v2  ;;  %6778 = vmatprep.subr.bf16.mxu1 %v8752_v3  ;;  %v5969_v2 = vld [vmem:[#allocation5 + $0xf70] sm:$0xff]  ;;  %v5968_v3 = vld [vmem:[#allocation5 + $0xf38] sm:$0xff] }
 0x4f2   :  { %v8782_v7 = vcombine.high %v5967_v1, %v5969_v2  ;;  %v8781_v18 = vcombine.low %v5967_v1, %v5969_v2  ;;  %v8783_v19 = vcombine.low %v5968_v3, %v5970_v4  ;;  %v9681_v60 = vld [vmem:[#allocation8 + $0xd24] ss:$16 sps:$4 sm:$0xff]   ;;  %v9685_v1 = vld [vmem:[#allocation8 + $0xd40] ss:$16 sps:$4 sm:$0xff]   ;;  %v9688_v2 = vld [vmem:[#allocation8 + $0xd48] ss:$16 sps:$4 sm:$0xff]  }
 0x4f4   :  { %6693 = vmatpush1.bf16.msra.mxu0 %v8749_v8  ;;  %6779 = vmatpush1.bf16.msra.mxu1 %v8751_v9  ;;  %v8784_v8 = vcombine.high %v5968_v3, %v5970_v4  ;;  %v5971_v9 = vld [vmem:[#allocation5 + $0xfb0] sm:$0xff]  ;;  %v9696_v4 = vld [vmem:[#allocation8 + $0xd6c] ss:$16 sps:$4 sm:$0xff]  }
 0x4f5   :  { %6694 = vmatprep.subr.bf16.mxu0 %v8754_v11  ;;  %6780 = vmatprep.subr.bf16.mxu1 %v8756_v16  ;;  %v5973_v11 = vld [vmem:[#allocation5 + $0xff0] sm:$0xff]  ;;  %v5972_v16 = vld [vmem:[#allocation5 + $0xfb8] sm:$0xff] }
 0x4f6   :  { %v8786_v20 = vcombine.high %v5971_v9, %v5973_v11  ;;  %v9693_v3 = vld [vmem:[#allocation8 + $0xd64] ss:$16 sps:$4 sm:$0xff]  }
 0x4f8   :  { %6695 = vmatpush1.bf16.msra.mxu0 %v8753_v21  ;;  %6781 = vmatpush1.bf16.msra.mxu1 %v8755_v22  ;;  %v8788_v21 = vcombine.high %v5972_v16, %v5974_v17  ;;  %v8785_v22 = vcombine.low %v5971_v9, %v5973_v11  ;;  %v9697_v9 = vld [vmem:[#allocation8 + $0xd80] ss:$16 sps:$4 sm:$0xff]   ;;  %v9700_v11 = vld [vmem:[#allocation8 + $0xd88] ss:$16 sps:$4 sm:$0xff]  }
 0x4f9   :  { %6696 = vmatprep.subr.bf16.mxu0 %v8758_v54  ;;  %6782 = vmatprep.subr.bf16.mxu1 %v8760_v23  ;;  %v8787_v54 = vcombine.low %v5972_v16, %v5974_v17  ;;  %v9627_v23 = vld [vmem:[#allocation8 + $0xc04] ss:$16 sps:$4 sm:$0xff]   ;;  %v9708_v17 = vld [vmem:[#allocation8 + $0xdac] ss:$16 sps:$4 sm:$0xff]  }
 0x4fa   :  { %v9705_v16 = vld [vmem:[#allocation8 + $0xda4] ss:$16 sps:$4 sm:$0xff]  }
 0x4fc   :  { %6697 = vmatpush1.bf16.msra.mxu0 %v8757_v27  ;;  %6783 = vmatpush1.bf16.msra.mxu1 %v8759_v29  ;;  %v9636_v27 = vld [vmem:[#allocation8 + $0xc2c] ss:$16 sps:$4 sm:$0xff]   ;;  %v9631_v29 = vld [vmem:[#allocation8 + $0xc20] ss:$16 sps:$4 sm:$0xff]  }
 0x4fd   :  { %6698 = vmatprep.subr.bf16.mxu0 %v8762_v30  ;;  %6784 = vmatprep.subr.bf16.mxu1 %v8764_v31  ;;  %v9634_v30 = vld [vmem:[#allocation8 + $0xc28] ss:$16 sps:$4 sm:$0xff]   ;;  %v9639_v31 = vld [vmem:[#allocation8 + $0xc44] ss:$16 sps:$4 sm:$0xff]  }
 0x500   :  { %6699 = vmatpush1.bf16.msra.mxu0 %v8761_v58  ;;  %6785 = vmatpush1.bf16.msra.mxu1 %v8763_v39  ;;  %v9648_v58 = vld [vmem:[#allocation8 + $0xc6c] ss:$16 sps:$4 sm:$0xff]   ;;  %v9643_v39 = vld [vmem:[#allocation8 + $0xc60] ss:$16 sps:$4 sm:$0xff]  }
 0x501   :  { %6700 = vmatprep.subr.bf16.mxu0 %v8766_v40  ;;  %6786 = vmatprep.subr.bf16.mxu1 %v8768_v41  ;;  %v9651_v40 = vld [vmem:[#allocation8 + $0xc84] ss:$16 sps:$4 sm:$0xff]   ;;  %v9654_v41 = vld [vmem:[#allocation8 + $0xc8c] ss:$16 sps:$4 sm:$0xff]  }
 0x504   :  { %6701 = vmatpush1.bf16.msra.mxu0 %v8765_v44  ;;  %6787 = vmatpush1.bf16.msra.mxu1 %v8767_v45  ;;  %v9655_v44 = vld [vmem:[#allocation8 + $0xca0] ss:$16 sps:$4 sm:$0xff]   ;;  %v9658_v45 = vld [vmem:[#allocation8 + $0xca8] ss:$16 sps:$4 sm:$0xff]  }
 0x505   :  { %6702 = vmatprep.subr.bf16.mxu0 %v8770_v46  ;;  %6788 = vmatprep.subr.bf16.mxu1 %v8772_v47  ;;  %v9663_v46 = vld [vmem:[#allocation8 + $0xcc4] ss:$16 sps:$4 sm:$0xff]   ;;  %v9666_v47 = vld [vmem:[#allocation8 + $0xccc] ss:$16 sps:$4 sm:$0xff]  }
 0x508   :  { %6703 = vmatpush1.bf16.msra.mxu0 %v8769_v52  ;;  %6789 = vmatpush1.bf16.msra.mxu1 %v8771_v53  ;;  %v9667_v52 = vld [vmem:[#allocation8 + $0xce0] ss:$16 sps:$4 sm:$0xff]   ;;  %v9670_v53 = vld [vmem:[#allocation8 + $0xce8] ss:$16 sps:$4 sm:$0xff]  }
 0x509   :  { %6704 = vmatprep.subr.bf16.mxu0 %v8774_v55  ;;  %6790 = vmatprep.subr.bf16.mxu1 %v8776_v56  ;;  %v9675_v55 = vld [vmem:[#allocation8 + $0xd04] ss:$16 sps:$4 sm:$0xff]   ;;  %v9678_v56 = vld [vmem:[#allocation8 + $0xd0c] ss:$16 sps:$4 sm:$0xff]  }
 0x50c   :  { %6705 = vmatpush1.bf16.msra.mxu0 %v8773_v61  ;;  %6791 = vmatpush1.bf16.msra.mxu1 %v8775_v62  ;;  %v9679_v61 = vld [vmem:[#allocation8 + $0xd20] ss:$16 sps:$4 sm:$0xff]   ;;  %v9682_v62 = vld [vmem:[#allocation8 + $0xd28] ss:$16 sps:$4 sm:$0xff]  }
 0x50d   :  { %6706 = vmatprep.subr.bf16.mxu0 %v8778_v63  ;;  %6792 = vmatprep.subr.bf16.mxu1 %v8780_v0  ;;  %v9687_v63 = vld [vmem:[#allocation8 + $0xd44] ss:$16 sps:$4 sm:$0xff]   ;;  %v9690_v0 = vld [vmem:[#allocation8 + $0xd4c] ss:$16 sps:$4 sm:$0xff]  }
 0x510   :  { %6707 = vmatpush1.bf16.msra.mxu0 %v8777_v5  ;;  %6793 = vmatpush1.bf16.msra.mxu1 %v8779_v6  ;;  %v9691_v5 = vld [vmem:[#allocation8 + $0xd60] ss:$16 sps:$4 sm:$0xff]   ;;  %v9694_v6 = vld [vmem:[#allocation8 + $0xd68] ss:$16 sps:$4 sm:$0xff]  }
 0x511   :  { %6708 = vmatprep.subr.bf16.mxu0 %v8782_v7  ;;  %6794 = vmatprep.subr.bf16.mxu1 %v8784_v8  ;;  %v9699_v7 = vld [vmem:[#allocation8 + $0xd84] ss:$16 sps:$4 sm:$0xff]   ;;  %v9702_v8 = vld [vmem:[#allocation8 + $0xd8c] ss:$16 sps:$4 sm:$0xff]  }
 0x514   :  { %6709 = vmatpush1.bf16.msra.mxu0 %v8781_v18  ;;  %6795 = vmatpush1.bf16.msra.mxu1 %v8783_v19  ;;  %v9703_v18 = vld [vmem:[#allocation8 + $0xda0] ss:$16 sps:$4 sm:$0xff]   ;;  %v9706_v19 = vld [vmem:[#allocation8 + $0xda8] ss:$16 sps:$4 sm:$0xff]  }
 0x515   :  { %6710 = vmatprep.subr.bf16.mxu0 %v8786_v20  ;;  %6796 = vmatprep.subr.bf16.mxu1 %v8788_v21  ;;  %v9711_v20 = vld [vmem:[#allocation8 + $0xdc4] ss:$16 sps:$4 sm:$0xff]   ;;  %v9714_v21 = vld [vmem:[#allocation8 + $0xdcc] ss:$16 sps:$4 sm:$0xff]  }
 0x518   :  { %6711 = vmatpush1.bf16.msra.mxu0 %v8785_v22  ;;  %6797 = vmatpush1.bf16.msra.mxu1 %v8787_v54  ;;  %v9709_v22 = vld [vmem:[#allocation8 + $0xdc0] ss:$16 sps:$4 sm:$0xff]   ;;  %v9712_v54 = vld [vmem:[#allocation8 + $0xdc8] ss:$16 sps:$4 sm:$0xff]  }
 0x519   :  { %7589 = vmatprep.subr.bf16.mxu0 %v9627_v23  ;;  %7675 = vmatprep.subr.bf16.mxu1 %v9630_v24  ;;  %v9717_v23 = vld [vmem:[#allocation8 + $0xde4] ss:$16 sps:$4 sm:$0xff]   ;;  %v9720_v24 = vld [vmem:[#allocation8 + $0xdec] ss:$16 sps:$4 sm:$0xff]  }
 0x51b   :  { %6713 = vmatmul.mubr.bf16.vlgmr.msra.gmra.mrb[16].mxu0 %v10086_v28  ;;  %6799 = vmatmul.mubr.bf16.vlgmr.msra.gmra.mrb[16].mxu1 %v10086_v28  ;;  %v9646_v28 = vld [vmem:[#allocation8 + $0xc68] ss:$16 sps:$4 sm:$0xff]  }
 0x51c   :  { %7590 = vmatpush1.bf16.msra.mxu0 %v9625_v26  ;;  %7676 = vmatpush1.bf16.msra.mxu1 %v9628_v48  ;;  %v9715_v26 = vld [vmem:[#allocation8 + $0xde0] ss:$16 sps:$4 sm:$0xff]   ;;  %v9718_v48 = vld [vmem:[#allocation8 + $0xde8] ss:$16 sps:$4 sm:$0xff]  }
 0x51d   :  { %7591 = vmatprep.subr.bf16.mxu0 %v9633_v13  ;;  %7677 = vmatprep.subr.bf16.mxu1 %v9636_v27  ;;  %v9723_v13 = vld [vmem:[#allocation8 + $0xe04] ss:$16 sps:$4 sm:$0xff]   ;;  %v9726_v27 = vld [vmem:[#allocation8 + $0xe0c] ss:$16 sps:$4 sm:$0xff]  }
 0x520   :  { %7592 = vmatpush1.bf16.msra.mxu0 %v9631_v29  ;;  %7678 = vmatpush1.bf16.msra.mxu1 %v9634_v30  ;;  %v5975_v29 = vld [vmem:[#allocation7 + $0xc] sm:$0xf] }
 0x521   :  { %7593 = vmatprep.subr.bf16.mxu0 %v9639_v31  ;;  %7679 = vmatprep.subr.bf16.mxu1 %v9642_v32  ;;  %v5980_v30 = vrot.slane %v5975_v29, %v10098_v33  ;;  %v5988_v31 = vrot.slane %v5975_v29, %v10100_v35  ;;  %v5984_v32 = vrot.slane %v5975_v29, %v10102_v36 }
 0x524   :  { %7594 = vmatpush1.bf16.msra.mxu0 %v9637_v34  ;;  %7680 = vmatpush1.bf16.msra.mxu1 %v9640_v10  ;;  %v5992_v34 = vrot.slane %v5975_v29, %v10104_v37  ;;  %v9768_v29 = vld [vmem:[#allocation8 + $0xeec] ss:$16 sps:$4 sm:$0xff]  }
 0x525   :  { %7595 = vmatprep.subr.bf16.mxu0 %v9645_v38  ;;  %7681 = vmatprep.subr.bf16.mxu1 %v9648_v58 }
 0x528   :  { %7596 = vmatpush1.bf16.msra.mxu0 %v9643_v39  ;;  %7682 = vmatpush1.bf16.msra.mxu1 %v9646_v28 }
 0x529   :  { %7597 = vmatprep.subr.bf16.mxu0 %v9651_v40  ;;  %7683 = vmatprep.subr.bf16.mxu1 %v9654_v41 }
 0x52c   :  { %7598 = vmatpush1.bf16.msra.mxu0 %v9649_v15  ;;  %7684 = vmatpush1.bf16.msra.mxu1 %v9652_v14 }
 0x52d   :  { %7599 = vmatprep.subr.bf16.mxu0 %v9657_v42  ;;  %7685 = vmatprep.subr.bf16.mxu1 %v9660_v43 }
 0x530   :  { %7600 = vmatpush1.bf16.msra.mxu0 %v9655_v44  ;;  %7686 = vmatpush1.bf16.msra.mxu1 %v9658_v45 }
 0x531   :  { %7601 = vmatprep.subr.bf16.mxu0 %v9663_v46  ;;  %7687 = vmatprep.subr.bf16.mxu1 %v9666_v47 }
 0x534   :  { %7602 = vmatpush1.bf16.msra.mxu0 %v9661_v49  ;;  %7688 = vmatpush1.bf16.msra.mxu1 %v9664_v50 }
 0x535   :  { %7603 = vmatprep.subr.bf16.mxu0 %v9669_v25  ;;  %7689 = vmatprep.subr.bf16.mxu1 %v9672_v51 }
 0x538   :  { %7604 = vmatpush1.bf16.msra.mxu0 %v9667_v52  ;;  %7690 = vmatpush1.bf16.msra.mxu1 %v9670_v53 }
 0x539   :  { %7605 = vmatprep.subr.bf16.mxu0 %v9675_v55  ;;  %7691 = vmatprep.subr.bf16.mxu1 %v9678_v56 }
 0x53c   :  { %7606 = vmatpush1.bf16.msra.mxu0 %v9673_v57  ;;  %7692 = vmatpush1.bf16.msra.mxu1 %v9676_v59 }
 0x53d   :  { %7607 = vmatprep.subr.bf16.mxu0 %v9681_v60  ;;  %7693 = vmatprep.subr.bf16.mxu1 %v9684_v12 }
 0x540   :  { %7608 = vmatpush1.bf16.msra.mxu0 %v9679_v61  ;;  %7694 = vmatpush1.bf16.msra.mxu1 %v9682_v62  ;;  %v9721_v62 = vld [vmem:[#allocation8 + $0xe00] ss:$16 sps:$4 sm:$0xff]  }
 0x541   :  { %7609 = vmatprep.subr.bf16.mxu0 %v9687_v63  ;;  %7695 = vmatprep.subr.bf16.mxu1 %v9690_v0  ;;  %v9724_v63 = vld [vmem:[#allocation8 + $0xe08] ss:$16 sps:$4 sm:$0xff]   ;;  %v9729_v0 = vld [vmem:[#allocation8 + $0xe24] ss:$16 sps:$4 sm:$0xff]  }
 0x544   :  { %7610 = vmatpush1.bf16.msra.mxu0 %v9685_v1  ;;  %7696 = vmatpush1.bf16.msra.mxu1 %v9688_v2  ;;  %v9732_v1 = vld [vmem:[#allocation8 + $0xe2c] ss:$16 sps:$4 sm:$0xff]   ;;  %v9727_v2 = vld [vmem:[#allocation8 + $0xe20] ss:$16 sps:$4 sm:$0xff]  }
 0x545   :  { %7611 = vmatprep.subr.bf16.mxu0 %v9693_v3  ;;  %7697 = vmatprep.subr.bf16.mxu1 %v9696_v4  ;;  %v9730_v3 = vld [vmem:[#allocation8 + $0xe28] ss:$16 sps:$4 sm:$0xff]   ;;  %v9735_v4 = vld [vmem:[#allocation8 + $0xe44] ss:$16 sps:$4 sm:$0xff]  }
 0x548   :  { %7612 = vmatpush1.bf16.msra.mxu0 %v9691_v5  ;;  %7698 = vmatpush1.bf16.msra.mxu1 %v9694_v6  ;;  %v9738_v5 = vld [vmem:[#allocation8 + $0xe4c] ss:$16 sps:$4 sm:$0xff]   ;;  %v9733_v6 = vld [vmem:[#allocation8 + $0xe40] ss:$16 sps:$4 sm:$0xff]  }
 0x549   :  { %7613 = vmatprep.subr.bf16.mxu0 %v9699_v7  ;;  %7699 = vmatprep.subr.bf16.mxu1 %v9702_v8  ;;  %v9736_v7 = vld [vmem:[#allocation8 + $0xe48] ss:$16 sps:$4 sm:$0xff]   ;;  %v9741_v8 = vld [vmem:[#allocation8 + $0xe64] ss:$16 sps:$4 sm:$0xff]  }
 0x54c   :  { %7614 = vmatpush1.bf16.msra.mxu0 %v9697_v9  ;;  %7700 = vmatpush1.bf16.msra.mxu1 %v9700_v11  ;;  %v9744_v9 = vld [vmem:[#allocation8 + $0xe6c] ss:$16 sps:$4 sm:$0xff]   ;;  %v9739_v11 = vld [vmem:[#allocation8 + $0xe60] ss:$16 sps:$4 sm:$0xff]  }
 0x54d   :  { %7615 = vmatprep.subr.bf16.mxu0 %v9705_v16  ;;  %7701 = vmatprep.subr.bf16.mxu1 %v9708_v17  ;;  %v9742_v16 = vld [vmem:[#allocation8 + $0xe68] ss:$16 sps:$4 sm:$0xff]   ;;  %v9747_v17 = vld [vmem:[#allocation8 + $0xe84] ss:$16 sps:$4 sm:$0xff]  }
 0x550   :  { %7616 = vmatpush1.bf16.msra.mxu0 %v9703_v18  ;;  %7702 = vmatpush1.bf16.msra.mxu1 %v9706_v19  ;;  %v9750_v18 = vld [vmem:[#allocation8 + $0xe8c] ss:$16 sps:$4 sm:$0xff]   ;;  %v9745_v19 = vld [vmem:[#allocation8 + $0xe80] ss:$16 sps:$4 sm:$0xff]  }
 0x551   :  { %7617 = vmatprep.subr.bf16.mxu0 %v9711_v20  ;;  %7703 = vmatprep.subr.bf16.mxu1 %v9714_v21  ;;  %v9748_v20 = vld [vmem:[#allocation8 + $0xe88] ss:$16 sps:$4 sm:$0xff]   ;;  %v9753_v21 = vld [vmem:[#allocation8 + $0xea4] ss:$16 sps:$4 sm:$0xff]  }
 0x554   :  { %7618 = vmatpush1.bf16.msra.mxu0 %v9709_v22  ;;  %7704 = vmatpush1.bf16.msra.mxu1 %v9712_v54  ;;  %v9756_v22 = vld [vmem:[#allocation8 + $0xeac] ss:$16 sps:$4 sm:$0xff]   ;;  %v9751_v54 = vld [vmem:[#allocation8 + $0xea0] ss:$16 sps:$4 sm:$0xff]  }
 0x555   :  { %7619 = vmatprep.subr.bf16.mxu0 %v9717_v23  ;;  %7705 = vmatprep.subr.bf16.mxu1 %v9720_v24  ;;  %v9754_v23 = vld [vmem:[#allocation8 + $0xea8] ss:$16 sps:$4 sm:$0xff]   ;;  %v9759_v24 = vld [vmem:[#allocation8 + $0xec4] ss:$16 sps:$4 sm:$0xff]  }
 0x558   :  { %7620 = vmatpush1.bf16.msra.mxu0 %v9715_v26  ;;  %7706 = vmatpush1.bf16.msra.mxu1 %v9718_v48  ;;  %v9762_v26 = vld [vmem:[#allocation8 + $0xecc] ss:$16 sps:$4 sm:$0xff]   ;;  %v9757_v48 = vld [vmem:[#allocation8 + $0xec0] ss:$16 sps:$4 sm:$0xff]  }
 0x559   :  { %7632 = vmatprep.subr.bf16.mxu0 %v9723_v13  ;;  %7718 = vmatprep.subr.bf16.mxu1 %v9726_v27  ;;  %v9760_v13 = vld [vmem:[#allocation8 + $0xec8] ss:$16 sps:$4 sm:$0xff]   ;;  %v9765_v27 = vld [vmem:[#allocation8 + $0xee4] ss:$16 sps:$4 sm:$0xff]  }
 0x5ee   :  { %v6714_v10 = vpop.f32.mrb[16].mxu0  ;;  %v6800_v38 = vpop.f32.mrb[16].mxu1 }
 0x5ef   :  { %v8941_v58 = vadd.f32 %v6714_v10, %v5980_v30  ;;  %v8945_v39 = vadd.f32 %v6800_v38, %v5988_v31  ;;  %v6716_v28 = vpop.f32.mrb[17].mxu0  ;;  %v6802_v40 = vpop.f32.mrb[17].mxu1  ;;  %v9769_v10 = vld [vmem:[#allocation8 + $0xf00] ss:$16 sps:$4 sm:$0xff]   ;;  %v9772_v38 = vld [vmem:[#allocation8 + $0xf08] ss:$16 sps:$4 sm:$0xff]  }
 0x5f0   :  { %v8942_v41 = vadd.f32 %v6716_v28, %v5984_v32  ;;  %v8946_v15 = vadd.f32 %v6802_v40, %v5992_v34  ;;  %v6718_v14 = vpop.f32.mrb[18].mxu0  ;;  %v6804_v42 = vpop.f32.mrb[18].mxu1  ;;  %v9775_v28 = vld [vmem:[#allocation8 + $0xf20] ss:$16 sps:$4 sm:$0xff]   ;;  %v9778_v40 = vld [vmem:[#allocation8 + $0xf28] ss:$16 sps:$4 sm:$0xff]  }
 0x5f1   :  { %v8943_v43 = vadd.f32 %v6718_v14, %v5980_v30  ;;  %v8947_v44 = vadd.f32 %v6804_v42, %v5988_v31  ;;  %v6720_v45 = vpop.f32.mrb[19].mxu0  ;;  %v6806_v46 = vpop.f32.mrb[19].mxu1  ;;  %v6809_v50 = vmax.f32 %v8941_v58, 0.0  ;;  %v6811_v25 = vmax.f32 %v8945_v39, 0.0  ;;  %v9763_v30 = vld [vmem:[#allocation8 + $0xee0] ss:$16 sps:$4 sm:$0xff]  }
 0x5f2   :  { %v8944_v47 = vadd.f32 %v6720_v45, %v5984_v32  ;;  %v8948_v49 = vadd.f32 %v6806_v46, %v5992_v34  ;;  %v6810_v53 = vmax.f32 %v8942_v41, 0.0  ;;  %v6812_v55 = vmax.f32 %v8946_v15, 0.0  ;;  %v9766_v31 = vld [vmem:[#allocation8 + $0xee8] ss:$16 sps:$4 sm:$0xff]   ;;  %v9771_v32 = vld [vmem:[#allocation8 + $0xf04] ss:$16 sps:$4 sm:$0xff]  }
 0x5f3   :  { %v6813_v51 = vmax.f32 %v8943_v43, 0.0  ;;  %v6815_v52 = vmax.f32 %v8947_v44, 0.0  ;;  %v9774_v34 = vld [vmem:[#allocation8 + $0xf0c] ss:$16 sps:$4 sm:$0xff]   ;;  %v9777_v58 = vld [vmem:[#allocation8 + $0xf24] ss:$16 sps:$4 sm:$0xff]  }
 0x5f4   :  { %v6814_v56 = vmax.f32 %v8944_v47, 0.0  ;;  %v6816_v57 = vmax.f32 %v8948_v49, 0.0  ;;  %v9780_v39 = vld [vmem:[#allocation8 + $0xf2c] ss:$16 sps:$4 sm:$0xff]   ;;  %v9783_v41 = vld [vmem:[#allocation8 + $0xf44] ss:$16 sps:$4 sm:$0xff]  }
 0x5f5   :  { %v6817_v59 = vpack.c.bf16 %v6813_v51, %v6809_v50  ;;  %v10162_v60 = vpack.c.bf16 %v6815_v52, %v6811_v25  ;;  %v9786_v15 = vld [vmem:[#allocation8 + $0xf4c] ss:$16 sps:$4 sm:$0xff]   ;;  %v9781_v14 = vld [vmem:[#allocation8 + $0xf40] ss:$16 sps:$4 sm:$0xff]   ;;  %v9784_v42 = vld [vmem:[#allocation8 + $0xf48] ss:$16 sps:$4 sm:$0xff]  }
 0x5f6   :  { %v6818_v12 = vpack.c.bf16 %v6814_v56, %v6810_v53  ;;  %v6820_v61 = vpack.c.bf16 %v6816_v57, %v6812_v55  ;;  %v9789_v43 = vld [vmem:[#allocation8 + $0xf64] ss:$16 sps:$4 sm:$0xff]   ;;  %v9792_v44 = vld [vmem:[#allocation8 + $0xf6c] ss:$16 sps:$4 sm:$0xff]   ;;  %v9787_v45 = vld [vmem:[#allocation8 + $0xf60] ss:$16 sps:$4 sm:$0xff]  }
 0x5f7   :  { %v9790_v46 = vld [vmem:[#allocation8 + $0xf68] ss:$16 sps:$4 sm:$0xff]   ;;  %v9795_v47 = vld [vmem:[#allocation8 + $0xf84] ss:$16 sps:$4 sm:$0xff]   ;;  %v9798_v49 = vld [vmem:[#allocation8 + $0xf8c] ss:$16 sps:$4 sm:$0xff]  }
 0x5f8   :  { %7621 = vmatprep.mubr.bf16.mxu0 %v6818_v12  ;;  %7707 = vmatprep.mubr.bf16.mxu1 %v6818_v12  ;;  %v9793_v50 = vld [vmem:[#allocation8 + $0xf80] ss:$16 sps:$4 sm:$0xff]   ;;  %v9796_v25 = vld [vmem:[#allocation8 + $0xf88] ss:$16 sps:$4 sm:$0xff]   ;;  %v9801_v51 = vld [vmem:[#allocation8 + $0xfa4] ss:$16 sps:$4 sm:$0xff]  }
 0x5f9   :  { %7622 = vmatmul.mubr.bf16.vlgmr.msra.gmra.mrb[8].mxu0 %v6817_v59  ;;  %7708 = vmatmul.mubr.bf16.vlgmr.msra.gmra.mrb[8].mxu1 %v6817_v59  ;;  %v9804_v52 = vld [vmem:[#allocation8 + $0xfac] ss:$16 sps:$4 sm:$0xff]   ;;  %v9799_v53 = vld [vmem:[#allocation8 + $0xfa0] ss:$16 sps:$4 sm:$0xff]   ;;  %v9802_v55 = vld [vmem:[#allocation8 + $0xfa8] ss:$16 sps:$4 sm:$0xff]  }
 0x5fa   :  { %7633 = vmatpush1.bf16.msra.mxu0 %v9721_v62  ;;  %7719 = vmatpush1.bf16.msra.mxu1 %v9724_v63  ;;  %v9807_v56 = vld [vmem:[#allocation8 + $0xfc4] ss:$16 sps:$4 sm:$0xff]   ;;  %v9810_v57 = vld [vmem:[#allocation8 + $0xfcc] ss:$16 sps:$4 sm:$0xff]   ;;  %v9805_v59 = vld [vmem:[#allocation8 + $0xfc0] ss:$16 sps:$4 sm:$0xff]  }
 0x5fb   :  { %7664 = vmatprep.mubr.bf16.mxu0 %v6820_v61  ;;  %7750 = vmatprep.mubr.bf16.mxu1 %v6820_v61  ;;  %v9808_v12 = vld [vmem:[#allocation8 + $0xfc8] ss:$16 sps:$4 sm:$0xff]   ;;  %v9813_v61 = vld [vmem:[#allocation8 + $0xfe4] ss:$16 sps:$4 sm:$0xff]   ;;  %v9816_v62 = vld [vmem:[#allocation8 + $0xfec] ss:$16 sps:$4 sm:$0xff]  }
 0x5fc   :  { %7634 = vmatprep.subr.bf16.mxu0 %v9729_v0  ;;  %7720 = vmatprep.subr.bf16.mxu1 %v9732_v1  ;;  %v9811_v63 = vld [vmem:[#allocation8 + $0xfe0] ss:$16 sps:$4 sm:$0xff]   ;;  %v9814_v0 = vld [vmem:[#allocation8 + $0xfe8] ss:$16 sps:$4 sm:$0xff]  }
 0x5fd   :  { %v7769_v1 = vld [vmem:[#allocation10] sm:$0xf] }
 0x5fe   :  { %7635 = vmatpush1.bf16.msra.mxu0 %v9727_v2  ;;  %7721 = vmatpush1.bf16.msra.mxu1 %v9730_v3  ;;  %v7774_v2 = vrot.slane %v7769_v1, %v10098_v33  ;;  %v7782_v3 = vrot.slane %v7769_v1, %v10100_v35  ;;  %v9822_v33 = vld [vmem:[#allocation2 + $0x10] sm:$0xff] }
 0x5ff   :  { %7636 = vmatprep.subr.bf16.mxu0 %v9735_v4  ;;  %7722 = vmatprep.subr.bf16.mxu1 %v9738_v5  ;;  %v7778_v4 = vrot.slane %v7769_v1, %v10102_v36  ;;  %v7786_v5 = vrot.slane %v7769_v1, %v10104_v37 }
 0x602   :  { %7637 = vmatpush1.bf16.msra.mxu0 %v9733_v6  ;;  %7723 = vmatpush1.bf16.msra.mxu1 %v9736_v7 }
 0x603   :  { %7638 = vmatprep.subr.bf16.mxu0 %v9741_v8  ;;  %7724 = vmatprep.subr.bf16.mxu1 %v9744_v9 }
 0x606   :  { %7639 = vmatpush1.bf16.msra.mxu0 %v9739_v11  ;;  %7725 = vmatpush1.bf16.msra.mxu1 %v9742_v16 }
 0x607   :  { %7640 = vmatprep.subr.bf16.mxu0 %v9747_v17  ;;  %7726 = vmatprep.subr.bf16.mxu1 %v9750_v18 }
 0x60a   :  { %7641 = vmatpush1.bf16.msra.mxu0 %v9745_v19  ;;  %7727 = vmatpush1.bf16.msra.mxu1 %v9748_v20 }
 0x60b   :  { %7642 = vmatprep.subr.bf16.mxu0 %v9753_v21  ;;  %7728 = vmatprep.subr.bf16.mxu1 %v9756_v22 }
 0x60e   :  { %7643 = vmatpush1.bf16.msra.mxu0 %v9751_v54  ;;  %7729 = vmatpush1.bf16.msra.mxu1 %v9754_v23  ;;  %v9823_v23 = vld [vmem:[#allocation2 + $0x8] sm:$0xff] }
 0x60f   :  { %7644 = vmatprep.subr.bf16.mxu0 %v9759_v24  ;;  %7730 = vmatprep.subr.bf16.mxu1 %v9762_v26  ;;  %v9824_v26 = vld [vmem:[#allocation2 + $0x18] sm:$0xff] }
 0x612   :  { %7645 = vmatpush1.bf16.msra.mxu0 %v9757_v48  ;;  %7731 = vmatpush1.bf16.msra.mxu1 %v9760_v13 }
 0x613   :  { %7646 = vmatprep.subr.bf16.mxu0 %v9765_v27  ;;  %7732 = vmatprep.subr.bf16.mxu1 %v9768_v29  ;;  %v9825_v27 = vld [vmem:[#allocation2 + $0x20] sm:$0xff] }
 0x616   :  { %7647 = vmatpush1.bf16.msra.mxu0 %v9763_v30  ;;  %7733 = vmatpush1.bf16.msra.mxu1 %v9766_v31  ;;  %v9826_v30 = vld [vmem:[#allocation2 + $0x30] sm:$0xff] }
 0x617   :  { %7648 = vmatprep.subr.bf16.mxu0 %v9771_v32  ;;  %7734 = vmatprep.subr.bf16.mxu1 %v9774_v34 }
 0x61a   :  { %7649 = vmatpush1.bf16.msra.mxu0 %v9769_v10  ;;  %7735 = vmatpush1.bf16.msra.mxu1 %v9772_v38  ;;  %v9827_v10 = vld [vmem:[#allocation2 + $0x28] sm:$0xff] }
 0x61b   :  { %7650 = vmatprep.subr.bf16.mxu0 %v9777_v58  ;;  %7736 = vmatprep.subr.bf16.mxu1 %v9780_v39 }
 0x61e   :  { %7651 = vmatpush1.bf16.msra.mxu0 %v9775_v28  ;;  %7737 = vmatpush1.bf16.msra.mxu1 %v9778_v40 }
 0x61f   :  { %7652 = vmatprep.subr.bf16.mxu0 %v9783_v41  ;;  %7738 = vmatprep.subr.bf16.mxu1 %v9786_v15 }
 0x622   :  { %7653 = vmatpush1.bf16.msra.mxu0 %v9781_v14  ;;  %7739 = vmatpush1.bf16.msra.mxu1 %v9784_v42 }
 0x623   :  { %7654 = vmatprep.subr.bf16.mxu0 %v9789_v43  ;;  %7740 = vmatprep.subr.bf16.mxu1 %v9792_v44  ;;  %v9828_v43 = vld [vmem:[#allocation2 + $0x38] sm:$0xff] }
 0x626   :  { %7655 = vmatpush1.bf16.msra.mxu0 %v9787_v45  ;;  %7741 = vmatpush1.bf16.msra.mxu1 %v9790_v46 }
 0x627   :  { %7656 = vmatprep.subr.bf16.mxu0 %v9795_v47  ;;  %7742 = vmatprep.subr.bf16.mxu1 %v9798_v49 }
 0x62a   :  { %7657 = vmatpush1.bf16.msra.mxu0 %v9793_v50  ;;  %7743 = vmatpush1.bf16.msra.mxu1 %v9796_v25 }
 0x62b   :  { %7658 = vmatprep.subr.bf16.mxu0 %v9801_v51  ;;  %7744 = vmatprep.subr.bf16.mxu1 %v9804_v52 }
 0x62e   :  { %7659 = vmatpush1.bf16.msra.mxu0 %v9799_v53  ;;  %7745 = vmatpush1.bf16.msra.mxu1 %v9802_v55 }
 0x62f   :  { %7660 = vmatprep.subr.bf16.mxu0 %v9807_v56  ;;  %7746 = vmatprep.subr.bf16.mxu1 %v9810_v57 }
 0x632   :  { %7661 = vmatpush1.bf16.msra.mxu0 %v9805_v59  ;;  %7747 = vmatpush1.bf16.msra.mxu1 %v9808_v12 }
 0x633   :  { %7662 = vmatprep.subr.bf16.mxu0 %v9813_v61  ;;  %7748 = vmatprep.subr.bf16.mxu1 %v9816_v62 }
 0x636   :  { %7663 = vmatpush1.bf16.msra.mxu0 %v9811_v63  ;;  %7749 = vmatpush1.bf16.msra.mxu1 %v9814_v0 }
 0x639   :  { %7665 = vmatmul.mubr.bf16.vlgmr.msra.gmra.mrb[8].mxu0 %v10162_v60  ;;  %7751 = vmatmul.mubr.bf16.vlgmr.msra.gmra.mrb[8].mxu1 %v10162_v60  ;;  %v9821_v60 = vld [vmem:[#allocation2] sm:$0xff] }
 0x70c   :  { %v7666_v6 = vpop.f32.mrb[8].mxu0  ;;  %v7752_v7 = vpop.f32.mrb[8].mxu1 }
 0x70d   :  { %v7791_v8 = vadd.f32 %v7774_v2, %v7666_v6  ;;  %v7793_v9 = vadd.f32 %v7782_v3, %v7752_v7  ;;  %v7668_v11 = vpop.f32.mrb[9].mxu0  ;;  %v7754_v16 = vpop.f32.mrb[9].mxu1 }
 0x70e   :  { %v7792_v17 = vadd.f32 %v7778_v4, %v7668_v11  ;;  %v7794_v18 = vadd.f32 %v7786_v5, %v7754_v16  ;;  %v7670_v19 = vpop.f32.mrb[10].mxu0  ;;  %v7756_v20 = vpop.f32.mrb[10].mxu1 }
 0x70f   :  { %v10170_v21 = vadd.f32 %v9821_v60, %v7791_v8  ;;  %v10172_v22 = vadd.f32 %v9822_v33, %v7793_v9  ;;  %v7795_v35 = vadd.f32 %v7774_v2, %v7670_v19  ;;  %v7797_v36 = vadd.f32 %v7782_v3, %v7756_v20  ;;  %v7672_v54 = vpop.f32.mrb[11].mxu0  ;;  %v7758_v37 = vpop.f32.mrb[11].mxu1 }
 0x710   :  { %v7800_v24 = vadd.f32 %v9823_v23, %v7792_v17  ;;  %v7802_v48 = vadd.f32 %v9824_v26, %v7794_v18  ;;  %v7796_v13 = vadd.f32 %v7778_v4, %v7672_v54  ;;  %v7798_v32 = vadd.f32 %v7786_v5, %v7758_v37 }
 0x711   :  { %v10174_v29 = vadd.f32 %v9825_v27, %v7795_v35  ;;  %v10176_v31 = vadd.f32 %v9826_v30, %v7797_v36  ;;  %v7820_v34 = vmul.f32 %v10170_v21, %v10170_v21  ;;  %v7822_v40 = vmul.f32 %v10172_v22, %v10172_v22 }
 0x712   :  { %v10180_v38 = vadd.f32 %v9827_v10, %v7796_v13  ;;  %v7807_v58 = vadd.f32 %v7800_v24, %v10170_v21  ;;  %v7821_v39 = vmul.f32 %v7800_v24, %v7800_v24  ;;  %v7806_v44 = vadd.f32 %v9828_v43, %v7798_v32 }
 0x713   :  { %v7824_v28 = vmul.f32 %v10174_v29, %v10174_v29  ;;  %v7823_v45 = vmul.f32 %v7802_v48, %v7802_v48  ;;  %v7826_v46 = vmul.f32 %v10176_v31, %v10176_v31 }
 0x714   :  { %v7825_v41 = vmul.f32 %v10180_v38, %v10180_v38  ;;  %v7808_v15 = vadd.f32 %v7807_v58, %v10172_v22  ;;  %v7828_v14 = vadd.f32 %v7821_v39, %v7820_v34  ;;  %v7812_v42 = vadd.f32 %v10180_v38, %v10174_v29 }
 0x715   :  { %v7827_v55 = vmul.f32 %v7806_v44, %v7806_v44 }
 0x716   :  { %v7809_v47 = vadd.f32 %v7808_v15, %v7802_v48  ;;  %v7829_v49 = vadd.f32 %v7828_v14, %v7822_v40  ;;  %v7813_v50 = vadd.f32 %v7812_v42, %v10176_v31  ;;  %v7833_v25 = vadd.f32 %v7825_v41, %v7824_v28 }
 0x718   :  { %7810 = vadd.xlane.f32.xlu0 %v7809_v47  ;;  %v7830_v51 = vadd.f32 %v7829_v49, %v7823_v45  ;;  %v7834_v52 = vadd.f32 %v7833_v25, %v7826_v46  ;;  %v7814_v53 = vadd.f32 %v7813_v50, %v7806_v44 }
 0x71a   :  { %7831 = vadd.xlane.f32.xlu1 %v7830_v51  ;;  %v7835_v56 = vadd.f32 %v7834_v52, %v7827_v55 }
 0x71c   :  { %7815 = vadd.xlane.f32.xlu0 %v7814_v53 }
 0x71e   :  { %7836 = vadd.xlane.f32.xlu1 %v7835_v56 }
 0x7a5   :  { %v7811_v57 = vpop.xlane.xlu0 %7810 }
 0x7a6   :  { %v7818_v59 = vmul.f32 0.001953125, %v7811_v57 }
 0x7a7   :  { %v7832_v12 = vpop.xlane.xlu1 %7831 }
 0x7a8   :  { %v7838_v61 = vmul.f32 0.001953125, %v7832_v12  ;;  %v7840_v62 = vmul.f32 %v7818_v59, %v7818_v59  ;;  %v7846_v11 = vsub.f32 %v10170_v21, %v7818_v59  ;;  %v7847_v16 = vsub.f32 %v7800_v24, %v7818_v59 }
 0x7a9   :  { %v7816_v63 = vpop.xlane.xlu0 %7815  ;;  %v7848_v17 = vsub.f32 %v10172_v22, %v7818_v59  ;;  %v7849_v18 = vsub.f32 %v7802_v48, %v7818_v59 }
 0x7aa   :  { %v7819_v0 = vmul.f32 0.001953125, %v7816_v63  ;;  %v7842_v1 = vsub.f32 %v7838_v61, %v7840_v62 }
 0x7ab   :  { %v7837_v2 = vpop.xlane.xlu1 %7836 }
 0x7ac   :  { %v7844_v3 = vmax.f32 %v7842_v1, 0.0  ;;  %v7839_v4 = vmul.f32 0.001953125, %v7837_v2  ;;  %v7841_v5 = vmul.f32 %v7819_v0, %v7819_v0  ;;  %v7850_v36 = vsub.f32 %v10174_v29, %v7819_v0 }
 0x7ad   :  { %v7851_v54 = vsub.f32 %v10180_v38, %v7819_v0  ;;  %v7852_v37 = vsub.f32 %v10176_v31, %v7819_v0  ;;  %v7853_v23 = vsub.f32 %v7806_v44, %v7819_v0 }
 0x7ae   :  { %v7854_v6 = vadd.f32 1e-05, %v7844_v3  ;;  %v7843_v7 = vsub.f32 %v7839_v4, %v7841_v5 }
 0x7b0   :  { %9817 = vrsqrt.f32 %v7854_v6  ;;  %v7845_v8 = vmax.f32 %v7843_v7, 0.0 }
 0x7b2   :  { %v7855_v9 = vadd.f32 1e-05, %v7845_v8 }
 0x7b4   :  { %9819 = vrsqrt.f32 %v7855_v9 }
 0x7ba   :  { %v9818_v19 = vpop.eup %9817 }
 0x7bb   :  { %v7858_v20 = vmul.f32 %v9818_v19, %v7846_v11  ;;  %v7859_v60 = vmul.f32 %v9818_v19, %v7847_v16  ;;  %v7860_v33 = vmul.f32 %v9818_v19, %v7848_v17  ;;  %v7861_v35 = vmul.f32 %v9818_v19, %v7849_v18 }
 0x7bd   :  { %7866 = vst [vmem:[#allocation11] sm:$0xff] %v7858_v20  ;;  %7867 = vst [vmem:[#allocation11 + $0x8] sm:$0xff] %v7859_v60 }
 0x7be   :  { %7868 = vst [vmem:[#allocation11 + $0x10] sm:$0xff] %v7860_v33  ;;  %7869 = vst [vmem:[#allocation11 + $0x18] sm:$0xff] %v7861_v35  ;;  %v9820_v21 = vpop.eup %9819 }
 0x7bf   :  { %v7862_v22 = vmul.f32 %v9820_v21, %v7850_v36  ;;  %v7863_v24 = vmul.f32 %v9820_v21, %v7851_v54  ;;  %v7864_v26 = vmul.f32 %v9820_v21, %v7852_v37  ;;  %v7865_v48 = vmul.f32 %v9820_v21, %v7853_v23 }
 0x7c1   :  { %7870 = vst [vmem:[#allocation11 + $0x20] sm:$0xff] %v7862_v22  ;;  %7871 = vst [vmem:[#allocation11 + $0x28] sm:$0xff] %v7863_v24 }
 0x7c2   :  { %7872 = vst [vmem:[#allocation11 + $0x30] sm:$0xff] %v7864_v26  ;;  %7873 = vst [vmem:[#allocation11 + $0x38] sm:$0xff] %v7865_v48 }
 0x7c3   :  { %9950 = shalt.err (!%p9947_p2)
}
 0x7c4   :  { %s9951_s9 = scalar_lea.hbm %s10220_s5, 1024 }
 0x7c5   :  { %p9952_p3 = scmp.ne.s32.totalorder %s10220_s5, %s9951_s9  ;;  %p9955_p4 = scmp.lt.u32.totalorder %s9951_s9, %s10220_s5 }
 0x7c7   :  { %p9957_p5 = pnand %p9955_p4, %p9952_p3 }
 0x7c9   :  { %9960 = shalt.err (!%p9957_p5)
}
 0x7ca   :  { %7885 = dma.vmem_to_hbm [thread:$0]  %s7880_s29, 1024, %s10220_s5, [#allocation4], %s9976_s3, %s9976_s3, %s9977_s30  }
 0x7cb   :  { %9967 = dma.done.wait [#allocation4], 1024  }
 0x7cc   :  { %9968 = vsyncadd [#allocation4], 4294966272 }
 0x7cd   :  { %7889 = vsyncpa [#allocation3], 1 }
 0x7ce   :  { %7890 = vsyncpa [#allocation6], 1 }
 0x7cf   :  { %7891 = vsyncpa [#allocation9], 1 }
 0x7d0   :  { %7892 = vsyncpa [#allocation4], 1 }

</bundles_post_ra>
